<compile_context>
chip_gen: v7x
topology: tpu7x:2x2x1
jax: 0.10.0
libtpu: 0.0.40
codegen_flags: <defaults>
</compile_context>

<pallas_src>
import functools
import math

import jax
import jax.numpy as jnp
from jax import lax
from jax.experimental import pallas as pl
from jax.experimental.pallas import tpu as pltpu


# ----------------------------- fused kernel ---------------------------------
def _fused_fourdir_lstm_kernel(x_ref, wih_ref, whh_ref, b_ref, h0_ref, c0_ref,
                               out_ref, proj_scr, *, T, steps, H, unrolled):
    """Fused 4-direction LSTM (one batch block per grid program).

    x_ref   : (T*Bh, F_comb)  packed time-major inputs (all 4 directions)
    wih_ref : (F_comb, 16H)   gate-major, direction-block-diagonal input w.
    whh_ref : (4H, 16H)       gate-major, direction-block-diagonal recurrent w.
    b_ref   : (1, 16H)        combined bias (b_ih + b_hh), gate-major, f32
    h0_ref  : (Bh, 4H)        fused initial hidden state (f32)
    c0_ref  : (Bh, 4H)        fused initial cell state (f32)
    out_ref : (Bh, 4H)        fused final hidden state (== module concat order)
    proj_scr: (T*Bh, 16H)     f32 VMEM scratch for the hoisted input projection
    """
    Bh = h0_ref.shape[0]
    H4 = 4 * H
    mxu_dtype = whh_ref.dtype

    # Hoisted input projection (+ bias) for every timestep of every direction:
    # one big MXU matmul instead of 4*T tiny ones; bias broadcast happens once.
    proj_scr[...] = (
        jnp.dot(x_ref[...], wih_ref[...], preferred_element_type=jnp.float32)
        + b_ref[...])

    # Per-direction lane masks; only needed to freeze directions that finish
    # before T (e.g. the rightleft pair when seq_size < feat_size).
    lane = lax.broadcasted_iota(jnp.int32, (Bh, H4), 1)
    dir_mask = [(lane >= d * H) & (lane < (d + 1) * H) for d in range(4)]
    all_full = all(s == T for s in steps)

    def cell(row0, h, c):
        # NOTE: whh_ref is indexed *inside* every step (never hoisted to a
        # live value) so the 256 KB weight streams VMEM->MXU instead of
        # occupying the whole register file across the recurrence.
        gates = (proj_scr[pl.ds(row0, Bh), :]
                 + jnp.dot(h.astype(mxu_dtype), whh_ref[...],
                           preferred_element_type=jnp.float32))
        # Gate-major layout: each gate block is a full, (8,128)-aligned 4H
        # slice already matching the fused state layout (no rolls needed).
        i_g = jax.nn.sigmoid(gates[:, 0 * H4:1 * H4])
        f_g = jax.nn.sigmoid(gates[:, 1 * H4:2 * H4])
        g_g = jnp.tanh(gates[:, 2 * H4:3 * H4])
        o_g = jax.nn.sigmoid(gates[:, 3 * H4:4 * H4])
        c_new = f_g * c + i_g * g_g
        h_new = o_g * jnp.tanh(c_new)
        return h_new, c_new

    h = h0_ref[...].astype(jnp.float32)   # state stays in vregs (small: Bh x 4H)
    c = c0_ref[...].astype(jnp.float32)

    if unrolled:
        # Small static T: fully unroll (gives the LLO scheduler full visibility).
        for t in range(T):
            h_new, c_new = cell(t * Bh, h, c)
            active = [d for d in range(4) if t < steps[d]]
            if len(active) == 4:                      # common case: no mask
                h, c = h_new, c_new
            else:                                     # freeze finished dirs
                m = functools.reduce(jnp.logical_or,
                                     [dir_mask[d] for d in active])
                h = jnp.where(m, h_new, h)
                c = jnp.where(m, c_new, c)
    else:
        # Large T: partially unrolled fori_loop (bounds code size / compile
        # time without lengthening the serial dependence chain).
        def body(t, carry):
            hh, cc = carry
            row0 = pl.multiple_of(t * Bh, 8)
            h_new, c_new = cell(row0, hh, cc)
            if all_full:
                return h_new, c_new
            m = functools.reduce(
                jnp.logical_or,
                [jnp.logical_and(dir_mask[d], t < steps[d]) for d in range(4)])
            return jnp.where(m, h_new, hh), jnp.where(m, c_new, cc)

        h, c = lax.fori_loop(0, T, body, (h, c), unroll=min(T, 8))

    out_ref[...] = h.astype(out_ref.dtype)            # single lane-dense store


# --------------------------- one-time weight packing -------------------------
def _block_diag(blocks):
    rows = sum(b.shape[0] for b in blocks)
    cols = sum(b.shape[1] for b in blocks)
    out = jnp.zeros((rows, cols), jnp.float32)
    r = c = 0
    for b in blocks:
        out = out.at[r:r + b.shape[0], c:c + b.shape[1]].set(b)
        r += b.shape[0]
        c += b.shape[1]
    return out


def pack_params(params, hidden_size, mxu_dtype=jnp.float32):
    """Build fused gate-major weights ONCE (pure function of static params).

    Columns (width 16H): gate blocks [i | f | g | o], each 4H wide; within a
    gate block, directions [rl_fw, rl_bw, du_fw, du_bw], H lanes each.
    wih rows = packed-input features (sum of F_d); whh rows = fused state (4H).
    """
    H = hidden_size
    dir_params = [params["rl_fw"], params["rl_bw"],
                  params["du_fw"], params["du_bw"]]
    wih_blocks, whh_blocks, b_blocks = [], [], []
    for k in range(4):                                   # gate i, f, g, o
        wih_blocks.append(_block_diag(
            [p["w_ih"][k * H:(k + 1) * H, :].astype(jnp.float32).T
             for p in dir_params]))
        whh_blocks.append(_block_diag(
            [p["w_hh"][k * H:(k + 1) * H, :].astype(jnp.float32).T
             for p in dir_params]))
        b_blocks.append(jnp.concatenate(
            [(p["b_ih"][k * H:(k + 1) * H]
              + p["b_hh"][k * H:(k + 1) * H]).astype(jnp.float32)
             for p in dir_params]))
    wih_c = jnp.concatenate(wih_blocks, axis=1).astype(mxu_dtype)  # (sumF,16H)
    whh_c = jnp.concatenate(whh_blocks, axis=1).astype(mxu_dtype)  # (4H, 16H)
    b_c = jnp.concatenate(b_blocks).reshape(1, -1)                 # (1, 16H) f32
    return {"wih": wih_c, "whh": whh_c, "b": b_c}


# --------------------------- wrapper-side input pack --------------------------
def _pack_inputs(x_flat, seq_size, Bp, nb):
    """Packed time-major inputs for all four directions, split into nb
    contiguous batch blocks of Bh = Bp // nb rows each.

    Returns (nb*T*Bh, 2*F_rl + 2*F_du), static T, and per-direction step
    counts.  Backward-direction time reversal and zero padding for the shorter
    sequence are baked into this one-shot pack.
    """
    B, origin = x_flat.shape
    feat = origin // seq_size
    x_rl = x_flat.reshape(B, seq_size, feat)             # (B, T_rl, F_rl)
    x_du = jnp.transpose(x_rl, (0, 2, 1))                # (B, T_du, F_du)
    T_rl, T_du = seq_size, feat
    T = max(T_rl, T_du)

    def tm(x_btf, reverse):
        x_t = jnp.transpose(x_btf, (1, 0, 2))            # (T_d, B, F_d)
        if reverse:
            x_t = x_t[::-1]
        return jnp.pad(x_t, ((0, T - x_t.shape[0]), (0, Bp - B), (0, 0)))

    packed = jnp.concatenate([tm(x_rl, False), tm(x_rl, True),
                              tm(x_du, False), tm(x_du, True)],
                             axis=-1)                    # (T, Bp, F_comb)
    F_comb = packed.shape[-1]
    Bh = Bp // nb
    packed = packed.reshape(T, nb, Bh, F_comb).transpose(1, 0, 2, 3)
    return packed.reshape(nb * T * Bh, F_comb), T, (T_rl, T_rl, T_du, T_du)


def _round_up(x, m):
    return -(-x // m) * m


# ------------------------------ forward pass ---------------------------------
def four_directional_lstm_forward(x, packed_params, h_lr, c_lr, h_ud, c_ud, *,
                                  seq_size, hidden_size, batch_blocks=1,
                                  unroll_time_steps=32):
    """Pallas-backed FourDirectionalLSTM.forward (single fused pallas_call).

    x: (B, origin_feat).  h_*/c_*: (2, B, H) initial states per direction
    (deterministic stand-ins for torch.randn).  Returns (B, 4*hidden_size)
    = cat([hlr_fw, hlr_bw, hud_fw, hud_bw], dim=1).

    batch_blocks=2 splits the batch across a leading "parallel" grid axis
    (useful on v7x's 2 TensorCores when padded batch >= 16); default 1 keeps
    the whole batch in one program (best for 1-TC v5e/v6e).
    """
    B = x.shape[0]
    H = hidden_size
    assert H % 32 == 0, "hidden_size must be a multiple of 32 (lane alignment)"
    nb = batch_blocks
    Bp = max(nb * 8, _round_up(B, nb * 8))               # pad batch to sublanes
    Bh = Bp // nb

    mxu_dtype = packed_params["wih"].dtype
    x_packed, T, steps = _pack_inputs(x.astype(jnp.float32), seq_size, Bp, nb)
    x_packed = x_packed.astype(mxu_dtype)
    wih_c, whh_c, b_c = (packed_params["wih"], packed_params["whh"],
                         packed_params["b"])

    h0 = jnp.concatenate([h_lr[0], h_lr[1], h_ud[0], h_ud[1]],
                         axis=1).astype(jnp.float32)
    c0 = jnp.concatenate([c_lr[0], c_lr[1], c_ud[0], c_ud[1]],
                         axis=1).astype(jnp.float32)
    h0 = jnp.pad(h0, ((0, Bp - B), (0, 0)))
    c0 = jnp.pad(c0, ((0, Bp - B), (0, 0)))

    F_comb = x_packed.shape[1]
    H4, H16 = 4 * H, 16 * H

    # Explicit VMEM budget (double-buffered blocks + projection scratch).
    itm = jnp.dtype(mxu_dtype).itemsize
    block_bytes = (T * Bh * F_comb * itm + wih_c.size * itm + whh_c.size * itm
                   + b_c.size * 4 + 3 * Bh * H4 * 4)
    scratch_bytes = T * Bh * H16 * 4
    budget = 2 * block_bytes + scratch_bytes + (2 << 20)
    vmem_limit = None
    if budget > (16 << 20):           # v5e default scoped VMEM limit
        # TODO(synk): for very large T, window the hoisted projection over
        # time chunks instead of raising the limit further.
        vmem_limit = min(budget, 64 << 20)

    kernel = functools.partial(_fused_fourdir_lstm_kernel,
                               T=T, steps=steps, H=H,
                               unrolled=(T <= unroll_time_steps))
    out = pl.pallas_call(
        kernel,
        out_shape=jax.ShapeDtypeStruct((Bp, H4), jnp.float32),
        grid=(nb,),
        in_specs=[
            pl.BlockSpec((T * Bh, F_comb), lambda j: (j, 0)),
            pl.BlockSpec((F_comb, H16), lambda j: (0, 0)),
            pl.BlockSpec((H4, H16), lambda j: (0, 0)),
            pl.BlockSpec((1, H16), lambda j: (0, 0)),
            pl.BlockSpec((Bh, H4), lambda j: (j, 0)),
            pl.BlockSpec((Bh, H4), lambda j: (j, 0)),
        ],
        out_specs=pl.BlockSpec((Bh, H4), lambda j: (j, 0)),
        scratch_shapes=[pltpu.VMEM((T * Bh, H16), jnp.float32)],
        compiler_params=pltpu.CompilerParams(
            dimension_semantics=("parallel",),
            vmem_limit_bytes=vmem_limit),
    )(x_packed, wih_c, whh_c, b_c, h0, c0)
    return out[:B]                                       # drop batch padding


def atlocplus_forward(x, packed_params, h_lr, c_lr, h_ud, c_ud, *,
                      seq_size, hidden_size, batch_blocks=1,
                      unroll_time_steps=32):
    """AtLocPlus.forward semantics: x.view(-1, *s[2:]) -> inner model ->
    .view(s0, s1, -1).  The inner model here is the fused 4-directional LSTM
    core of the AtLoc+ network."""
    s = x.shape
    x_flat = x.reshape((s[0] * s[1],) + s[2:])
    poses = four_directional_lstm_forward(
        x_flat, packed_params, h_lr, c_lr, h_ud, c_ud,
        seq_size=seq_size, hidden_size=hidden_size,
        batch_blocks=batch_blocks, unroll_time_steps=unroll_time_steps)
    return poses.reshape(s[0], s[1], -1)


# ------------------------------- parameters ----------------------------------
def init_params(key, seq_size, feat_size, hidden_size):
    """Deterministic PyTorch-style LSTM init: U(-1/sqrt(H), 1/sqrt(H))."""
    k = 1.0 / math.sqrt(hidden_size)

    def one_dir(key, input_size):
        k1, k2, k3, k4 = jax.random.split(key, 4)
        return {
            "w_ih": jax.random.uniform(k1, (4 * hidden_size, input_size),
                                       jnp.float32, -k, k),
            "w_hh": jax.random.uniform(k2, (4 * hidden_size, hidden_size),
                                       jnp.float32, -k, k),
            "b_ih": jax.random.uniform(k3, (4 * hidden_size,),
                                       jnp.float32, -k, k),
            "b_hh": jax.random.uniform(k4, (4 * hidden_size,),
                                       jnp.float32, -k, k),
        }

    keys = jax.random.split(key, 4)
    return {
        "rl_fw": one_dir(keys[0], feat_size),   # lstm_rightleft forward
        "rl_bw": one_dir(keys[1], feat_size),   # lstm_rightleft backward
        "du_fw": one_dir(keys[2], seq_size),    # lstm_downup forward
        "du_bw": one_dir(keys[3], seq_size),    # lstm_downup backward
    }


# ---------------- pure-JAX reference (for correctness check) ----------------
def _lstm_ref_final_hidden(x_tm, w_ih, w_hh, b_ih, b_hh, h0, c0, mxu_dtype):
    H = h0.shape[1]
    w_ih_t = w_ih.T.astype(mxu_dtype)
    w_hh_t = w_hh.T.astype(mxu_dtype)
    bias = b_ih + b_hh

    def step(carry, x_t):
        h, c = carry
        gates = (jnp.dot(x_t.astype(mxu_dtype), w_ih_t,
                         preferred_element_type=jnp.float32)
                 + jnp.dot(h.astype(mxu_dtype), w_hh_t,
                           preferred_element_type=jnp.float32)
                 + bias)
        i = jax.nn.sigmoid(gates[:, 0 * H:1 * H])
        f = jax.nn.sigmoid(gates[:, 1 * H:2 * H])
        g = jnp.tanh(gates[:, 2 * H:3 * H])
        o = jax.nn.sigmoid(gates[:, 3 * H:4 * H])
        c = f * c + i * g
        h = o * jnp.tanh(c)
        return (h, c), None

    (h, _), _ = lax.scan(step, (h0, c0), x_tm)
    return h


def reference_fourdir(x, params, seq_size, hidden_size, h_lr, c_lr, h_ud, c_ud,
                      mxu_dtype=jnp.float32):
    B = x.shape[0]
    feat_size = x.shape[1] // seq_size
    x_rl = x.reshape(B, seq_size, feat_size)
    x_du = jnp.transpose(x_rl, (0, 2, 1))

    def run(x_bt, p, h0, c0, reverse):
        x_tm = jnp.transpose(x_bt, (1, 0, 2))
        if reverse:
            x_tm = x_tm[::-1]
        return _lstm_ref_final_hidden(x_tm, p["w_ih"], p["w_hh"],
                                      p["b_ih"], p["b_hh"], h0, c0, mxu_dtype)

    return jnp.concatenate([
        run(x_rl, params["rl_fw"], h_lr[0], c_lr[0], False),
        run(x_rl, params["rl_bw"], h_lr[1], c_lr[1], True),
        run(x_du, params["du_fw"], h_ud[0], c_ud[0], False),
        run(x_du, params["du_bw"], h_ud[1], c_ud[1], True),
    ], axis=1)


def reference_atlocplus(x, params, seq_size, hidden_size, h_lr, c_lr, h_ud,
                        c_ud, mxu_dtype=jnp.float32):
    s = x.shape
    x_flat = x.reshape((s[0] * s[1],) + s[2:])
    out = reference_fourdir(x_flat, params, seq_size, hidden_size,
                            h_lr, c_lr, h_ud, c_ud, mxu_dtype)
    return out.reshape(s[0], s[1], -1)


# ----------------------------------- demo ------------------------------------
if __name__ == "__main__":
    seq_size = 8
    hidden_size = 32
    origin_feat_size = 128                     # feat_size = 128 // 8 = 16
    feat_size = origin_feat_size // seq_size

    key = jax.random.PRNGKey(0)
    k_p, k_rest = jax.random.split(key)
    params = init_params(k_p, seq_size, feat_size, hidden_size)

    # Pack fused weights ONCE (not per forward call).
    packed_f32 = pack_params(params, hidden_size, jnp.float32)
    packed_bf16 = pack_params(params, hidden_size, jnp.bfloat16)

    fwd = jax.jit(atlocplus_forward,
                  static_argnames=("seq_size", "hidden_size", "batch_blocks",
                                   "unroll_time_steps"))

    def make_inputs(k, S0, S1):
        B_flat = S0 * S1
        kx, kh1, kh2, kh3, kh4 = jax.random.split(k, 5)
        x = jax.random.normal(kx, (S0, S1, origin_feat_size), jnp.float32)
        # Deterministic stand-ins for the module's torch.randn initial states
        # (init_hidden_ draws fresh randoms every forward; fixed here).
        h_lr = jax.random.normal(kh1, (2, B_flat, hidden_size), jnp.float32)
        c_lr = jax.random.normal(kh2, (2, B_flat, hidden_size), jnp.float32)
        h_ud = jax.random.normal(kh3, (2, B_flat, hidden_size), jnp.float32)
        c_ud = jax.random.normal(kh4, (2, B_flat, hidden_size), jnp.float32)
        return x, h_lr, c_lr, h_ud, c_ud

    k1, k2 = jax.random.split(k_rest)

    # --- run 1: f32, single program, fully unrolled time loop ----------------
    x, h_lr, c_lr, h_ud, c_ud = make_inputs(k1, 2, 2)
    out = fwd(x, packed_f32, h_lr, c_lr, h_ud, c_ud,
              seq_size=seq_size, hidden_size=hidden_size)
    out = jax.block_until_ready(out)
    assert out.shape == (2, 2, 4 * hidden_size), out.shape
    ref = reference_atlocplus(x, params, seq_size, hidden_size,
                              h_lr, c_lr, h_ud, c_ud)
    assert jnp.allclose(out, ref, atol=2e-5, rtol=2e-5), \
        float(jnp.max(jnp.abs(out - ref)))

    # --- run 2: bf16 MXU operands, f32 accumulate / elementwise --------------
    out_bf = fwd(x, packed_bf16, h_lr, c_lr, h_ud, c_ud,
                 seq_size=seq_size, hidden_size=hidden_size)
    out_bf = jax.block_until_ready(out_bf)
    ref_bf = reference_atlocplus(x, params, seq_size, hidden_size,
                                 h_lr, c_lr, h_ud, c_ud,
                                 mxu_dtype=jnp.bfloat16)
    assert jnp.allclose(out_bf, ref_bf, atol=2e-3, rtol=2e-3), \
        float(jnp.max(jnp.abs(out_bf - ref_bf)))

    # --- run 3: larger batch, 2 batch blocks (v7x 2-TC path), fori_loop ------
    x3, h_lr3, c_lr3, h_ud3, c_ud3 = make_inputs(k2, 3, 7)
    out3 = fwd(x3, packed_f32, h_lr3, c_lr3, h_ud3, c_ud3,
               seq_size=seq_size, hidden_size=hidden_size,
               batch_blocks=2, unroll_time_steps=0)
    out3 = jax.block_until_ready(out3)
    assert out3.shape == (3, 7, 4 * hidden_size), out3.shape
    ref3 = reference_atlocplus(x3, params, seq_size, hidden_size,
                               h_lr3, c_lr3, h_ud3, c_ud3)
    assert jnp.allclose(out3, ref3, atol=2e-5, rtol=2e-5), \
        float(jnp.max(jnp.abs(out3 - ref3)))

    print("KERNEL_OK")
</pallas_src>

<mosaic_0001>
module attributes {stable_mosaic.version = 11 : i64} {
  func.func @_fused_fourdir_lstm_kernel(%arg0: i32, %arg1: memref<128x48xf32, #tpu.memory_space<vmem>>, %arg2: memref<48x512xf32, #tpu.memory_space<vmem>>, %arg3: memref<128x512xf32, #tpu.memory_space<vmem>>, %arg4: memref<1x512xf32, #tpu.memory_space<vmem>>, %arg5: memref<8x128xf32, #tpu.memory_space<vmem>>, %arg6: memref<8x128xf32, #tpu.memory_space<vmem>>, %arg7: memref<8x128xf32, #tpu.memory_space<vmem>>, %arg8: memref<128x512xf32, #tpu.memory_space<vmem>>) attributes {dimension_semantics = [#tpu.dimension_semantics<parallel>], iteration_bounds = array<i64: 1>, scalar_prefetch = 0 : i64, scratch_operands = 1 : i64, tpu.core_type = #tpu.core_type<tc>, window_params = [{transform_indices = @transform_0, window_bounds = array<i64: 128, 48>}, {pipeline_mode = #tpu.pipeline_mode<synchronous>, transform_indices = @transform_1, window_bounds = array<i64: 48, 512>}, {pipeline_mode = #tpu.pipeline_mode<synchronous>, transform_indices = @transform_2, window_bounds = array<i64: 128, 512>}, {pipeline_mode = #tpu.pipeline_mode<synchronous>, transform_indices = @transform_3, window_bounds = array<i64: 1, 512>}, {transform_indices = @transform_4, window_bounds = array<i64: 8, 128>}, {transform_indices = @transform_5, window_bounds = array<i64: 8, 128>}, {transform_indices = @transform_6, window_bounds = array<i64: 8, 128>}]} {
    %c0 = arith.constant 0 : index
    %c0_0 = arith.constant 0 : index
    %0 = vector.load %arg1[%c0, %c0_0] : memref<128x48xf32, #tpu.memory_space<vmem>>, vector<128x48xf32>
    %c0_1 = arith.constant 0 : index
    %c0_2 = arith.constant 0 : index
    %1 = vector.load %arg2[%c0_1, %c0_2] : memref<48x512xf32, #tpu.memory_space<vmem>>, vector<48x512xf32>
    %cst = arith.constant dense<0.000000e+00> : vector<128x512xf32>
    %2 = tpu.matmul %0, %1, %cst {dimension_numbers = #tpu.dot_dimension_numbers<[1], [0], [0], [1], [0, 0, 1, 1], [], []>} : vector<128x48xf32>, vector<48x512xf32>, vector<128x512xf32> -> vector<128x512xf32>
    %c0_3 = arith.constant 0 : index
    %c0_4 = arith.constant 0 : index
    %3 = vector.load %arg4[%c0_3, %c0_4] : memref<1x512xf32, #tpu.memory_space<vmem>>, vector<1x512xf32>
    %4 = vector.broadcast %3 : vector<1x512xf32> to vector<128x512xf32>
    %5 = arith.addf %2, %4 : vector<128x512xf32>
    %c0_5 = arith.constant 0 : index
    %c0_6 = arith.constant 0 : index
    %6 = vector.load %arg8[%c0_5, %c0_6] : memref<128x512xf32, #tpu.memory_space<vmem>>, vector<128x512xf32>
    tpu.vector_store %arg8[%c0_5, %c0_6], %5 {strides = array<i32>} : memref<128x512xf32, #tpu.memory_space<vmem>>, vector<128x512xf32>,
    %7 = tpu.iota {dimensions = array<i32: 1>} : vector<8x128xi32>
    %c64_i32 = arith.constant 64 : i32
    %8 = vector.broadcast %c64_i32 : i32 to vector<8x128xi32>
    %9 = arith.cmpi sge, %7, %8 : vector<8x128xi32>
    %c96_i32 = arith.constant 96 : i32
    %10 = vector.broadcast %c96_i32 : i32 to vector<8x128xi32>
    %11 = arith.cmpi slt, %7, %10 : vector<8x128xi32>
    %12 = arith.andi %9, %11 : vector<8x128xi1>
    %c96_i32_7 = arith.constant 96 : i32
    %13 = vector.broadcast %c96_i32_7 : i32 to vector<8x128xi32>
    %14 = arith.cmpi sge, %7, %13 : vector<8x128xi32>
    %c128_i32 = arith.constant 128 : i32
    %15 = vector.broadcast %c128_i32 : i32 to vector<8x128xi32>
    %16 = arith.cmpi slt, %7, %15 : vector<8x128xi32>
    %17 = arith.andi %14, %16 : vector<8x128xi1>
    %c0_8 = arith.constant 0 : index
    %c0_9 = arith.constant 0 : index
    %18 = vector.load %arg5[%c0_8, %c0_9] : memref<8x128xf32, #tpu.memory_space<vmem>>, vector<8x128xf32>
    %c0_10 = arith.constant 0 : index
    %c0_11 = arith.constant 0 : index
    %19 = vector.load %arg6[%c0_10, %c0_11] : memref<8x128xf32, #tpu.memory_space<vmem>>, vector<8x128xf32>
    %c0_12 = arith.constant 0 : index
    %c0_13 = arith.constant 0 : index
    %20 = vector.load %arg8[%c0_12, %c0_13] : memref<128x512xf32, #tpu.memory_space<vmem>>, vector<8x512xf32>
    %c0_14 = arith.constant 0 : index
    %c0_15 = arith.constant 0 : index
    %21 = vector.load %arg3[%c0_14, %c0_15] : memref<128x512xf32, #tpu.memory_space<vmem>>, vector<128x512xf32>
    %cst_16 = arith.constant dense<0.000000e+00> : vector<8x512xf32>
    %22 = tpu.matmul %18, %21, %cst_16 {dimension_numbers = #tpu.dot_dimension_numbers<[1], [0], [0], [1], [0, 0, 1, 1], [], []>} : vector<8x128xf32>, vector<128x512xf32>, vector<8x512xf32> -> vector<8x512xf32>
    %23 = arith.addf %20, %22 : vector<8x512xf32>
    %24 = vector.extract_strided_slice %23 {offsets = [0, 0], sizes = [8, 128], strides = [1, 1]} : vector<8x512xf32> to vector<8x128xf32>
    %25 = arith.negf %24 : vector<8x128xf32>
    %26 = math.exp %25 : vector<8x128xf32>
    %cst_17 = arith.constant 1.000000e+00 : f32
    %27 = vector.broadcast %cst_17 : f32 to vector<8x128xf32>
    %28 = arith.addf %27, %26 : vector<8x128xf32>
    %29 = arith.divf %27, %28 : vector<8x128xf32>
    %30 = vector.extract_strided_slice %23 {offsets = [0, 128], sizes = [8, 128], strides = [1, 1]} : vector<8x512xf32> to vector<8x128xf32>
    %31 = arith.negf %30 : vector<8x128xf32>
    %32 = math.exp %31 : vector<8x128xf32>
    %cst_18 = arith.constant 1.000000e+00 : f32
    %33 = vector.broadcast %cst_18 : f32 to vector<8x128xf32>
    %34 = arith.addf %33, %32 : vector<8x128xf32>
    %35 = arith.divf %33, %34 : vector<8x128xf32>
    %36 = vector.extract_strided_slice %23 {offsets = [0, 256], sizes = [8, 128], strides = [1, 1]} : vector<8x512xf32> to vector<8x128xf32>
    %37 = math.tanh %36 : vector<8x128xf32>
    %38 = vector.extract_strided_slice %23 {offsets = [0, 384], sizes = [8, 128], strides = [1, 1]} : vector<8x512xf32> to vector<8x128xf32>
    %39 = arith.negf %38 : vector<8x128xf32>
    %40 = math.exp %39 : vector<8x128xf32>
    %cst_19 = arith.constant 1.000000e+00 : f32
    %41 = vector.broadcast %cst_19 : f32 to vector<8x128xf32>
    %42 = arith.addf %41, %40 : vector<8x128xf32>
    %43 = arith.divf %41, %42 : vector<8x128xf32>
    %44 = arith.mulf %35, %19 : vector<8x128xf32>
    %45 = arith.mulf %29, %37 : vector<8x128xf32>
    %46 = arith.addf %44, %45 : vector<8x128xf32>
    %47 = math.tanh %46 : vector<8x128xf32>
    %48 = arith.mulf %43, %47 : vector<8x128xf32>
    %c8 = arith.constant 8 : index
    %c0_20 = arith.constant 0 : index
    %49 = vector.load %arg8[%c8, %c0_20] : memref<128x512xf32, #tpu.memory_space<vmem>>, vector<8x512xf32>
    %c0_21 = arith.constant 0 : index
    %c0_22 = arith.constant 0 : index
    %50 = vector.load %arg3[%c0_21, %c0_22] : memref<128x512xf32, #tpu.memory_space<vmem>>, vector<128x512xf32>
    %cst_23 = arith.constant dense<0.000000e+00> : vector<8x512xf32>
    %51 = tpu.matmul %48, %50, %cst_23 {dimension_numbers = #tpu.dot_dimension_numbers<[1], [0], [0], [1], [0, 0, 1, 1], [], []>} : vector<8x128xf32>, vector<128x512xf32>, vector<8x512xf32> -> vector<8x512xf32>
    %52 = arith.addf %49, %51 : vector<8x512xf32>
    %53 = vector.extract_strided_slice %52 {offsets = [0, 0], sizes = [8, 128], strides = [1, 1]} : vector<8x512xf32> to vector<8x128xf32>
    %54 = arith.negf %53 : vector<8x128xf32>
    %55 = math.exp %54 : vector<8x128xf32>
    %cst_24 = arith.constant 1.000000e+00 : f32
    %56 = vector.broadcast %cst_24 : f32 to vector<8x128xf32>
    %57 = arith.addf %56, %55 : vector<8x128xf32>
    %58 = arith.divf %56, %57 : vector<8x128xf32>
    %59 = vector.extract_strided_slice %52 {offsets = [0, 128], sizes = [8, 128], strides = [1, 1]} : vector<8x512xf32> to vector<8x128xf32>
    %60 = arith.negf %59 : vector<8x128xf32>
    %61 = math.exp %60 : vector<8x128xf32>
    %cst_25 = arith.constant 1.000000e+00 : f32
    %62 = vector.broadcast %cst_25 : f32 to vector<8x128xf32>
    %63 = arith.addf %62, %61 : vector<8x128xf32>
    %64 = arith.divf %62, %63 : vector<8x128xf32>
    %65 = vector.extract_strided_slice %52 {offsets = [0, 256], sizes = [8, 128], strides = [1, 1]} : vector<8x512xf32> to vector<8x128xf32>
    %66 = math.tanh %65 : vector<8x128xf32>
    %67 = vector.extract_strided_slice %52 {offsets = [0, 384], sizes = [8, 128], strides = [1, 1]} : vector<8x512xf32> to vector<8x128xf32>
    %68 = arith.negf %67 : vector<8x128xf32>
    %69 = math.exp %68 : vector<8x128xf32>
    %cst_26 = arith.constant 1.000000e+00 : f32
    %70 = vector.broadcast %cst_26 : f32 to vector<8x128xf32>
    %71 = arith.addf %70, %69 : vector<8x128xf32>
    %72 = arith.divf %70, %71 : vector<8x128xf32>
    %73 = arith.mulf %64, %46 : vector<8x128xf32>
    %74 = arith.mulf %58, %66 : vector<8x128xf32>
    %75 = arith.addf %73, %74 : vector<8x128xf32>
    %76 = math.tanh %75 : vector<8x128xf32>
    %77 = arith.mulf %72, %76 : vector<8x128xf32>
    %c16 = arith.constant 16 : index
    %c0_27 = arith.constant 0 : index
    %78 = vector.load %arg8[%c16, %c0_27] : memref<128x512xf32, #tpu.memory_space<vmem>>, vector<8x512xf32>
    %c0_28 = arith.constant 0 : index
    %c0_29 = arith.constant 0 : index
    %79 = vector.load %arg3[%c0_28, %c0_29] : memref<128x512xf32, #tpu.memory_space<vmem>>, vector<128x512xf32>
    %cst_30 = arith.constant dense<0.000000e+00> : vector<8x512xf32>
    %80 = tpu.matmul %77, %79, %cst_30 {dimension_numbers = #tpu.dot_dimension_numbers<[1], [0], [0], [1], [0, 0, 1, 1], [], []>} : vector<8x128xf32>, vector<128x512xf32>, vector<8x512xf32> -> vector<8x512xf32>
    %81 = arith.addf %78, %80 : vector<8x512xf32>
    %82 = vector.extract_strided_slice %81 {offsets = [0, 0], sizes = [8, 128], strides = [1, 1]} : vector<8x512xf32> to vector<8x128xf32>
    %83 = arith.negf %82 : vector<8x128xf32>
    %84 = math.exp %83 : vector<8x128xf32>
    %cst_31 = arith.constant 1.000000e+00 : f32
    %85 = vector.broadcast %cst_31 : f32 to vector<8x128xf32>
    %86 = arith.addf %85, %84 : vector<8x128xf32>
    %87 = arith.divf %85, %86 : vector<8x128xf32>
    %88 = vector.extract_strided_slice %81 {offsets = [0, 128], sizes = [8, 128], strides = [1, 1]} : vector<8x512xf32> to vector<8x128xf32>
    %89 = arith.negf %88 : vector<8x128xf32>
    %90 = math.exp %89 : vector<8x128xf32>
    %cst_32 = arith.constant 1.000000e+00 : f32
    %91 = vector.broadcast %cst_32 : f32 to vector<8x128xf32>
    %92 = arith.addf %91, %90 : vector<8x128xf32>
    %93 = arith.divf %91, %92 : vector<8x128xf32>
    %94 = vector.extract_strided_slice %81 {offsets = [0, 256], sizes = [8, 128], strides = [1, 1]} : vector<8x512xf32> to vector<8x128xf32>
    %95 = math.tanh %94 : vector<8x128xf32>
    %96 = vector.extract_strided_slice %81 {offsets = [0, 384], sizes = [8, 128], strides = [1, 1]} : vector<8x512xf32> to vector<8x128xf32>
    %97 = arith.negf %96 : vector<8x128xf32>
    %98 = math.exp %97 : vector<8x128xf32>
    %cst_33 = arith.constant 1.000000e+00 : f32
    %99 = vector.broadcast %cst_33 : f32 to vector<8x128xf32>
    %100 = arith.addf %99, %98 : vector<8x128xf32>
    %101 = arith.divf %99, %100 : vector<8x128xf32>
    %102 = arith.mulf %93, %75 : vector<8x128xf32>
    %103 = arith.mulf %87, %95 : vector<8x128xf32>
    %104 = arith.addf %102, %103 : vector<8x128xf32>
    %105 = math.tanh %104 : vector<8x128xf32>
    %106 = arith.mulf %101, %105 : vector<8x128xf32>
    %c24 = arith.constant 24 : index
    %c0_34 = arith.constant 0 : index
    %107 = vector.load %arg8[%c24, %c0_34] : memref<128x512xf32, #tpu.memory_space<vmem>>, vector<8x512xf32>
    %c0_35 = arith.constant 0 : index
    %c0_36 = arith.constant 0 : index
    %108 = vector.load %arg3[%c0_35, %c0_36] : memref<128x512xf32, #tpu.memory_space<vmem>>, vector<128x512xf32>
    %cst_37 = arith.constant dense<0.000000e+00> : vector<8x512xf32>
    %109 = tpu.matmul %106, %108, %cst_37 {dimension_numbers = #tpu.dot_dimension_numbers<[1], [0], [0], [1], [0, 0, 1, 1], [], []>} : vector<8x128xf32>, vector<128x512xf32>, vector<8x512xf32> -> vector<8x512xf32>
    %110 = arith.addf %107, %109 : vector<8x512xf32>
    %111 = vector.extract_strided_slice %110 {offsets = [0, 0], sizes = [8, 128], strides = [1, 1]} : vector<8x512xf32> to vector<8x128xf32>
    %112 = arith.negf %111 : vector<8x128xf32>
    %113 = math.exp %112 : vector<8x128xf32>
    %cst_38 = arith.constant 1.000000e+00 : f32
    %114 = vector.broadcast %cst_38 : f32 to vector<8x128xf32>
    %115 = arith.addf %114, %113 : vector<8x128xf32>
    %116 = arith.divf %114, %115 : vector<8x128xf32>
    %117 = vector.extract_strided_slice %110 {offsets = [0, 128], sizes = [8, 128], strides = [1, 1]} : vector<8x512xf32> to vector<8x128xf32>
    %118 = arith.negf %117 : vector<8x128xf32>
    %119 = math.exp %118 : vector<8x128xf32>
    %cst_39 = arith.constant 1.000000e+00 : f32
    %120 = vector.broadcast %cst_39 : f32 to vector<8x128xf32>
    %121 = arith.addf %120, %119 : vector<8x128xf32>
    %122 = arith.divf %120, %121 : vector<8x128xf32>
    %123 = vector.extract_strided_slice %110 {offsets = [0, 256], sizes = [8, 128], strides = [1, 1]} : vector<8x512xf32> to vector<8x128xf32>
    %124 = math.tanh %123 : vector<8x128xf32>
    %125 = vector.extract_strided_slice %110 {offsets = [0, 384], sizes = [8, 128], strides = [1, 1]} : vector<8x512xf32> to vector<8x128xf32>
    %126 = arith.negf %125 : vector<8x128xf32>
    %127 = math.exp %126 : vector<8x128xf32>
    %cst_40 = arith.constant 1.000000e+00 : f32
    %128 = vector.broadcast %cst_40 : f32 to vector<8x128xf32>
    %129 = arith.addf %128, %127 : vector<8x128xf32>
    %130 = arith.divf %128, %129 : vector<8x128xf32>
    %131 = arith.mulf %122, %104 : vector<8x128xf32>
    %132 = arith.mulf %116, %124 : vector<8x128xf32>
    %133 = arith.addf %131, %132 : vector<8x128xf32>
    %134 = math.tanh %133 : vector<8x128xf32>
    %135 = arith.mulf %130, %134 : vector<8x128xf32>
    %c32 = arith.constant 32 : index
    %c0_41 = arith.constant 0 : index
    %136 = vector.load %arg8[%c32, %c0_41] : memref<128x512xf32, #tpu.memory_space<vmem>>, vector<8x512xf32>
    %c0_42 = arith.constant 0 : index
    %c0_43 = arith.constant 0 : index
    %137 = vector.load %arg3[%c0_42, %c0_43] : memref<128x512xf32, #tpu.memory_space<vmem>>, vector<128x512xf32>
    %cst_44 = arith.constant dense<0.000000e+00> : vector<8x512xf32>
    %138 = tpu.matmul %135, %137, %cst_44 {dimension_numbers = #tpu.dot_dimension_numbers<[1], [0], [0], [1], [0, 0, 1, 1], [], []>} : vector<8x128xf32>, vector<128x512xf32>, vector<8x512xf32> -> vector<8x512xf32>
    %139 = arith.addf %136, %138 : vector<8x512xf32>
    %140 = vector.extract_strided_slice %139 {offsets = [0, 0], sizes = [8, 128], strides = [1, 1]} : vector<8x512xf32> to vector<8x128xf32>
    %141 = arith.negf %140 : vector<8x128xf32>
    %142 = math.exp %141 : vector<8x128xf32>
    %cst_45 = arith.constant 1.000000e+00 : f32
    %143 = vector.broadcast %cst_45 : f32 to vector<8x128xf32>
    %144 = arith.addf %143, %142 : vector<8x128xf32>
    %145 = arith.divf %143, %144 : vector<8x128xf32>
    %146 = vector.extract_strided_slice %139 {offsets = [0, 128], sizes = [8, 128], strides = [1, 1]} : vector<8x512xf32> to vector<8x128xf32>
    %147 = arith.negf %146 : vector<8x128xf32>
    %148 = math.exp %147 : vector<8x128xf32>
    %cst_46 = arith.constant 1.000000e+00 : f32
    %149 = vector.broadcast %cst_46 : f32 to vector<8x128xf32>
    %150 = arith.addf %149, %148 : vector<8x128xf32>
    %151 = arith.divf %149, %150 : vector<8x128xf32>
    %152 = vector.extract_strided_slice %139 {offsets = [0, 256], sizes = [8, 128], strides = [1, 1]} : vector<8x512xf32> to vector<8x128xf32>
    %153 = math.tanh %152 : vector<8x128xf32>
    %154 = vector.extract_strided_slice %139 {offsets = [0, 384], sizes = [8, 128], strides = [1, 1]} : vector<8x512xf32> to vector<8x128xf32>
    %155 = arith.negf %154 : vector<8x128xf32>
    %156 = math.exp %155 : vector<8x128xf32>
    %cst_47 = arith.constant 1.000000e+00 : f32
    %157 = vector.broadcast %cst_47 : f32 to vector<8x128xf32>
    %158 = arith.addf %157, %156 : vector<8x128xf32>
    %159 = arith.divf %157, %158 : vector<8x128xf32>
    %160 = arith.mulf %151, %133 : vector<8x128xf32>
    %161 = arith.mulf %145, %153 : vector<8x128xf32>
    %162 = arith.addf %160, %161 : vector<8x128xf32>
    %163 = math.tanh %162 : vector<8x128xf32>
    %164 = arith.mulf %159, %163 : vector<8x128xf32>
    %c40 = arith.constant 40 : index
    %c0_48 = arith.constant 0 : index
    %165 = vector.load %arg8[%c40, %c0_48] : memref<128x512xf32, #tpu.memory_space<vmem>>, vector<8x512xf32>
    %c0_49 = arith.constant 0 : index
    %c0_50 = arith.constant 0 : index
    %166 = vector.load %arg3[%c0_49, %c0_50] : memref<128x512xf32, #tpu.memory_space<vmem>>, vector<128x512xf32>
    %cst_51 = arith.constant dense<0.000000e+00> : vector<8x512xf32>
    %167 = tpu.matmul %164, %166, %cst_51 {dimension_numbers = #tpu.dot_dimension_numbers<[1], [0], [0], [1], [0, 0, 1, 1], [], []>} : vector<8x128xf32>, vector<128x512xf32>, vector<8x512xf32> -> vector<8x512xf32>
    %168 = arith.addf %165, %167 : vector<8x512xf32>
    %169 = vector.extract_strided_slice %168 {offsets = [0, 0], sizes = [8, 128], strides = [1, 1]} : vector<8x512xf32> to vector<8x128xf32>
    %170 = arith.negf %169 : vector<8x128xf32>
    %171 = math.exp %170 : vector<8x128xf32>
    %cst_52 = arith.constant 1.000000e+00 : f32
    %172 = vector.broadcast %cst_52 : f32 to vector<8x128xf32>
    %173 = arith.addf %172, %171 : vector<8x128xf32>
    %174 = arith.divf %172, %173 : vector<8x128xf32>
    %175 = vector.extract_strided_slice %168 {offsets = [0, 128], sizes = [8, 128], strides = [1, 1]} : vector<8x512xf32> to vector<8x128xf32>
    %176 = arith.negf %175 : vector<8x128xf32>
    %177 = math.exp %176 : vector<8x128xf32>
    %cst_53 = arith.constant 1.000000e+00 : f32
    %178 = vector.broadcast %cst_53 : f32 to vector<8x128xf32>
    %179 = arith.addf %178, %177 : vector<8x128xf32>
    %180 = arith.divf %178, %179 : vector<8x128xf32>
    %181 = vector.extract_strided_slice %168 {offsets = [0, 256], sizes = [8, 128], strides = [1, 1]} : vector<8x512xf32> to vector<8x128xf32>
    %182 = math.tanh %181 : vector<8x128xf32>
    %183 = vector.extract_strided_slice %168 {offsets = [0, 384], sizes = [8, 128], strides = [1, 1]} : vector<8x512xf32> to vector<8x128xf32>
    %184 = arith.negf %183 : vector<8x128xf32>
    %185 = math.exp %184 : vector<8x128xf32>
    %cst_54 = arith.constant 1.000000e+00 : f32
    %186 = vector.broadcast %cst_54 : f32 to vector<8x128xf32>
    %187 = arith.addf %186, %185 : vector<8x128xf32>
    %188 = arith.divf %186, %187 : vector<8x128xf32>
    %189 = arith.mulf %180, %162 : vector<8x128xf32>
    %190 = arith.mulf %174, %182 : vector<8x128xf32>
    %191 = arith.addf %189, %190 : vector<8x128xf32>
    %192 = math.tanh %191 : vector<8x128xf32>
    %193 = arith.mulf %188, %192 : vector<8x128xf32>
    %c48 = arith.constant 48 : index
    %c0_55 = arith.constant 0 : index
    %194 = vector.load %arg8[%c48, %c0_55] : memref<128x512xf32, #tpu.memory_space<vmem>>, vector<8x512xf32>
    %c0_56 = arith.constant 0 : index
    %c0_57 = arith.constant 0 : index
    %195 = vector.load %arg3[%c0_56, %c0_57] : memref<128x512xf32, #tpu.memory_space<vmem>>, vector<128x512xf32>
    %cst_58 = arith.constant dense<0.000000e+00> : vector<8x512xf32>
    %196 = tpu.matmul %193, %195, %cst_58 {dimension_numbers = #tpu.dot_dimension_numbers<[1], [0], [0], [1], [0, 0, 1, 1], [], []>} : vector<8x128xf32>, vector<128x512xf32>, vector<8x512xf32> -> vector<8x512xf32>
    %197 = arith.addf %194, %196 : vector<8x512xf32>
    %198 = vector.extract_strided_slice %197 {offsets = [0, 0], sizes = [8, 128], strides = [1, 1]} : vector<8x512xf32> to vector<8x128xf32>
    %199 = arith.negf %198 : vector<8x128xf32>
    %200 = math.exp %199 : vector<8x128xf32>
    %cst_59 = arith.constant 1.000000e+00 : f32
    %201 = vector.broadcast %cst_59 : f32 to vector<8x128xf32>
    %202 = arith.addf %201, %200 : vector<8x128xf32>
    %203 = arith.divf %201, %202 : vector<8x128xf32>
    %204 = vector.extract_strided_slice %197 {offsets = [0, 128], sizes = [8, 128], strides = [1, 1]} : vector<8x512xf32> to vector<8x128xf32>
    %205 = arith.negf %204 : vector<8x128xf32>
    %206 = math.exp %205 : vector<8x128xf32>
    %cst_60 = arith.constant 1.000000e+00 : f32
    %207 = vector.broadcast %cst_60 : f32 to vector<8x128xf32>
    %208 = arith.addf %207, %206 : vector<8x128xf32>
    %209 = arith.divf %207, %208 : vector<8x128xf32>
    %210 = vector.extract_strided_slice %197 {offsets = [0, 256], sizes = [8, 128], strides = [1, 1]} : vector<8x512xf32> to vector<8x128xf32>
    %211 = math.tanh %210 : vector<8x128xf32>
    %212 = vector.extract_strided_slice %197 {offsets = [0, 384], sizes = [8, 128], strides = [1, 1]} : vector<8x512xf32> to vector<8x128xf32>
    %213 = arith.negf %212 : vector<8x128xf32>
    %214 = math.exp %213 : vector<8x128xf32>
    %cst_61 = arith.constant 1.000000e+00 : f32
    %215 = vector.broadcast %cst_61 : f32 to vector<8x128xf32>
    %216 = arith.addf %215, %214 : vector<8x128xf32>
    %217 = arith.divf %215, %216 : vector<8x128xf32>
    %218 = arith.mulf %209, %191 : vector<8x128xf32>
    %219 = arith.mulf %203, %211 : vector<8x128xf32>
    %220 = arith.addf %218, %219 : vector<8x128xf32>
    %221 = math.tanh %220 : vector<8x128xf32>
    %222 = arith.mulf %217, %221 : vector<8x128xf32>
    %c56 = arith.constant 56 : index
    %c0_62 = arith.constant 0 : index
    %223 = vector.load %arg8[%c56, %c0_62] : memref<128x512xf32, #tpu.memory_space<vmem>>, vector<8x512xf32>
    %c0_63 = arith.constant 0 : index
    %c0_64 = arith.constant 0 : index
    %224 = vector.load %arg3[%c0_63, %c0_64] : memref<128x512xf32, #tpu.memory_space<vmem>>, vector<128x512xf32>
    %cst_65 = arith.constant dense<0.000000e+00> : vector<8x512xf32>
    %225 = tpu.matmul %222, %224, %cst_65 {dimension_numbers = #tpu.dot_dimension_numbers<[1], [0], [0], [1], [0, 0, 1, 1], [], []>} : vector<8x128xf32>, vector<128x512xf32>, vector<8x512xf32> -> vector<8x512xf32>
    %226 = arith.addf %223, %225 : vector<8x512xf32>
    %227 = vector.extract_strided_slice %226 {offsets = [0, 0], sizes = [8, 128], strides = [1, 1]} : vector<8x512xf32> to vector<8x128xf32>
    %228 = arith.negf %227 : vector<8x128xf32>
    %229 = math.exp %228 : vector<8x128xf32>
    %cst_66 = arith.constant 1.000000e+00 : f32
    %230 = vector.broadcast %cst_66 : f32 to vector<8x128xf32>
    %231 = arith.addf %230, %229 : vector<8x128xf32>
    %232 = arith.divf %230, %231 : vector<8x128xf32>
    %233 = vector.extract_strided_slice %226 {offsets = [0, 128], sizes = [8, 128], strides = [1, 1]} : vector<8x512xf32> to vector<8x128xf32>
    %234 = arith.negf %233 : vector<8x128xf32>
    %235 = math.exp %234 : vector<8x128xf32>
    %cst_67 = arith.constant 1.000000e+00 : f32
    %236 = vector.broadcast %cst_67 : f32 to vector<8x128xf32>
    %237 = arith.addf %236, %235 : vector<8x128xf32>
    %238 = arith.divf %236, %237 : vector<8x128xf32>
    %239 = vector.extract_strided_slice %226 {offsets = [0, 256], sizes = [8, 128], strides = [1, 1]} : vector<8x512xf32> to vector<8x128xf32>
    %240 = math.tanh %239 : vector<8x128xf32>
    %241 = vector.extract_strided_slice %226 {offsets = [0, 384], sizes = [8, 128], strides = [1, 1]} : vector<8x512xf32> to vector<8x128xf32>
    %242 = arith.negf %241 : vector<8x128xf32>
    %243 = math.exp %242 : vector<8x128xf32>
    %cst_68 = arith.constant 1.000000e+00 : f32
    %244 = vector.broadcast %cst_68 : f32 to vector<8x128xf32>
    %245 = arith.addf %244, %243 : vector<8x128xf32>
    %246 = arith.divf %244, %245 : vector<8x128xf32>
    %247 = arith.mulf %238, %220 : vector<8x128xf32>
    %248 = arith.mulf %232, %240 : vector<8x128xf32>
    %249 = arith.addf %247, %248 : vector<8x128xf32>
    %250 = math.tanh %249 : vector<8x128xf32>
    %251 = arith.mulf %246, %250 : vector<8x128xf32>
    %c64 = arith.constant 64 : index
    %c0_69 = arith.constant 0 : index
    %252 = vector.load %arg8[%c64, %c0_69] : memref<128x512xf32, #tpu.memory_space<vmem>>, vector<8x512xf32>
    %c0_70 = arith.constant 0 : index
    %c0_71 = arith.constant 0 : index
    %253 = vector.load %arg3[%c0_70, %c0_71] : memref<128x512xf32, #tpu.memory_space<vmem>>, vector<128x512xf32>
    %cst_72 = arith.constant dense<0.000000e+00> : vector<8x512xf32>
    %254 = tpu.matmul %251, %253, %cst_72 {dimension_numbers = #tpu.dot_dimension_numbers<[1], [0], [0], [1], [0, 0, 1, 1], [], []>} : vector<8x128xf32>, vector<128x512xf32>, vector<8x512xf32> -> vector<8x512xf32>
    %255 = arith.addf %252, %254 : vector<8x512xf32>
    %256 = vector.extract_strided_slice %255 {offsets = [0, 0], sizes = [8, 128], strides = [1, 1]} : vector<8x512xf32> to vector<8x128xf32>
    %257 = arith.negf %256 : vector<8x128xf32>
    %258 = math.exp %257 : vector<8x128xf32>
    %cst_73 = arith.constant 1.000000e+00 : f32
    %259 = vector.broadcast %cst_73 : f32 to vector<8x128xf32>
    %260 = arith.addf %259, %258 : vector<8x128xf32>
    %261 = arith.divf %259, %260 : vector<8x128xf32>
    %262 = vector.extract_strided_slice %255 {offsets = [0, 128], sizes = [8, 128], strides = [1, 1]} : vector<8x512xf32> to vector<8x128xf32>
    %263 = arith.negf %262 : vector<8x128xf32>
    %264 = math.exp %263 : vector<8x128xf32>
    %cst_74 = arith.constant 1.000000e+00 : f32
    %265 = vector.broadcast %cst_74 : f32 to vector<8x128xf32>
    %266 = arith.addf %265, %264 : vector<8x128xf32>
    %267 = arith.divf %265, %266 : vector<8x128xf32>
    %268 = vector.extract_strided_slice %255 {offsets = [0, 256], sizes = [8, 128], strides = [1, 1]} : vector<8x512xf32> to vector<8x128xf32>
    %269 = math.tanh %268 : vector<8x128xf32>
    %270 = vector.extract_strided_slice %255 {offsets = [0, 384], sizes = [8, 128], strides = [1, 1]} : vector<8x512xf32> to vector<8x128xf32>
    %271 = arith.negf %270 : vector<8x128xf32>
    %272 = math.exp %271 : vector<8x128xf32>
    %cst_75 = arith.constant 1.000000e+00 : f32
    %273 = vector.broadcast %cst_75 : f32 to vector<8x128xf32>
    %274 = arith.addf %273, %272 : vector<8x128xf32>
    %275 = arith.divf %273, %274 : vector<8x128xf32>
    %276 = arith.mulf %267, %249 : vector<8x128xf32>
    %277 = arith.mulf %261, %269 : vector<8x128xf32>
    %278 = arith.addf %276, %277 : vector<8x128xf32>
    %279 = math.tanh %278 : vector<8x128xf32>
    %280 = arith.mulf %275, %279 : vector<8x128xf32>
    %281 = arith.ori %12, %17 : vector<8x128xi1>
    %282 = arith.select %281, %280, %251 : vector<8x128xi1>, vector<8x128xf32>
    %283 = arith.select %281, %278, %249 : vector<8x128xi1>, vector<8x128xf32>
    %c72 = arith.constant 72 : index
    %c0_76 = arith.constant 0 : index
    %284 = vector.load %arg8[%c72, %c0_76] : memref<128x512xf32, #tpu.memory_space<vmem>>, vector<8x512xf32>
    %c0_77 = arith.constant 0 : index
    %c0_78 = arith.constant 0 : index
    %285 = vector.load %arg3[%c0_77, %c0_78] : memref<128x512xf32, #tpu.memory_space<vmem>>, vector<128x512xf32>
    %cst_79 = arith.constant dense<0.000000e+00> : vector<8x512xf32>
    %286 = tpu.matmul %282, %285, %cst_79 {dimension_numbers = #tpu.dot_dimension_numbers<[1], [0], [0], [1], [0, 0, 1, 1], [], []>} : vector<8x128xf32>, vector<128x512xf32>, vector<8x512xf32> -> vector<8x512xf32>
    %287 = arith.addf %284, %286 : vector<8x512xf32>
    %288 = vector.extract_strided_slice %287 {offsets = [0, 0], sizes = [8, 128], strides = [1, 1]} : vector<8x512xf32> to vector<8x128xf32>
    %289 = arith.negf %288 : vector<8x128xf32>
    %290 = math.exp %289 : vector<8x128xf32>
    %cst_80 = arith.constant 1.000000e+00 : f32
    %291 = vector.broadcast %cst_80 : f32 to vector<8x128xf32>
    %292 = arith.addf %291, %290 : vector<8x128xf32>
    %293 = arith.divf %291, %292 : vector<8x128xf32>
    %294 = vector.extract_strided_slice %287 {offsets = [0, 128], sizes = [8, 128], strides = [1, 1]} : vector<8x512xf32> to vector<8x128xf32>
    %295 = arith.negf %294 : vector<8x128xf32>
    %296 = math.exp %295 : vector<8x128xf32>
    %cst_81 = arith.constant 1.000000e+00 : f32
    %297 = vector.broadcast %cst_81 : f32 to vector<8x128xf32>
    %298 = arith.addf %297, %296 : vector<8x128xf32>
    %299 = arith.divf %297, %298 : vector<8x128xf32>
    %300 = vector.extract_strided_slice %287 {offsets = [0, 256], sizes = [8, 128], strides = [1, 1]} : vector<8x512xf32> to vector<8x128xf32>
    %301 = math.tanh %300 : vector<8x128xf32>
    %302 = vector.extract_strided_slice %287 {offsets = [0, 384], sizes = [8, 128], strides = [1, 1]} : vector<8x512xf32> to vector<8x128xf32>
    %303 = arith.negf %302 : vector<8x128xf32>
    %304 = math.exp %303 : vector<8x128xf32>
    %cst_82 = arith.constant 1.000000e+00 : f32
    %305 = vector.broadcast %cst_82 : f32 to vector<8x128xf32>
    %306 = arith.addf %305, %304 : vector<8x128xf32>
    %307 = arith.divf %305, %306 : vector<8x128xf32>
    %308 = arith.mulf %299, %283 : vector<8x128xf32>
    %309 = arith.mulf %293, %301 : vector<8x128xf32>
    %310 = arith.addf %308, %309 : vector<8x128xf32>
    %311 = math.tanh %310 : vector<8x128xf32>
    %312 = arith.mulf %307, %311 : vector<8x128xf32>
    %313 = arith.ori %12, %17 : vector<8x128xi1>
    %314 = arith.select %313, %312, %282 : vector<8x128xi1>, vector<8x128xf32>
    %315 = arith.select %313, %310, %283 : vector<8x128xi1>, vector<8x128xf32>
    %c80 = arith.constant 80 : index
    %c0_83 = arith.constant 0 : index
    %316 = vector.load %arg8[%c80, %c0_83] : memref<128x512xf32, #tpu.memory_space<vmem>>, vector<8x512xf32>
    %c0_84 = arith.constant 0 : index
    %c0_85 = arith.constant 0 : index
    %317 = vector.load %arg3[%c0_84, %c0_85] : memref<128x512xf32, #tpu.memory_space<vmem>>, vector<128x512xf32>
    %cst_86 = arith.constant dense<0.000000e+00> : vector<8x512xf32>
    %318 = tpu.matmul %314, %317, %cst_86 {dimension_numbers = #tpu.dot_dimension_numbers<[1], [0], [0], [1], [0, 0, 1, 1], [], []>} : vector<8x128xf32>, vector<128x512xf32>, vector<8x512xf32> -> vector<8x512xf32>
    %319 = arith.addf %316, %318 : vector<8x512xf32>
    %320 = vector.extract_strided_slice %319 {offsets = [0, 0], sizes = [8, 128], strides = [1, 1]} : vector<8x512xf32> to vector<8x128xf32>
    %321 = arith.negf %320 : vector<8x128xf32>
    %322 = math.exp %321 : vector<8x128xf32>
    %cst_87 = arith.constant 1.000000e+00 : f32
    %323 = vector.broadcast %cst_87 : f32 to vector<8x128xf32>
    %324 = arith.addf %323, %322 : vector<8x128xf32>
    %325 = arith.divf %323, %324 : vector<8x128xf32>
    %326 = vector.extract_strided_slice %319 {offsets = [0, 128], sizes = [8, 128], strides = [1, 1]} : vector<8x512xf32> to vector<8x128xf32>
    %327 = arith.negf %326 : vector<8x128xf32>
    %328 = math.exp %327 : vector<8x128xf32>
    %cst_88 = arith.constant 1.000000e+00 : f32
    %329 = vector.broadcast %cst_88 : f32 to vector<8x128xf32>
    %330 = arith.addf %329, %328 : vector<8x128xf32>
    %331 = arith.divf %329, %330 : vector<8x128xf32>
    %332 = vector.extract_strided_slice %319 {offsets = [0, 256], sizes = [8, 128], strides = [1, 1]} : vector<8x512xf32> to vector<8x128xf32>
    %333 = math.tanh %332 : vector<8x128xf32>
    %334 = vector.extract_strided_slice %319 {offsets = [0, 384], sizes = [8, 128], strides = [1, 1]} : vector<8x512xf32> to vector<8x128xf32>
    %335 = arith.negf %334 : vector<8x128xf32>
    %336 = math.exp %335 : vector<8x128xf32>
    %cst_89 = arith.constant 1.000000e+00 : f32
    %337 = vector.broadcast %cst_89 : f32 to vector<8x128xf32>
    %338 = arith.addf %337, %336 : vector<8x128xf32>
    %339 = arith.divf %337, %338 : vector<8x128xf32>
    %340 = arith.mulf %331, %315 : vector<8x128xf32>
    %341 = arith.mulf %325, %333 : vector<8x128xf32>
    %342 = arith.addf %340, %341 : vector<8x128xf32>
    %343 = math.tanh %342 : vector<8x128xf32>
    %344 = arith.mulf %339, %343 : vector<8x128xf32>
    %345 = arith.ori %12, %17 : vector<8x128xi1>
    %346 = arith.select %345, %344, %314 : vector<8x128xi1>, vector<8x128xf32>
    %347 = arith.select %345, %342, %315 : vector<8x128xi1>, vector<8x128xf32>
    %c88 = arith.constant 88 : index
    %c0_90 = arith.constant 0 : index
    %348 = vector.load %arg8[%c88, %c0_90] : memref<128x512xf32, #tpu.memory_space<vmem>>, vector<8x512xf32>
    %c0_91 = arith.constant 0 : index
    %c0_92 = arith.constant 0 : index
    %349 = vector.load %arg3[%c0_91, %c0_92] : memref<128x512xf32, #tpu.memory_space<vmem>>, vector<128x512xf32>
    %cst_93 = arith.constant dense<0.000000e+00> : vector<8x512xf32>
    %350 = tpu.matmul %346, %349, %cst_93 {dimension_numbers = #tpu.dot_dimension_numbers<[1], [0], [0], [1], [0, 0, 1, 1], [], []>} : vector<8x128xf32>, vector<128x512xf32>, vector<8x512xf32> -> vector<8x512xf32>
    %351 = arith.addf %348, %350 : vector<8x512xf32>
    %352 = vector.extract_strided_slice %351 {offsets = [0, 0], sizes = [8, 128], strides = [1, 1]} : vector<8x512xf32> to vector<8x128xf32>
    %353 = arith.negf %352 : vector<8x128xf32>
    %354 = math.exp %353 : vector<8x128xf32>
    %cst_94 = arith.constant 1.000000e+00 : f32
    %355 = vector.broadcast %cst_94 : f32 to vector<8x128xf32>
    %356 = arith.addf %355, %354 : vector<8x128xf32>
    %357 = arith.divf %355, %356 : vector<8x128xf32>
    %358 = vector.extract_strided_slice %351 {offsets = [0, 128], sizes = [8, 128], strides = [1, 1]} : vector<8x512xf32> to vector<8x128xf32>
    %359 = arith.negf %358 : vector<8x128xf32>
    %360 = math.exp %359 : vector<8x128xf32>
    %cst_95 = arith.constant 1.000000e+00 : f32
    %361 = vector.broadcast %cst_95 : f32 to vector<8x128xf32>
    %362 = arith.addf %361, %360 : vector<8x128xf32>
    %363 = arith.divf %361, %362 : vector<8x128xf32>
    %364 = vector.extract_strided_slice %351 {offsets = [0, 256], sizes = [8, 128], strides = [1, 1]} : vector<8x512xf32> to vector<8x128xf32>
    %365 = math.tanh %364 : vector<8x128xf32>
    %366 = vector.extract_strided_slice %351 {offsets = [0, 384], sizes = [8, 128], strides = [1, 1]} : vector<8x512xf32> to vector<8x128xf32>
    %367 = arith.negf %366 : vector<8x128xf32>
    %368 = math.exp %367 : vector<8x128xf32>
    %cst_96 = arith.constant 1.000000e+00 : f32
    %369 = vector.broadcast %cst_96 : f32 to vector<8x128xf32>
    %370 = arith.addf %369, %368 : vector<8x128xf32>
    %371 = arith.divf %369, %370 : vector<8x128xf32>
    %372 = arith.mulf %363, %347 : vector<8x128xf32>
    %373 = arith.mulf %357, %365 : vector<8x128xf32>
    %374 = arith.addf %372, %373 : vector<8x128xf32>
    %375 = math.tanh %374 : vector<8x128xf32>
    %376 = arith.mulf %371, %375 : vector<8x128xf32>
    %377 = arith.ori %12, %17 : vector<8x128xi1>
    %378 = arith.select %377, %376, %346 : vector<8x128xi1>, vector<8x128xf32>
    %379 = arith.select %377, %374, %347 : vector<8x128xi1>, vector<8x128xf32>
    %c96 = arith.constant 96 : index
    %c0_97 = arith.constant 0 : index
    %380 = vector.load %arg8[%c96, %c0_97] : memref<128x512xf32, #tpu.memory_space<vmem>>, vector<8x512xf32>
    %c0_98 = arith.constant 0 : index
    %c0_99 = arith.constant 0 : index
    %381 = vector.load %arg3[%c0_98, %c0_99] : memref<128x512xf32, #tpu.memory_space<vmem>>, vector<128x512xf32>
    %cst_100 = arith.constant dense<0.000000e+00> : vector<8x512xf32>
    %382 = tpu.matmul %378, %381, %cst_100 {dimension_numbers = #tpu.dot_dimension_numbers<[1], [0], [0], [1], [0, 0, 1, 1], [], []>} : vector<8x128xf32>, vector<128x512xf32>, vector<8x512xf32> -> vector<8x512xf32>
    %383 = arith.addf %380, %382 : vector<8x512xf32>
    %384 = vector.extract_strided_slice %383 {offsets = [0, 0], sizes = [8, 128], strides = [1, 1]} : vector<8x512xf32> to vector<8x128xf32>
    %385 = arith.negf %384 : vector<8x128xf32>
    %386 = math.exp %385 : vector<8x128xf32>
    %cst_101 = arith.constant 1.000000e+00 : f32
    %387 = vector.broadcast %cst_101 : f32 to vector<8x128xf32>
    %388 = arith.addf %387, %386 : vector<8x128xf32>
    %389 = arith.divf %387, %388 : vector<8x128xf32>
    %390 = vector.extract_strided_slice %383 {offsets = [0, 128], sizes = [8, 128], strides = [1, 1]} : vector<8x512xf32> to vector<8x128xf32>
    %391 = arith.negf %390 : vector<8x128xf32>
    %392 = math.exp %391 : vector<8x128xf32>
    %cst_102 = arith.constant 1.000000e+00 : f32
    %393 = vector.broadcast %cst_102 : f32 to vector<8x128xf32>
    %394 = arith.addf %393, %392 : vector<8x128xf32>
    %395 = arith.divf %393, %394 : vector<8x128xf32>
    %396 = vector.extract_strided_slice %383 {offsets = [0, 256], sizes = [8, 128], strides = [1, 1]} : vector<8x512xf32> to vector<8x128xf32>
    %397 = math.tanh %396 : vector<8x128xf32>
    %398 = vector.extract_strided_slice %383 {offsets = [0, 384], sizes = [8, 128], strides = [1, 1]} : vector<8x512xf32> to vector<8x128xf32>
    %399 = arith.negf %398 : vector<8x128xf32>
    %400 = math.exp %399 : vector<8x128xf32>
    %cst_103 = arith.constant 1.000000e+00 : f32
    %401 = vector.broadcast %cst_103 : f32 to vector<8x128xf32>
    %402 = arith.addf %401, %400 : vector<8x128xf32>
    %403 = arith.divf %401, %402 : vector<8x128xf32>
    %404 = arith.mulf %395, %379 : vector<8x128xf32>
    %405 = arith.mulf %389, %397 : vector<8x128xf32>
    %406 = arith.addf %404, %405 : vector<8x128xf32>
    %407 = math.tanh %406 : vector<8x128xf32>
    %408 = arith.mulf %403, %407 : vector<8x128xf32>
    %409 = arith.ori %12, %17 : vector<8x128xi1>
    %410 = arith.select %409, %408, %378 : vector<8x128xi1>, vector<8x128xf32>
    %411 = arith.select %409, %406, %379 : vector<8x128xi1>, vector<8x128xf32>
    %c104 = arith.constant 104 : index
    %c0_104 = arith.constant 0 : index
    %412 = vector.load %arg8[%c104, %c0_104] : memref<128x512xf32, #tpu.memory_space<vmem>>, vector<8x512xf32>
    %c0_105 = arith.constant 0 : index
    %c0_106 = arith.constant 0 : index
    %413 = vector.load %arg3[%c0_105, %c0_106] : memref<128x512xf32, #tpu.memory_space<vmem>>, vector<128x512xf32>
    %cst_107 = arith.constant dense<0.000000e+00> : vector<8x512xf32>
    %414 = tpu.matmul %410, %413, %cst_107 {dimension_numbers = #tpu.dot_dimension_numbers<[1], [0], [0], [1], [0, 0, 1, 1], [], []>} : vector<8x128xf32>, vector<128x512xf32>, vector<8x512xf32> -> vector<8x512xf32>
    %415 = arith.addf %412, %414 : vector<8x512xf32>
    %416 = vector.extract_strided_slice %415 {offsets = [0, 0], sizes = [8, 128], strides = [1, 1]} : vector<8x512xf32> to vector<8x128xf32>
    %417 = arith.negf %416 : vector<8x128xf32>
    %418 = math.exp %417 : vector<8x128xf32>
    %cst_108 = arith.constant 1.000000e+00 : f32
    %419 = vector.broadcast %cst_108 : f32 to vector<8x128xf32>
    %420 = arith.addf %419, %418 : vector<8x128xf32>
    %421 = arith.divf %419, %420 : vector<8x128xf32>
    %422 = vector.extract_strided_slice %415 {offsets = [0, 128], sizes = [8, 128], strides = [1, 1]} : vector<8x512xf32> to vector<8x128xf32>
    %423 = arith.negf %422 : vector<8x128xf32>
    %424 = math.exp %423 : vector<8x128xf32>
    %cst_109 = arith.constant 1.000000e+00 : f32
    %425 = vector.broadcast %cst_109 : f32 to vector<8x128xf32>
    %426 = arith.addf %425, %424 : vector<8x128xf32>
    %427 = arith.divf %425, %426 : vector<8x128xf32>
    %428 = vector.extract_strided_slice %415 {offsets = [0, 256], sizes = [8, 128], strides = [1, 1]} : vector<8x512xf32> to vector<8x128xf32>
    %429 = math.tanh %428 : vector<8x128xf32>
    %430 = vector.extract_strided_slice %415 {offsets = [0, 384], sizes = [8, 128], strides = [1, 1]} : vector<8x512xf32> to vector<8x128xf32>
    %431 = arith.negf %430 : vector<8x128xf32>
    %432 = math.exp %431 : vector<8x128xf32>
    %cst_110 = arith.constant 1.000000e+00 : f32
    %433 = vector.broadcast %cst_110 : f32 to vector<8x128xf32>
    %434 = arith.addf %433, %432 : vector<8x128xf32>
    %435 = arith.divf %433, %434 : vector<8x128xf32>
    %436 = arith.mulf %427, %411 : vector<8x128xf32>
    %437 = arith.mulf %421, %429 : vector<8x128xf32>
    %438 = arith.addf %436, %437 : vector<8x128xf32>
    %439 = math.tanh %438 : vector<8x128xf32>
    %440 = arith.mulf %435, %439 : vector<8x128xf32>
    %441 = arith.ori %12, %17 : vector<8x128xi1>
    %442 = arith.select %441, %440, %410 : vector<8x128xi1>, vector<8x128xf32>
    %443 = arith.select %441, %438, %411 : vector<8x128xi1>, vector<8x128xf32>
    %c112 = arith.constant 112 : index
    %c0_111 = arith.constant 0 : index
    %444 = vector.load %arg8[%c112, %c0_111] : memref<128x512xf32, #tpu.memory_space<vmem>>, vector<8x512xf32>
    %c0_112 = arith.constant 0 : index
    %c0_113 = arith.constant 0 : index
    %445 = vector.load %arg3[%c0_112, %c0_113] : memref<128x512xf32, #tpu.memory_space<vmem>>, vector<128x512xf32>
    %cst_114 = arith.constant dense<0.000000e+00> : vector<8x512xf32>
    %446 = tpu.matmul %442, %445, %cst_114 {dimension_numbers = #tpu.dot_dimension_numbers<[1], [0], [0], [1], [0, 0, 1, 1], [], []>} : vector<8x128xf32>, vector<128x512xf32>, vector<8x512xf32> -> vector<8x512xf32>
    %447 = arith.addf %444, %446 : vector<8x512xf32>
    %448 = vector.extract_strided_slice %447 {offsets = [0, 0], sizes = [8, 128], strides = [1, 1]} : vector<8x512xf32> to vector<8x128xf32>
    %449 = arith.negf %448 : vector<8x128xf32>
    %450 = math.exp %449 : vector<8x128xf32>
    %cst_115 = arith.constant 1.000000e+00 : f32
    %451 = vector.broadcast %cst_115 : f32 to vector<8x128xf32>
    %452 = arith.addf %451, %450 : vector<8x128xf32>
    %453 = arith.divf %451, %452 : vector<8x128xf32>
    %454 = vector.extract_strided_slice %447 {offsets = [0, 128], sizes = [8, 128], strides = [1, 1]} : vector<8x512xf32> to vector<8x128xf32>
    %455 = arith.negf %454 : vector<8x128xf32>
    %456 = math.exp %455 : vector<8x128xf32>
    %cst_116 = arith.constant 1.000000e+00 : f32
    %457 = vector.broadcast %cst_116 : f32 to vector<8x128xf32>
    %458 = arith.addf %457, %456 : vector<8x128xf32>
    %459 = arith.divf %457, %458 : vector<8x128xf32>
    %460 = vector.extract_strided_slice %447 {offsets = [0, 256], sizes = [8, 128], strides = [1, 1]} : vector<8x512xf32> to vector<8x128xf32>
    %461 = math.tanh %460 : vector<8x128xf32>
    %462 = vector.extract_strided_slice %447 {offsets = [0, 384], sizes = [8, 128], strides = [1, 1]} : vector<8x512xf32> to vector<8x128xf32>
    %463 = arith.negf %462 : vector<8x128xf32>
    %464 = math.exp %463 : vector<8x128xf32>
    %cst_117 = arith.constant 1.000000e+00 : f32
    %465 = vector.broadcast %cst_117 : f32 to vector<8x128xf32>
    %466 = arith.addf %465, %464 : vector<8x128xf32>
    %467 = arith.divf %465, %466 : vector<8x128xf32>
    %468 = arith.mulf %459, %443 : vector<8x128xf32>
    %469 = arith.mulf %453, %461 : vector<8x128xf32>
    %470 = arith.addf %468, %469 : vector<8x128xf32>
    %471 = math.tanh %470 : vector<8x128xf32>
    %472 = arith.mulf %467, %471 : vector<8x128xf32>
    %473 = arith.ori %12, %17 : vector<8x128xi1>
    %474 = arith.select %473, %472, %442 : vector<8x128xi1>, vector<8x128xf32>
    %475 = arith.select %473, %470, %443 : vector<8x128xi1>, vector<8x128xf32>
    %c120 = arith.constant 120 : index
    %c0_118 = arith.constant 0 : index
    %476 = vector.load %arg8[%c120, %c0_118] : memref<128x512xf32, #tpu.memory_space<vmem>>, vector<8x512xf32>
    %c0_119 = arith.constant 0 : index
    %c0_120 = arith.constant 0 : index
    %477 = vector.load %arg3[%c0_119, %c0_120] : memref<128x512xf32, #tpu.memory_space<vmem>>, vector<128x512xf32>
    %cst_121 = arith.constant dense<0.000000e+00> : vector<8x512xf32>
    %478 = tpu.matmul %474, %477, %cst_121 {dimension_numbers = #tpu.dot_dimension_numbers<[1], [0], [0], [1], [0, 0, 1, 1], [], []>} : vector<8x128xf32>, vector<128x512xf32>, vector<8x512xf32> -> vector<8x512xf32>
    %479 = arith.addf %476, %478 : vector<8x512xf32>
    %480 = vector.extract_strided_slice %479 {offsets = [0, 0], sizes = [8, 128], strides = [1, 1]} : vector<8x512xf32> to vector<8x128xf32>
    %481 = arith.negf %480 : vector<8x128xf32>
    %482 = math.exp %481 : vector<8x128xf32>
    %cst_122 = arith.constant 1.000000e+00 : f32
    %483 = vector.broadcast %cst_122 : f32 to vector<8x128xf32>
    %484 = arith.addf %483, %482 : vector<8x128xf32>
    %485 = arith.divf %483, %484 : vector<8x128xf32>
    %486 = vector.extract_strided_slice %479 {offsets = [0, 128], sizes = [8, 128], strides = [1, 1]} : vector<8x512xf32> to vector<8x128xf32>
    %487 = arith.negf %486 : vector<8x128xf32>
    %488 = math.exp %487 : vector<8x128xf32>
    %cst_123 = arith.constant 1.000000e+00 : f32
    %489 = vector.broadcast %cst_123 : f32 to vector<8x128xf32>
    %490 = arith.addf %489, %488 : vector<8x128xf32>
    %491 = arith.divf %489, %490 : vector<8x128xf32>
    %492 = vector.extract_strided_slice %479 {offsets = [0, 256], sizes = [8, 128], strides = [1, 1]} : vector<8x512xf32> to vector<8x128xf32>
    %493 = math.tanh %492 : vector<8x128xf32>
    %494 = vector.extract_strided_slice %479 {offsets = [0, 384], sizes = [8, 128], strides = [1, 1]} : vector<8x512xf32> to vector<8x128xf32>
    %495 = arith.negf %494 : vector<8x128xf32>
    %496 = math.exp %495 : vector<8x128xf32>
    %cst_124 = arith.constant 1.000000e+00 : f32
    %497 = vector.broadcast %cst_124 : f32 to vector<8x128xf32>
    %498 = arith.addf %497, %496 : vector<8x128xf32>
    %499 = arith.divf %497, %498 : vector<8x128xf32>
    %500 = arith.mulf %491, %475 : vector<8x128xf32>
    %501 = arith.mulf %485, %493 : vector<8x128xf32>
    %502 = arith.addf %500, %501 : vector<8x128xf32>
    %503 = math.tanh %502 : vector<8x128xf32>
    %504 = arith.mulf %499, %503 : vector<8x128xf32>
    %505 = arith.ori %12, %17 : vector<8x128xi1>
    %506 = arith.select %505, %504, %474 : vector<8x128xi1>, vector<8x128xf32>
    %c0_125 = arith.constant 0 : index
    %c0_126 = arith.constant 0 : index
    %507 = vector.load %arg7[%c0_125, %c0_126] : memref<8x128xf32, #tpu.memory_space<vmem>>, vector<8x128xf32>
    tpu.vector_store %arg7[%c0_125, %c0_126], %506 {strides = array<i32>} : memref<8x128xf32, #tpu.memory_space<vmem>>, vector<8x128xf32>,
    return
  }
  func.func @transform_0(%arg0: i32) -> (i32, i32) {
    %c0_i32 = arith.constant 0 : i32
    %c0_i32_0 = arith.constant 0 : i32
    return %arg0, %c0_i32 : i32, i32
  }
  func.func @transform_1(%arg0: i32) -> (i32, i32) {
    %c0_i32 = arith.constant 0 : i32
    %c0_i32_0 = arith.constant 0 : i32
    %c0_i32_1 = arith.constant 0 : i32
    return %c0_i32, %c0_i32_0 : i32, i32
  }
  func.func @transform_2(%arg0: i32) -> (i32, i32) {
    %c0_i32 = arith.constant 0 : i32
    %c0_i32_0 = arith.constant 0 : i32
    %c0_i32_1 = arith.constant 0 : i32
    return %c0_i32, %c0_i32_0 : i32, i32
  }
  func.func @transform_3(%arg0: i32) -> (i32, i32) {
    %c0_i32 = arith.constant 0 : i32
    %c0_i32_0 = arith.constant 0 : i32
    %c0_i32_1 = arith.constant 0 : i32
    return %c0_i32, %c0_i32_0 : i32, i32
  }
  func.func @transform_4(%arg0: i32) -> (i32, i32) {
    %c0_i32 = arith.constant 0 : i32
    %c0_i32_0 = arith.constant 0 : i32
    return %arg0, %c0_i32 : i32, i32
  }
  func.func @transform_5(%arg0: i32) -> (i32, i32) {
    %c0_i32 = arith.constant 0 : i32
    %c0_i32_0 = arith.constant 0 : i32
    return %arg0, %c0_i32 : i32, i32
  }
  func.func @transform_6(%arg0: i32) -> (i32, i32) {
    %c0_i32 = arith.constant 0 : i32
    %c0_i32_0 = arith.constant 0 : i32
    return %arg0, %c0_i32 : i32, i32
  }
}

</mosaic_0001>

<bundles_post_ra>
// kernel: atlocplus_forward.1
= control target key start
LH: loop header
LB: loop body
LE: loop exit
PB: predicated region body
PF: predicated region fallthrough
CT: control target
= control target key end

     0   :  { %v4912_v3 = vmov 0.0   ;;  %vm85_vm0 = vcmask 392192   ;;  %s6127_s1 = inlined_call_operand.vmem [shape: f32[48,512], index: 1, kind: input, shape index: {}]   ;;  %s6128_s2 = inlined_call_operand.vmem [shape: f32[128,512], index: 2, kind: input, shape index: {}]   ;;  %s6129_s0 = inlined_call_operand.vmem [shape: f32[128,48], index: 0, kind: input, shape index: {}]   ;;  %s6130_s4 = inlined_call_operand.vmem [shape: f32[8,128], index: 4, kind: input, shape index: {}]   ;;  %s6131_s3 = inlined_call_operand.vmem [shape: f32[1,512], index: 3, kind: input, shape index: {}]   ;;  %s6132_s5 = inlined_call_operand.vmem [shape: f32[8,128], index: 5, kind: input, shape index: {}]   ;;  %s6133_s6 = inlined_call_operand.vmem [shape: f32[8,128], index: 6, kind: output, shape index: {}]  }
   0x1   :  { %v40_v0 = vld [vmem:[%s6127_s1 + $0x8] sm:$0xff]  ;;  %v42_v2 = vld [vmem:[%s6127_s1 + $0x18] sm:$0xff]  ;;  %198 = vmatprep.mubr.f32.mxu0 %v4912_v3  ;;  %359 = vmatprep.mubr.f32.mxu1 %v4912_v3  ;;  %v39_v6 = vld [vmem:[%s6127_s1] sm:$0xff] }
   0x2   :  { %v44_v1 = vld [vmem:[%s6127_s1 + $0x28] sm:$0xff]  ;;  %v46_v5 = vld [vmem:[%s6127_s1 + $0x38] sm:$0xff]  ;;  %v43_v7 = vld [vmem:[%s6127_s1 + $0x20] sm:$0xff] }
   0x3   :  { %v3479_v4 = vpack.c.bf16 %v44_v1, %v40_v0  ;;  %v3491_v8 = vpack.c.bf16 %v46_v5, %v42_v2  ;;  %v3481_v9 = vpack.c.bf16 %v43_v7, %v39_v6  ;;  %v41_v10 = vld [vmem:[%s6127_s1 + $0x10] sm:$0xff]  ;;  %v48_v12 = vld [vmem:[%s6127_s1 + $0x48] sm:$0xff]  ;;  %v50_v15 = vld [vmem:[%s6127_s1 + $0x58] sm:$0xff] }
   0x4   :  { %v45_v11 = vld [vmem:[%s6127_s1 + $0x30] sm:$0xff]  ;;  %v52_v14 = vld [vmem:[%s6127_s1 + $0x68] sm:$0xff]  ;;  %v54_v16 = vld [vmem:[%s6127_s1 + $0x78] sm:$0xff] }
   0x5   :  { %3480 = vmatprep.subr.bf16.mxu0 %v3479_v4  ;;  %v3493_v13 = vpack.c.bf16 %v45_v11, %v41_v10  ;;  %3492 = vmatprep.subr.bf16.mxu1 %v3491_v8  ;;  %v3483_v17 = vpack.c.bf16 %v52_v14, %v48_v12  ;;  %v3495_v18 = vpack.c.bf16 %v54_v16, %v50_v15  ;;  %v47_v19 = vld [vmem:[%s6127_s1 + $0x40] sm:$0xff]  ;;  %v49_v21 = vld [vmem:[%s6127_s1 + $0x50] sm:$0xff]  ;;  %v56_v24 = vld [vmem:[%s6127_s1 + $0x88] sm:$0xff] }
   0x6   :  { %3482 = vmatpush1.bf16.msra.mxu0 %v3481_v9  ;;  %v51_v20 = vld [vmem:[%s6127_s1 + $0x60] sm:$0xff]  ;;  %v53_v23 = vld [vmem:[%s6127_s1 + $0x70] sm:$0xff]  ;;  %v60_v25 = vld [vmem:[%s6127_s1 + $0xa8] sm:$0xff] }
   0x7   :  { %3494 = vmatpush1.bf16.msra.mxu1 %v3493_v13  ;;  %v3485_v22 = vpack.c.bf16 %v51_v20, %v47_v19  ;;  %3484 = vmatprep.subr.bf16.mxu0 %v3483_v17  ;;  %v3497_v26 = vpack.c.bf16 %v53_v23, %v49_v21  ;;  %v3487_v27 = vpack.c.bf16 %v60_v25, %v56_v24  ;;  %v58_v28 = vld [vmem:[%s6127_s1 + $0x98] sm:$0xff]  ;;  %v55_v30 = vld [vmem:[%s6127_s1 + $0x80] sm:$0xff]  ;;  %v57_v33 = vld [vmem:[%s6127_s1 + $0x90] sm:$0xff] }
   0x8   :  { %3496 = vmatprep.subr.bf16.mxu1 %v3495_v18  ;;  %v62_v29 = vld [vmem:[%s6127_s1 + $0xb8] sm:$0xff]  ;;  %v59_v32 = vld [vmem:[%s6127_s1 + $0xa0] sm:$0xff]  ;;  %v61_v34 = vld [vmem:[%s6127_s1 + $0xb0] sm:$0xff] }
   0x9   :  { %v3499_v31 = vpack.c.bf16 %v62_v29, %v58_v28  ;;  %v3489_v35 = vpack.c.bf16 %v59_v32, %v55_v30  ;;  %v535_v36 = vld [vmem:[%s6128_s2 + $0x8] sm:$0xff]  ;;  %v3501_v38 = vpack.c.bf16 %v61_v34, %v57_v33  ;;  %v534_v40 = vld [vmem:[%s6128_s2] sm:$0xff]  ;;  %v537_v46 = vld [vmem:[%s6128_s2 + $0x18] sm:$0xff] }
   0xa   :  { %3486 = vmatpush1.bf16.msra.mxu0 %v3485_v22  ;;  %v539_v37 = vld [vmem:[%s6128_s2 + $0x28] sm:$0xff]  ;;  %v538_v41 = vld [vmem:[%s6128_s2 + $0x20] sm:$0xff]  ;;  %v541_v47 = vld [vmem:[%s6128_s2 + $0x38] sm:$0xff] }
   0xb   :  { %3498 = vmatpush1.bf16.msra.mxu1 %v3497_v26  ;;  %3488 = vmatprep.subr.bf16.mxu0 %v3487_v27  ;;  %v5028_v39 = vpack.c.bf16 %v539_v37, %v535_v36  ;;  %v543_v42 = vld [vmem:[%s6128_s2 + $0x48] sm:$0xff]  ;;  %v23_v44 = vld [vmem:[%s6129_s0] sm:$0xff]  ;;  %v5045_v45 = vpack.c.bf16 %v538_v41, %v534_v40  ;;  %v5057_v49 = vpack.c.bf16 %v541_v47, %v537_v46  ;;  %v536_v50 = vld [vmem:[%s6128_s2 + $0x10] sm:$0xff] }
   0xc   :  { %3500 = vmatprep.subr.bf16.mxu1 %v3499_v31  ;;  %v547_v43 = vld [vmem:[%s6128_s2 + $0x68] sm:$0xff]  ;;  %v542_v48 = vld [vmem:[%s6128_s2 + $0x40] sm:$0xff]  ;;  %v540_v54 = vld [vmem:[%s6128_s2 + $0x30] sm:$0xff] }
   0xd   :  { %v5062_v51 = vpack.c.bf16 %v547_v43, %v543_v42  ;;  %v546_v52 = vld [vmem:[%s6128_s2 + $0x60] sm:$0xff]  ;;  %v551_v53 = vld [vmem:[%s6128_s2 + $0x88] sm:$0xff]  ;;  %v5078_v56 = vpack.c.bf16 %v540_v54, %v536_v50  ;;  %v545_v57 = vld [vmem:[%s6128_s2 + $0x58] sm:$0xff] }
   0xe   :  { %3490 = vmatpush1.bf16.msra.mxu0 %v3489_v35  ;;  %v555_v55 = vld [vmem:[%s6128_s2 + $0xa8] sm:$0xff]  ;;  %v549_v58 = vld [vmem:[%s6128_s2 + $0x78] sm:$0xff]  ;;  %v5095_v61 = vpack.c.bf16 %v546_v52, %v542_v48  ;;  %v544_v62 = vld [vmem:[%s6128_s2 + $0x50] sm:$0xff] }
   0xf   :  { %3502 = vmatpush1.bf16.msra.mxu1 %v3501_v38  ;;  %3504 = vmatprep.subr.bf16.mxu0 %v5028_v39  ;;  %v24_v59 = vld [vmem:[%s6129_s0 + $0x8] sm:$0xff]  ;;  %v5091_v60 = vpack.c.bf16 %v549_v58, %v545_v57  ;;  %v548_v63 = vld [vmem:[%s6128_s2 + $0x70] sm:$0xff]  ;;  %v5104_v0 = vpack.c.bf16 %v555_v55, %v551_v53  ;;  %v550_v1 = vld [vmem:[%s6128_s2 + $0x80] sm:$0xff] }
  0x10   :  { %3536 = vmatprep.subr.bf16.mxu1 %v5057_v49  ;;  %v554_v2 = vld [vmem:[%s6128_s2 + $0xa0] sm:$0xff]  ;;  %v5113_v4 = vpack.c.bf16 %v548_v63, %v544_v62  ;;  %v553_v5 = vld [vmem:[%s6128_s2 + $0x98] sm:$0xff]  ;;  %v559_v6 = vld [vmem:[%s6128_s2 + $0xc8] sm:$0xff] }
  0x11   :  { %3399 = vmatmul.mubr.msk.f32.vlgmr.msra.gmra.mrb[0].mxu0 %vm85_vm0, %v23_v44  ;;  %v563_v7 = vld [vmem:[%s6128_s2 + $0xe8] sm:$0xff]  ;;  %v557_v8 = vld [vmem:[%s6128_s2 + $0xb8] sm:$0xff]  ;;  %v25_v9 = vld [vmem:[%s6129_s0 + $0x10] sm:$0xff]  ;;  %v5144_v13 = vpack.c.bf16 %v554_v2, %v550_v1 }
  0x12   :  { %3415 = vmatmul.mubr.msk.f32.vlgmr.msra.gmra.mrb[0].mxu1 %vm85_vm0, %v23_v44  ;;  %3506 = vmatpush1.bf16.msra.mxu0 %v5045_v45  ;;  %v5134_v10 = vpack.c.bf16 %v557_v8, %v553_v5  ;;  %v552_v11 = vld [vmem:[%s6128_s2 + $0x90] sm:$0xff]  ;;  %v558_v14 = vld [vmem:[%s6128_s2 + $0xc0] sm:$0xff]  ;;  %v5150_v15 = vpack.c.bf16 %v563_v7, %v559_v6  ;;  %v561_v18 = vld [vmem:[%s6128_s2 + $0xd8] sm:$0xff] }
  0x13   :  { %204 = vmatprep.mubr.f32.mxu0 %v4912_v3  ;;  %365 = vmatprep.mubr.f32.mxu1 %v4912_v3  ;;  %v556_v12 = vld [vmem:[%s6128_s2 + $0xb0] sm:$0xff]  ;;  %v562_v16 = vld [vmem:[%s6128_s2 + $0xe0] sm:$0xff]  ;;  %v565_v19 = vld [vmem:[%s6128_s2 + $0xf8] sm:$0xff] }
  0x14   :  { %3508 = vmatprep.subr.bf16.mxu0 %v5062_v51  ;;  %3538 = vmatpush1.bf16.msra.mxu1 %v5078_v56  ;;  %v5156_v17 = vpack.c.bf16 %v556_v12, %v552_v11  ;;  %v567_v20 = vld [vmem:[%s6128_s2 + $0x108] sm:$0xff]  ;;  %v5172_v22 = vpack.c.bf16 %v565_v19, %v561_v18  ;;  %v560_v23 = vld [vmem:[%s6128_s2 + $0xd0] sm:$0xff]  ;;  %v26_v24 = vld [vmem:[%s6129_s0 + $0x18] sm:$0xff]  ;;  %v5187_v26 = vpack.c.bf16 %v562_v16, %v558_v14 }
  0x15   :  { %3400 = vmatmul.mubr.msk.f32.gmra.mrb[2].mxu0 %vm85_vm0, %v24_v59  ;;  %3540 = vmatprep.subr.bf16.mxu1 %v5091_v60  ;;  %v571_v21 = vld [vmem:[%s6128_s2 + $0x128] sm:$0xff]  ;;  %v564_v25 = vld [vmem:[%s6128_s2 + $0xf0] sm:$0xff]  ;;  %v569_v27 = vld [vmem:[%s6128_s2 + $0x118] sm:$0xff] }
  0x16   :  { %3416 = vmatmul.mubr.msk.f32.gmra.mrb[2].mxu1 %vm85_vm0, %v24_v59  ;;  %210 = vmatprep.mubr.f32.mxu0 %v4912_v3  ;;  %v573_v28 = vld [vmem:[%s6128_s2 + $0x138] sm:$0xff]  ;;  %v5196_v29 = vpack.c.bf16 %v571_v21, %v567_v20  ;;  %v566_v30 = vld [vmem:[%s6128_s2 + $0x100] sm:$0xff]  ;;  %v575_v32 = vld [vmem:[%s6128_s2 + $0x148] sm:$0xff]  ;;  %v5208_v33 = vpack.c.bf16 %v564_v25, %v560_v23 }
  0x17   :  { %371 = vmatprep.mubr.f32.mxu1 %v4912_v3  ;;  %3510 = vmatpush1.bf16.msra.mxu0 %v5095_v61  ;;  %v570_v31 = vld [vmem:[%s6128_s2 + $0x120] sm:$0xff]  ;;  %v579_v34 = vld [vmem:[%s6128_s2 + $0x168] sm:$0xff]  ;;  %v5215_v35 = vpack.c.bf16 %v573_v28, %v569_v27  ;;  %v568_v36 = vld [vmem:[%s6128_s2 + $0x110] sm:$0xff] }
  0x18   :  { %3512 = vmatprep.subr.bf16.mxu0 %v5104_v0  ;;  %3542 = vmatpush1.bf16.msra.mxu1 %v5113_v4  ;;  %v572_v37 = vld [vmem:[%s6128_s2 + $0x130] sm:$0xff]  ;;  %v27_v38 = vld [vmem:[%s6129_s0 + $0x20] sm:$0xff]  ;;  %v577_v40 = vld [vmem:[%s6128_s2 + $0x158] sm:$0xff]  ;;  %v5233_v41 = vpack.c.bf16 %v570_v31, %v566_v30  ;;  %v5239_v43 = vpack.c.bf16 %v579_v34, %v575_v32 }
  0x19   :  { %3401 = vmatmul.mubr.msk.f32.gmra.mrb[4].mxu0 %vm85_vm0, %v25_v9  ;;  %3544 = vmatprep.subr.bf16.mxu1 %v5134_v10  ;;  %v581_v42 = vld [vmem:[%s6128_s2 + $0x178] sm:$0xff]  ;;  %v574_v44 = vld [vmem:[%s6128_s2 + $0x140] sm:$0xff]  ;;  %v583_v47 = vld [vmem:[%s6128_s2 + $0x188] sm:$0xff]  ;;  %v5251_v48 = vpack.c.bf16 %v572_v37, %v568_v36 }
  0x1a   :  { %3417 = vmatmul.mubr.msk.f32.gmra.mrb[4].mxu1 %vm85_vm0, %v25_v9  ;;  %216 = vmatprep.mubr.f32.mxu0 %v4912_v3  ;;  %v578_v46 = vld [vmem:[%s6128_s2 + $0x160] sm:$0xff]  ;;  %v587_v50 = vld [vmem:[%s6128_s2 + $0x1a8] sm:$0xff]  ;;  %v5258_v52 = vpack.c.bf16 %v581_v42, %v577_v40  ;;  %v576_v53 = vld [vmem:[%s6128_s2 + $0x150] sm:$0xff] }
  0x1b   :  { %377 = vmatprep.mubr.f32.mxu1 %v4912_v3  ;;  %3514 = vmatpush1.bf16.msra.mxu0 %v5144_v13  ;;  %v580_v54 = vld [vmem:[%s6128_s2 + $0x170] sm:$0xff]  ;;  %v28_v55 = vld [vmem:[%s6129_s0 + $0x28] sm:$0xff]  ;;  %v585_v57 = vld [vmem:[%s6128_s2 + $0x198] sm:$0xff]  ;;  %v5279_v59 = vpack.c.bf16 %v578_v46, %v574_v44  ;;  %v5282_v62 = vpack.c.bf16 %v587_v50, %v583_v47  ;;  %v65_v46 = vlaneseq }
  0x1c   :  { %3516 = vmatprep.subr.bf16.mxu0 %v5150_v15  ;;  %3546 = vmatpush1.bf16.msra.mxu1 %v5156_v17  ;;  %v589_v58 = vld [vmem:[%s6128_s2 + $0x1b8] sm:$0xff]  ;;  %v582_v63 = vld [vmem:[%s6128_s2 + $0x180] sm:$0xff]  ;;  %v5291_v2 = vpack.c.bf16 %v580_v54, %v576_v53  ;;  %v591_v5 = vld [vmem:[%s6128_s2 + $0x1c8] sm:$0xff] }
  0x1d   :  { %3402 = vmatmul.mubr.msk.f32.gmra.mrb[6].mxu0 %vm85_vm0, %v26_v24  ;;  %3548 = vmatprep.subr.bf16.mxu1 %v5172_v22  ;;  %v586_v1 = vld [vmem:[%s6128_s2 + $0x1a0] sm:$0xff]  ;;  %v595_v6 = vld [vmem:[%s6128_s2 + $0x1e8] sm:$0xff]  ;;  %v5301_v7 = vpack.c.bf16 %v589_v58, %v585_v57  ;;  %v584_v8 = vld [vmem:[%s6128_s2 + $0x190] sm:$0xff]  ;;  %v66_v47 = vshrl.u32 %v65_v46, 7 }
  0x1e   :  { %3418 = vmatmul.mubr.msk.f32.gmra.mrb[6].mxu1 %vm85_vm0, %v26_v24  ;;  %222 = vmatprep.mubr.f32.mxu0 %v4912_v3  ;;  %v588_v9 = vld [vmem:[%s6128_s2 + $0x1b0] sm:$0xff]  ;;  %v593_v12 = vld [vmem:[%s6128_s2 + $0x1d8] sm:$0xff]  ;;  %v5322_v16 = vpack.c.bf16 %v586_v1, %v582_v63  ;;  %v5326_v18 = vpack.c.bf16 %v595_v6, %v591_v5  ;;  %v590_v19 = vld [vmem:[%s6128_s2 + $0x1c0] sm:$0xff] }
  0x1f   :  { %383 = vmatprep.mubr.f32.mxu1 %v4912_v3  ;;  %3518 = vmatpush1.bf16.msra.mxu0 %v5187_v26  ;;  %v29_v11 = vld [vmem:[%s6129_s0 + $0x30] sm:$0xff]  ;;  %v597_v14 = vld [vmem:[%s6128_s2 + $0x1f8] sm:$0xff]  ;;  %v594_v20 = vld [vmem:[%s6128_s2 + $0x1e0] sm:$0xff]  ;;  %v5334_v21 = vpack.c.bf16 %v588_v9, %v584_v8  ;;  %v67_v50 = vsub.s32 0, %v66_v47  ;;  %v71_v54 = vsub.s32 1, %v66_v47  ;;  %v79_v63 = vsub.s32 3, %v66_v47 }
  0x20   :  { %3520 = vmatprep.subr.bf16.mxu0 %v5196_v29  ;;  %3550 = vmatpush1.bf16.msra.mxu1 %v5208_v33  ;;  %v5338_v23 = vpack.c.bf16 %v597_v14, %v593_v12  ;;  %v592_v24 = vld [vmem:[%s6128_s2 + $0x1d0] sm:$0xff]  ;;  %v30_v27 = vld [vmem:[%s6129_s0 + $0x38] sm:$0xff]  ;;  %v5353_v28 = vpack.c.bf16 %v594_v20, %v590_v19  ;;  %v31_v31 = vld [vmem:[%s6129_s0 + $0x40] sm:$0xff]  ;;  %v75_v19 = vsub.s32 2, %v66_v47 }
  0x21   :  { %3403 = vmatmul.mubr.msk.f32.gmra.mrb[8].mxu0 %vm85_vm0, %v27_v38  ;;  %3552 = vmatprep.subr.bf16.mxu1 %v5215_v35  ;;  %v596_v25 = vld [vmem:[%s6128_s2 + $0x1f0] sm:$0xff]  ;;  %v32_v32 = vld [vmem:[%s6129_s0 + $0x48] sm:$0xff]  ;;  %v34_v36 = vld [vmem:[%s6129_s0 + $0x58] sm:$0xff] }
  0x22   :  { %3419 = vmatmul.mubr.msk.f32.gmra.mrb[8].mxu1 %vm85_vm0, %v27_v38  ;;  %228 = vmatprep.mubr.f32.mxu0 %v4912_v3  ;;  %v5357_v30 = vpack.c.bf16 %v596_v25, %v592_v24  ;;  %v33_v34 = vld [vmem:[%s6129_s0 + $0x50] sm:$0xff]  ;;  %v35_v37 = vld [vmem:[%s6129_s0 + $0x60] sm:$0xff]  ;;  %v36_v38 = vld [vmem:[%s6129_s0 + $0x68] sm:$0xff] }
  0x23   :  { %389 = vmatprep.mubr.f32.mxu1 %v4912_v3  ;;  %3522 = vmatpush1.bf16.msra.mxu0 %v5233_v41  ;;  %v37_v40 = vld [vmem:[%s6129_s0 + $0x70] sm:$0xff]  ;;  %v38_v42 = vld [vmem:[%s6129_s0 + $0x78] sm:$0xff]  ;;  %v528_v44 = vld [vmem:[%s6130_s4] sm:$0xff] }
  0x24   :  { %3524 = vmatprep.subr.bf16.mxu0 %v5239_v43  ;;  %3554 = vmatpush1.bf16.msra.mxu1 %v5251_v48  ;;  %v63_v53 = vld [vmem:[%s6131_s3] sm:$0xf] }
  0x25   :  { %3404 = vmatmul.mubr.msk.f32.gmra.mrb[10].mxu0 %vm85_vm0, %v28_v55  ;;  %3556 = vmatprep.subr.bf16.mxu1 %v5258_v52  ;;  %v5467_v57 = vrot.slane %v63_v53, %v71_v54  ;;  %v5471_v14 = vrot.slane %v63_v53, %v79_v63  ;;  %v5474_v24 = vrot.slane %v63_v53, %v75_v19 }
  0x26   :  { %3420 = vmatmul.mubr.msk.f32.gmra.mrb[10].mxu1 %vm85_vm0, %v28_v55  ;;  %234 = vmatprep.mubr.f32.mxu0 %v4912_v3  ;;  %v5465_v55 = vrot.slane %v63_v53, %v67_v50 }
  0x27   :  { %395 = vmatprep.mubr.f32.mxu1 %v4912_v3  ;;  %3526 = vmatpush1.bf16.msra.mxu0 %v5279_v59 }
  0x28   :  { %3528 = vmatprep.subr.bf16.mxu0 %v5282_v62  ;;  %3558 = vmatpush1.bf16.msra.mxu1 %v5291_v2 }
  0x29   :  { %3405 = vmatmul.mubr.msk.f32.gmra.mrb[12].mxu0 %vm85_vm0, %v29_v11  ;;  %3560 = vmatprep.subr.bf16.mxu1 %v5301_v7 }
  0x2a   :  { %3421 = vmatmul.mubr.msk.f32.gmra.mrb[12].mxu1 %vm85_vm0, %v29_v11  ;;  %240 = vmatprep.mubr.f32.mxu0 %v4912_v3 }
  0x2b   :  { %401 = vmatprep.mubr.f32.mxu1 %v4912_v3  ;;  %3530 = vmatpush1.bf16.msra.mxu0 %v5322_v16 }
  0x2c   :  { %3532 = vmatprep.subr.bf16.mxu0 %v5326_v18  ;;  %3562 = vmatpush1.bf16.msra.mxu1 %v5334_v21 }
  0x2d   :  { %3406 = vmatmul.mubr.msk.f32.gmra.mrb[14].mxu0 %vm85_vm0, %v30_v27  ;;  %3564 = vmatprep.subr.bf16.mxu1 %v5338_v23 }
  0x2e   :  { %3422 = vmatmul.mubr.msk.f32.gmra.mrb[14].mxu1 %vm85_vm0, %v30_v27  ;;  %246 = vmatprep.mubr.f32.mxu0 %v4912_v3 }
  0x2f   :  { %407 = vmatprep.mubr.f32.mxu1 %v4912_v3  ;;  %3534 = vmatpush1.bf16.msra.mxu0 %v5353_v28 }
  0x30   :  { %3566 = vmatpush1.bf16.msra.mxu1 %v5357_v30  ;;  %3568 = vmatprep.subr.bf16.mxu0 %v5028_v39 }
  0x31   :  { %3407 = vmatmul.mubr.msk.f32.gmra.mrb[16].mxu0 %vm85_vm0, %v31_v31  ;;  %3600 = vmatprep.subr.bf16.mxu1 %v5057_v49 }
  0x32   :  { %3423 = vmatmul.mubr.msk.f32.gmra.mrb[16].mxu1 %vm85_vm0, %v31_v31  ;;  %252 = vmatprep.mubr.f32.mxu0 %v4912_v3 }
  0x33   :  { %413 = vmatprep.mubr.f32.mxu1 %v4912_v3 }
  0x35   :  { %3408 = vmatmul.mubr.msk.f32.gmra.mrb[18].mxu0 %vm85_vm0, %v32_v32 }
  0x36   :  { %3424 = vmatmul.mubr.msk.f32.gmra.mrb[18].mxu1 %vm85_vm0, %v32_v32  ;;  %258 = vmatprep.mubr.f32.mxu0 %v4912_v3 }
  0x37   :  { %419 = vmatprep.mubr.f32.mxu1 %v4912_v3 }
  0x39   :  { %3409 = vmatmul.mubr.msk.f32.gmra.mrb[20].mxu0 %vm85_vm0, %v33_v34 }
  0x3a   :  { %3425 = vmatmul.mubr.msk.f32.gmra.mrb[20].mxu1 %vm85_vm0, %v33_v34  ;;  %264 = vmatprep.mubr.f32.mxu0 %v4912_v3 }
  0x3b   :  { %425 = vmatprep.mubr.f32.mxu1 %v4912_v3 }
  0x3d   :  { %3410 = vmatmul.mubr.msk.f32.gmra.mrb[22].mxu0 %vm85_vm0, %v34_v36 }
  0x3e   :  { %3426 = vmatmul.mubr.msk.f32.gmra.mrb[22].mxu1 %vm85_vm0, %v34_v36  ;;  %270 = vmatprep.mubr.f32.mxu0 %v4912_v3 }
  0x3f   :  { %431 = vmatprep.mubr.f32.mxu1 %v4912_v3 }
  0x41   :  { %3411 = vmatmul.mubr.msk.f32.gmra.mrb[24].mxu0 %vm85_vm0, %v35_v37 }
  0x42   :  { %3427 = vmatmul.mubr.msk.f32.gmra.mrb[24].mxu1 %vm85_vm0, %v35_v37  ;;  %276 = vmatprep.mubr.f32.mxu0 %v4912_v3 }
  0x43   :  { %437 = vmatprep.mubr.f32.mxu1 %v4912_v3 }
  0x45   :  { %3412 = vmatmul.mubr.msk.f32.gmra.mrb[26].mxu0 %vm85_vm0, %v36_v38 }
  0x46   :  { %3428 = vmatmul.mubr.msk.f32.gmra.mrb[26].mxu1 %vm85_vm0, %v36_v38  ;;  %282 = vmatprep.mubr.f32.mxu0 %v4912_v3 }
  0x47   :  { %443 = vmatprep.mubr.f32.mxu1 %v4912_v3 }
  0x49   :  { %3413 = vmatmul.mubr.msk.f32.gmra.mrb[28].mxu0 %vm85_vm0, %v37_v40 }
  0x4a   :  { %3429 = vmatmul.mubr.msk.f32.gmra.mrb[28].mxu1 %vm85_vm0, %v37_v40  ;;  %288 = vmatprep.mubr.f32.mxu0 %v4912_v3  ;;  %v529_v40 = vld [vmem:[%s6132_s5] sm:$0xff] }
  0x4b   :  { %449 = vmatprep.mubr.f32.mxu1 %v4912_v3 }
  0x4d   :  { %3414 = vmatmul.mubr.msk.f32.gmra.mrb[30].mxu0 %vm85_vm0, %v38_v42 }
  0x4e   :  { %3430 = vmatmul.mubr.msk.f32.gmra.mrb[30].mxu1 %vm85_vm0, %v38_v42  ;;  %662 = vmatprep.mubr.f32.mxu0 %v4912_v3 }
  0x4f   :  { %733 = vmatprep.mubr.f32.mxu1 %v4912_v3 }
  0x51   :  { %663 = vmatmul.mubr.f32.vlgmr.msra.gmra.mrb[0].mxu0 %v528_v44 }
  0x52   :  { %734 = vmatmul.mubr.f32.vlgmr.msra.gmra.mrb[0].mxu1 %v528_v44  ;;  %3570 = vmatpush1.bf16.msra.mxu0 %v5045_v45 }
  0x53   :  { %3602 = vmatpush1.bf16.msra.mxu1 %v5078_v56  ;;  %3572 = vmatprep.subr.bf16.mxu0 %v5062_v51 }
  0x54   :  { %3604 = vmatprep.subr.bf16.mxu1 %v5091_v60  ;;  %836 = vmatprep.mubr.f32.mxu0 %v4912_v3 }
  0x55   :  { %907 = vmatprep.mubr.f32.mxu1 %v4912_v3 }
  0x56   :  { %3574 = vmatpush1.bf16.msra.mxu0 %v5095_v61 }
  0x57   :  { %3606 = vmatpush1.bf16.msra.mxu1 %v5113_v4  ;;  %3576 = vmatprep.subr.bf16.mxu0 %v5104_v0 }
  0x58   :  { %3608 = vmatprep.subr.bf16.mxu1 %v5134_v10 }
  0x5a   :  { %3578 = vmatpush1.bf16.msra.mxu0 %v5144_v13 }
  0x5b   :  { %3610 = vmatpush1.bf16.msra.mxu1 %v5156_v17  ;;  %3580 = vmatprep.subr.bf16.mxu0 %v5150_v15 }
  0x5c   :  { %3612 = vmatprep.subr.bf16.mxu1 %v5172_v22 }
  0x5e   :  { %3582 = vmatpush1.bf16.msra.mxu0 %v5187_v26 }
  0x5f   :  { %3614 = vmatpush1.bf16.msra.mxu1 %v5208_v33  ;;  %3584 = vmatprep.subr.bf16.mxu0 %v5196_v29 }
  0x60   :  { %3616 = vmatprep.subr.bf16.mxu1 %v5215_v35 }
  0x62   :  { %3586 = vmatpush1.bf16.msra.mxu0 %v5233_v41 }
  0x63   :  { %3618 = vmatpush1.bf16.msra.mxu1 %v5251_v48  ;;  %3588 = vmatprep.subr.bf16.mxu0 %v5239_v43 }
  0x64   :  { %3620 = vmatprep.subr.bf16.mxu1 %v5258_v52 }
  0x66   :  { %3590 = vmatpush1.bf16.msra.mxu0 %v5279_v59 }
  0x67   :  { %3622 = vmatpush1.bf16.msra.mxu1 %v5291_v2  ;;  %3592 = vmatprep.subr.bf16.mxu0 %v5282_v62 }
  0x68   :  { %3624 = vmatprep.subr.bf16.mxu1 %v5301_v7 }
  0x6a   :  { %3594 = vmatpush1.bf16.msra.mxu0 %v5322_v16 }
  0x6b   :  { %3626 = vmatpush1.bf16.msra.mxu1 %v5334_v21  ;;  %3596 = vmatprep.subr.bf16.mxu0 %v5326_v18 }
  0x6c   :  { %3628 = vmatprep.subr.bf16.mxu1 %v5338_v23 }
  0x6e   :  { %3598 = vmatpush1.bf16.msra.mxu0 %v5353_v28 }
  0x6f   :  { %3630 = vmatpush1.bf16.msra.mxu1 %v5357_v30  ;;  %3632 = vmatprep.subr.bf16.mxu0 %v5028_v39 }
  0x70   :  { %3664 = vmatprep.subr.bf16.mxu1 %v5057_v49 }
 0x124   :  { %v664_v58 = vpop.f32.mrb[0].mxu0 }
 0x125   :  { %v4527_v1 = vadd.f32 %v664_v58, %v5465_v55  ;;  %v735_v5 = vpop.f32.mrb[0].mxu1  ;;  %v666_v6 = vpop.f32.mrb[1].mxu0 }
 0x126   :  { %v4528_v8 = vadd.f32 %v666_v6, %v5467_v57  ;;  %v737_v9 = vpop.f32.mrb[1].mxu1  ;;  %v4559_v27 = vadd.f32 %v735_v5, %v5474_v24 }
 0x127   :  { %v3431_v11 = vmul.f32 -1.442695, %v4527_v1  ;;  %v4560_v20 = vadd.f32 %v737_v9, %v5471_v14 }
 0x128   :  { %v3432_v12 = vmul.f32 -1.442695, %v4528_v8 }
 0x129   :  { %4656 = vpow2.f32 %v3431_v11  ;;  %v3433_v25 = vmul.f32 -1.442695, %v4560_v20 }
 0x12a   :  { %4658 = vpow2.f32 %v3432_v12 }
 0x12b   :  { %4660 = vpow2.f32 %v3433_v25 }
 0x12c   :  { %4662 = vtanh.f32 %v4559_v27 }
 0x133   :  { %v4657_v31 = vpop.eup %4656 }
 0x134   :  { %v4659_v32 = vpop.eup %4658  ;;  %v747_v34 = vadd.f32 1.0, %v4657_v31 }
 0x135   :  { %v753_v36 = vadd.f32 1.0, %v4659_v32  ;;  %v4661_v37 = vpop.eup %4660 }
 0x136   :  { %4664 = vrcp.f32 %v747_v34  ;;  %v4663_v38 = vpop.eup %4662  ;;  %v760_v50 = vadd.f32 1.0, %v4661_v37 }
 0x137   :  { %4666 = vrcp.f32 %v753_v36 }
 0x138   :  { %4668 = vrcp.f32 %v760_v50 }
 0x140   :  { %v4665_v42 = vpop.eup %4664 }
 0x141   :  { %v4667_v44 = vpop.eup %4666  ;;  %v764_v47 = vmul.f32 %v4665_v42, %v4663_v38 }
 0x142   :  { %v763_v53 = vmul.f32 %v4667_v44, %v529_v40  ;;  %v4669_v58 = vpop.eup %4668 }
 0x144   :  { %v5480_v54 = vadd.f32 %v764_v47, %v763_v53 }
 0x146   :  { %4670 = vtanh.f32 %v5480_v54 }
 0x150   :  { %v4671_v63 = vpop.eup %4670 }
 0x151   :  { %v767_v1 = vmul.f32 %v4671_v63, %v4669_v58 }
 0x153   :  { %837 = vmatmul.mubr.f32.vlgmr.msra.gmra.mrb[2].mxu0 %v767_v1  ;;  %908 = vmatmul.mubr.f32.vlgmr.msra.gmra.mrb[2].mxu1 %v767_v1 }
 0x154   :  { %3634 = vmatpush1.bf16.msra.mxu0 %v5045_v45  ;;  %3666 = vmatpush1.bf16.msra.mxu1 %v5078_v56 }
 0x155   :  { %3636 = vmatprep.subr.bf16.mxu0 %v5062_v51  ;;  %3668 = vmatprep.subr.bf16.mxu1 %v5091_v60 }
 0x156   :  { %1010 = vmatprep.mubr.f32.mxu0 %v4912_v3  ;;  %1081 = vmatprep.mubr.f32.mxu1 %v4912_v3 }
 0x158   :  { %3638 = vmatpush1.bf16.msra.mxu0 %v5095_v61  ;;  %3670 = vmatpush1.bf16.msra.mxu1 %v5113_v4 }
 0x159   :  { %3640 = vmatprep.subr.bf16.mxu0 %v5104_v0  ;;  %3672 = vmatprep.subr.bf16.mxu1 %v5134_v10 }
 0x15c   :  { %3642 = vmatpush1.bf16.msra.mxu0 %v5144_v13  ;;  %3674 = vmatpush1.bf16.msra.mxu1 %v5156_v17 }
 0x15d   :  { %3644 = vmatprep.subr.bf16.mxu0 %v5150_v15  ;;  %3676 = vmatprep.subr.bf16.mxu1 %v5172_v22 }
 0x160   :  { %3646 = vmatpush1.bf16.msra.mxu0 %v5187_v26  ;;  %3678 = vmatpush1.bf16.msra.mxu1 %v5208_v33 }
 0x161   :  { %3648 = vmatprep.subr.bf16.mxu0 %v5196_v29  ;;  %3680 = vmatprep.subr.bf16.mxu1 %v5215_v35 }
 0x164   :  { %3650 = vmatpush1.bf16.msra.mxu0 %v5233_v41  ;;  %3682 = vmatpush1.bf16.msra.mxu1 %v5251_v48 }
 0x165   :  { %3652 = vmatprep.subr.bf16.mxu0 %v5239_v43  ;;  %3684 = vmatprep.subr.bf16.mxu1 %v5258_v52 }
 0x168   :  { %3654 = vmatpush1.bf16.msra.mxu0 %v5279_v59  ;;  %3686 = vmatpush1.bf16.msra.mxu1 %v5291_v2 }
 0x169   :  { %3656 = vmatprep.subr.bf16.mxu0 %v5282_v62  ;;  %3688 = vmatprep.subr.bf16.mxu1 %v5301_v7 }
 0x16c   :  { %3658 = vmatpush1.bf16.msra.mxu0 %v5322_v16  ;;  %3690 = vmatpush1.bf16.msra.mxu1 %v5334_v21 }
 0x16d   :  { %3660 = vmatprep.subr.bf16.mxu0 %v5326_v18  ;;  %3692 = vmatprep.subr.bf16.mxu1 %v5338_v23 }
 0x170   :  { %3662 = vmatpush1.bf16.msra.mxu0 %v5353_v28  ;;  %3694 = vmatpush1.bf16.msra.mxu1 %v5357_v30 }
 0x171   :  { %3696 = vmatprep.subr.bf16.mxu0 %v5028_v39  ;;  %3728 = vmatprep.subr.bf16.mxu1 %v5057_v49 }
 0x226   :  { %v838_v5 = vpop.f32.mrb[2].mxu0  ;;  %v909_v6 = vpop.f32.mrb[2].mxu1 }
 0x227   :  { %v4529_v8 = vadd.f32 %v838_v5, %v5465_v55  ;;  %v840_v9 = vpop.f32.mrb[3].mxu0  ;;  %v911_v11 = vpop.f32.mrb[3].mxu1  ;;  %v4561_v31 = vadd.f32 %v909_v6, %v5474_v24 }
 0x228   :  { %v4530_v12 = vadd.f32 %v840_v9, %v5467_v57  ;;  %v4562_v25 = vadd.f32 %v911_v11, %v5471_v14 }
 0x229   :  { %v3434_v19 = vmul.f32 -1.442695, %v4529_v8 }
 0x22a   :  { %v3435_v20 = vmul.f32 -1.442695, %v4530_v12  ;;  %v3436_v27 = vmul.f32 -1.442695, %v4562_v25 }
 0x22b   :  { %4672 = vpow2.f32 %v3434_v19 }
 0x22c   :  { %4674 = vpow2.f32 %v3435_v20 }
 0x22d   :  { %4676 = vpow2.f32 %v3436_v27 }
 0x22e   :  { %4678 = vtanh.f32 %v4561_v31 }
 0x235   :  { %v4673_v32 = vpop.eup %4672 }
 0x236   :  { %v4675_v34 = vpop.eup %4674  ;;  %v921_v36 = vadd.f32 1.0, %v4673_v32 }
 0x237   :  { %v927_v37 = vadd.f32 1.0, %v4675_v34  ;;  %v4677_v38 = vpop.eup %4676 }
 0x238   :  { %4680 = vrcp.f32 %v921_v36  ;;  %v4679_v40 = vpop.eup %4678  ;;  %v934_v50 = vadd.f32 1.0, %v4677_v38 }
 0x239   :  { %4682 = vrcp.f32 %v927_v37 }
 0x23a   :  { %4684 = vrcp.f32 %v934_v50 }
 0x242   :  { %v4681_v42 = vpop.eup %4680 }
 0x243   :  { %v4683_v44 = vpop.eup %4682  ;;  %v938_v47 = vmul.f32 %v4681_v42, %v4679_v40 }
 0x244   :  { %v937_v53 = vmul.f32 %v4683_v44, %v5480_v54  ;;  %v4685_v63 = vpop.eup %4684 }
 0x246   :  { %v5522_v58 = vadd.f32 %v938_v47, %v937_v53 }
 0x248   :  { %4686 = vtanh.f32 %v5522_v58 }
 0x252   :  { %v4687_v1 = vpop.eup %4686 }
 0x253   :  { %v941_v5 = vmul.f32 %v4687_v1, %v4685_v63 }
 0x255   :  { %1011 = vmatmul.mubr.f32.vlgmr.msra.gmra.mrb[4].mxu0 %v941_v5  ;;  %1082 = vmatmul.mubr.f32.vlgmr.msra.gmra.mrb[4].mxu1 %v941_v5 }
 0x256   :  { %3698 = vmatpush1.bf16.msra.mxu0 %v5045_v45  ;;  %3730 = vmatpush1.bf16.msra.mxu1 %v5078_v56 }
 0x257   :  { %3700 = vmatprep.subr.bf16.mxu0 %v5062_v51  ;;  %3732 = vmatprep.subr.bf16.mxu1 %v5091_v60 }
 0x258   :  { %1184 = vmatprep.mubr.f32.mxu0 %v4912_v3  ;;  %1255 = vmatprep.mubr.f32.mxu1 %v4912_v3 }
 0x25a   :  { %3702 = vmatpush1.bf16.msra.mxu0 %v5095_v61  ;;  %3734 = vmatpush1.bf16.msra.mxu1 %v5113_v4 }
 0x25b   :  { %3704 = vmatprep.subr.bf16.mxu0 %v5104_v0  ;;  %3736 = vmatprep.subr.bf16.mxu1 %v5134_v10 }
 0x25e   :  { %3706 = vmatpush1.bf16.msra.mxu0 %v5144_v13  ;;  %3738 = vmatpush1.bf16.msra.mxu1 %v5156_v17 }
 0x25f   :  { %3708 = vmatprep.subr.bf16.mxu0 %v5150_v15  ;;  %3740 = vmatprep.subr.bf16.mxu1 %v5172_v22 }
 0x262   :  { %3710 = vmatpush1.bf16.msra.mxu0 %v5187_v26  ;;  %3742 = vmatpush1.bf16.msra.mxu1 %v5208_v33 }
 0x263   :  { %3712 = vmatprep.subr.bf16.mxu0 %v5196_v29  ;;  %3744 = vmatprep.subr.bf16.mxu1 %v5215_v35 }
 0x266   :  { %3714 = vmatpush1.bf16.msra.mxu0 %v5233_v41  ;;  %3746 = vmatpush1.bf16.msra.mxu1 %v5251_v48 }
 0x267   :  { %3716 = vmatprep.subr.bf16.mxu0 %v5239_v43  ;;  %3748 = vmatprep.subr.bf16.mxu1 %v5258_v52 }
 0x26a   :  { %3718 = vmatpush1.bf16.msra.mxu0 %v5279_v59  ;;  %3750 = vmatpush1.bf16.msra.mxu1 %v5291_v2 }
 0x26b   :  { %3720 = vmatprep.subr.bf16.mxu0 %v5282_v62  ;;  %3752 = vmatprep.subr.bf16.mxu1 %v5301_v7 }
 0x26e   :  { %3722 = vmatpush1.bf16.msra.mxu0 %v5322_v16  ;;  %3754 = vmatpush1.bf16.msra.mxu1 %v5334_v21 }
 0x26f   :  { %3724 = vmatprep.subr.bf16.mxu0 %v5326_v18  ;;  %3756 = vmatprep.subr.bf16.mxu1 %v5338_v23 }
 0x272   :  { %3726 = vmatpush1.bf16.msra.mxu0 %v5353_v28  ;;  %3758 = vmatpush1.bf16.msra.mxu1 %v5357_v30 }
 0x273   :  { %3760 = vmatprep.subr.bf16.mxu0 %v5028_v39  ;;  %3792 = vmatprep.subr.bf16.mxu1 %v5057_v49 }
 0x328   :  { %v1012_v54 = vpop.f32.mrb[4].mxu0  ;;  %v1083_v6 = vpop.f32.mrb[4].mxu1 }
 0x329   :  { %v4531_v8 = vadd.f32 %v1012_v54, %v5465_v55  ;;  %v1014_v9 = vpop.f32.mrb[5].mxu0  ;;  %v1085_v11 = vpop.f32.mrb[5].mxu1  ;;  %v4563_v31 = vadd.f32 %v1083_v6, %v5474_v24 }
 0x32a   :  { %v4532_v12 = vadd.f32 %v1014_v9, %v5467_v57  ;;  %v4564_v25 = vadd.f32 %v1085_v11, %v5471_v14 }
 0x32b   :  { %v3437_v19 = vmul.f32 -1.442695, %v4531_v8 }
 0x32c   :  { %v3438_v20 = vmul.f32 -1.442695, %v4532_v12  ;;  %v3439_v27 = vmul.f32 -1.442695, %v4564_v25 }
 0x32d   :  { %4688 = vpow2.f32 %v3437_v19 }
 0x32e   :  { %4690 = vpow2.f32 %v3438_v20 }
 0x32f   :  { %4692 = vpow2.f32 %v3439_v27 }
 0x330   :  { %4694 = vtanh.f32 %v4563_v31 }
 0x337   :  { %v4689_v32 = vpop.eup %4688 }
 0x338   :  { %v4691_v34 = vpop.eup %4690  ;;  %v1095_v36 = vadd.f32 1.0, %v4689_v32 }
 0x339   :  { %v1101_v37 = vadd.f32 1.0, %v4691_v34  ;;  %v4693_v38 = vpop.eup %4692 }
 0x33a   :  { %4696 = vrcp.f32 %v1095_v36  ;;  %v4695_v40 = vpop.eup %4694  ;;  %v1108_v50 = vadd.f32 1.0, %v4693_v38 }
 0x33b   :  { %4698 = vrcp.f32 %v1101_v37 }
 0x33c   :  { %4700 = vrcp.f32 %v1108_v50 }
 0x344   :  { %v4697_v42 = vpop.eup %4696 }
 0x345   :  { %v4699_v44 = vpop.eup %4698  ;;  %v1112_v47 = vmul.f32 %v4697_v42, %v4695_v40 }
 0x346   :  { %v1111_v53 = vmul.f32 %v4699_v44, %v5522_v58  ;;  %v4701_v1 = vpop.eup %4700 }
 0x348   :  { %v5564_v63 = vadd.f32 %v1112_v47, %v1111_v53 }
 0x34a   :  { %4702 = vtanh.f32 %v5564_v63 }
 0x354   :  { %v4703_v5 = vpop.eup %4702 }
 0x355   :  { %v1115_v54 = vmul.f32 %v4703_v5, %v4701_v1 }
 0x357   :  { %1185 = vmatmul.mubr.f32.vlgmr.msra.gmra.mrb[6].mxu0 %v1115_v54  ;;  %1256 = vmatmul.mubr.f32.vlgmr.msra.gmra.mrb[6].mxu1 %v1115_v54 }
 0x358   :  { %3762 = vmatpush1.bf16.msra.mxu0 %v5045_v45  ;;  %3794 = vmatpush1.bf16.msra.mxu1 %v5078_v56 }
 0x359   :  { %3764 = vmatprep.subr.bf16.mxu0 %v5062_v51  ;;  %3796 = vmatprep.subr.bf16.mxu1 %v5091_v60 }
 0x35a   :  { %1358 = vmatprep.mubr.f32.mxu0 %v4912_v3  ;;  %1429 = vmatprep.mubr.f32.mxu1 %v4912_v3 }
 0x35c   :  { %3766 = vmatpush1.bf16.msra.mxu0 %v5095_v61  ;;  %3798 = vmatpush1.bf16.msra.mxu1 %v5113_v4 }
 0x35d   :  { %3768 = vmatprep.subr.bf16.mxu0 %v5104_v0  ;;  %3800 = vmatprep.subr.bf16.mxu1 %v5134_v10 }
 0x360   :  { %3770 = vmatpush1.bf16.msra.mxu0 %v5144_v13  ;;  %3802 = vmatpush1.bf16.msra.mxu1 %v5156_v17 }
 0x361   :  { %3772 = vmatprep.subr.bf16.mxu0 %v5150_v15  ;;  %3804 = vmatprep.subr.bf16.mxu1 %v5172_v22 }
 0x364   :  { %3774 = vmatpush1.bf16.msra.mxu0 %v5187_v26  ;;  %3806 = vmatpush1.bf16.msra.mxu1 %v5208_v33 }
 0x365   :  { %3776 = vmatprep.subr.bf16.mxu0 %v5196_v29  ;;  %3808 = vmatprep.subr.bf16.mxu1 %v5215_v35 }
 0x368   :  { %3778 = vmatpush1.bf16.msra.mxu0 %v5233_v41  ;;  %3810 = vmatpush1.bf16.msra.mxu1 %v5251_v48 }
 0x369   :  { %3780 = vmatprep.subr.bf16.mxu0 %v5239_v43  ;;  %3812 = vmatprep.subr.bf16.mxu1 %v5258_v52 }
 0x36c   :  { %3782 = vmatpush1.bf16.msra.mxu0 %v5279_v59  ;;  %3814 = vmatpush1.bf16.msra.mxu1 %v5291_v2 }
 0x36d   :  { %3784 = vmatprep.subr.bf16.mxu0 %v5282_v62  ;;  %3816 = vmatprep.subr.bf16.mxu1 %v5301_v7 }
 0x370   :  { %3786 = vmatpush1.bf16.msra.mxu0 %v5322_v16  ;;  %3818 = vmatpush1.bf16.msra.mxu1 %v5334_v21 }
 0x371   :  { %3788 = vmatprep.subr.bf16.mxu0 %v5326_v18  ;;  %3820 = vmatprep.subr.bf16.mxu1 %v5338_v23 }
 0x374   :  { %3790 = vmatpush1.bf16.msra.mxu0 %v5353_v28  ;;  %3822 = vmatpush1.bf16.msra.mxu1 %v5357_v30 }
 0x375   :  { %3824 = vmatprep.subr.bf16.mxu0 %v5028_v39  ;;  %3856 = vmatprep.subr.bf16.mxu1 %v5057_v49 }
 0x42a   :  { %v1186_v58 = vpop.f32.mrb[6].mxu0  ;;  %v1257_v6 = vpop.f32.mrb[6].mxu1 }
 0x42b   :  { %v4533_v8 = vadd.f32 %v1186_v58, %v5465_v55  ;;  %v1188_v9 = vpop.f32.mrb[7].mxu0  ;;  %v1259_v11 = vpop.f32.mrb[7].mxu1  ;;  %v4565_v31 = vadd.f32 %v1257_v6, %v5474_v24 }
 0x42c   :  { %v4534_v12 = vadd.f32 %v1188_v9, %v5467_v57  ;;  %v4566_v25 = vadd.f32 %v1259_v11, %v5471_v14 }
 0x42d   :  { %v3440_v19 = vmul.f32 -1.442695, %v4533_v8 }
 0x42e   :  { %v3441_v20 = vmul.f32 -1.442695, %v4534_v12  ;;  %v3442_v27 = vmul.f32 -1.442695, %v4566_v25 }
 0x42f   :  { %4704 = vpow2.f32 %v3440_v19 }
 0x430   :  { %4706 = vpow2.f32 %v3441_v20 }
 0x431   :  { %4708 = vpow2.f32 %v3442_v27 }
 0x432   :  { %4710 = vtanh.f32 %v4565_v31 }
 0x439   :  { %v4705_v32 = vpop.eup %4704 }
 0x43a   :  { %v4707_v34 = vpop.eup %4706  ;;  %v1269_v36 = vadd.f32 1.0, %v4705_v32 }
 0x43b   :  { %v1275_v37 = vadd.f32 1.0, %v4707_v34  ;;  %v4709_v38 = vpop.eup %4708 }
 0x43c   :  { %4712 = vrcp.f32 %v1269_v36  ;;  %v4711_v40 = vpop.eup %4710  ;;  %v1282_v50 = vadd.f32 1.0, %v4709_v38 }
 0x43d   :  { %4714 = vrcp.f32 %v1275_v37 }
 0x43e   :  { %4716 = vrcp.f32 %v1282_v50 }
 0x446   :  { %v4713_v42 = vpop.eup %4712 }
 0x447   :  { %v4715_v44 = vpop.eup %4714  ;;  %v1286_v47 = vmul.f32 %v4713_v42, %v4711_v40 }
 0x448   :  { %v1285_v53 = vmul.f32 %v4715_v44, %v5564_v63  ;;  %v4717_v5 = vpop.eup %4716 }
 0x44a   :  { %v5606_v1 = vadd.f32 %v1286_v47, %v1285_v53 }
 0x44c   :  { %4718 = vtanh.f32 %v5606_v1 }
 0x456   :  { %v4719_v54 = vpop.eup %4718 }
 0x457   :  { %v1289_v58 = vmul.f32 %v4719_v54, %v4717_v5 }
 0x459   :  { %1359 = vmatmul.mubr.f32.vlgmr.msra.gmra.mrb[8].mxu0 %v1289_v58  ;;  %1430 = vmatmul.mubr.f32.vlgmr.msra.gmra.mrb[8].mxu1 %v1289_v58 }
 0x45a   :  { %3826 = vmatpush1.bf16.msra.mxu0 %v5045_v45  ;;  %3858 = vmatpush1.bf16.msra.mxu1 %v5078_v56 }
 0x45b   :  { %3828 = vmatprep.subr.bf16.mxu0 %v5062_v51  ;;  %3860 = vmatprep.subr.bf16.mxu1 %v5091_v60 }
 0x45c   :  { %1532 = vmatprep.mubr.f32.mxu0 %v4912_v3  ;;  %1603 = vmatprep.mubr.f32.mxu1 %v4912_v3 }
 0x45e   :  { %3830 = vmatpush1.bf16.msra.mxu0 %v5095_v61  ;;  %3862 = vmatpush1.bf16.msra.mxu1 %v5113_v4 }
 0x45f   :  { %3832 = vmatprep.subr.bf16.mxu0 %v5104_v0  ;;  %3864 = vmatprep.subr.bf16.mxu1 %v5134_v10 }
 0x462   :  { %3834 = vmatpush1.bf16.msra.mxu0 %v5144_v13  ;;  %3866 = vmatpush1.bf16.msra.mxu1 %v5156_v17 }
 0x463   :  { %3836 = vmatprep.subr.bf16.mxu0 %v5150_v15  ;;  %3868 = vmatprep.subr.bf16.mxu1 %v5172_v22 }
 0x466   :  { %3838 = vmatpush1.bf16.msra.mxu0 %v5187_v26  ;;  %3870 = vmatpush1.bf16.msra.mxu1 %v5208_v33 }
 0x467   :  { %3840 = vmatprep.subr.bf16.mxu0 %v5196_v29  ;;  %3872 = vmatprep.subr.bf16.mxu1 %v5215_v35 }
 0x46a   :  { %3842 = vmatpush1.bf16.msra.mxu0 %v5233_v41  ;;  %3874 = vmatpush1.bf16.msra.mxu1 %v5251_v48 }
 0x46b   :  { %3844 = vmatprep.subr.bf16.mxu0 %v5239_v43  ;;  %3876 = vmatprep.subr.bf16.mxu1 %v5258_v52 }
 0x46e   :  { %3846 = vmatpush1.bf16.msra.mxu0 %v5279_v59  ;;  %3878 = vmatpush1.bf16.msra.mxu1 %v5291_v2 }
 0x46f   :  { %3848 = vmatprep.subr.bf16.mxu0 %v5282_v62  ;;  %3880 = vmatprep.subr.bf16.mxu1 %v5301_v7 }
 0x472   :  { %3850 = vmatpush1.bf16.msra.mxu0 %v5322_v16  ;;  %3882 = vmatpush1.bf16.msra.mxu1 %v5334_v21 }
 0x473   :  { %3852 = vmatprep.subr.bf16.mxu0 %v5326_v18  ;;  %3884 = vmatprep.subr.bf16.mxu1 %v5338_v23 }
 0x476   :  { %3854 = vmatpush1.bf16.msra.mxu0 %v5353_v28  ;;  %3886 = vmatpush1.bf16.msra.mxu1 %v5357_v30 }
 0x477   :  { %3888 = vmatprep.subr.bf16.mxu0 %v5028_v39  ;;  %3920 = vmatprep.subr.bf16.mxu1 %v5057_v49 }
 0x52c   :  { %v1360_v63 = vpop.f32.mrb[8].mxu0  ;;  %v1431_v6 = vpop.f32.mrb[8].mxu1 }
 0x52d   :  { %v4535_v8 = vadd.f32 %v1360_v63, %v5465_v55  ;;  %v1362_v9 = vpop.f32.mrb[9].mxu0  ;;  %v1433_v11 = vpop.f32.mrb[9].mxu1  ;;  %v4567_v31 = vadd.f32 %v1431_v6, %v5474_v24 }
 0x52e   :  { %v4536_v12 = vadd.f32 %v1362_v9, %v5467_v57  ;;  %v4568_v25 = vadd.f32 %v1433_v11, %v5471_v14 }
 0x52f   :  { %v3443_v19 = vmul.f32 -1.442695, %v4535_v8 }
 0x530   :  { %v3444_v20 = vmul.f32 -1.442695, %v4536_v12  ;;  %v3445_v27 = vmul.f32 -1.442695, %v4568_v25 }
 0x531   :  { %4720 = vpow2.f32 %v3443_v19 }
 0x532   :  { %4722 = vpow2.f32 %v3444_v20 }
 0x533   :  { %4724 = vpow2.f32 %v3445_v27 }
 0x534   :  { %4726 = vtanh.f32 %v4567_v31 }
 0x53b   :  { %v4721_v32 = vpop.eup %4720 }
 0x53c   :  { %v4723_v34 = vpop.eup %4722  ;;  %v1443_v36 = vadd.f32 1.0, %v4721_v32 }
 0x53d   :  { %v1449_v37 = vadd.f32 1.0, %v4723_v34  ;;  %v4725_v38 = vpop.eup %4724 }
 0x53e   :  { %4728 = vrcp.f32 %v1443_v36  ;;  %v4727_v40 = vpop.eup %4726  ;;  %v1456_v50 = vadd.f32 1.0, %v4725_v38 }
 0x53f   :  { %4730 = vrcp.f32 %v1449_v37 }
 0x540   :  { %4732 = vrcp.f32 %v1456_v50 }
 0x548   :  { %v4729_v42 = vpop.eup %4728 }
 0x549   :  { %v4731_v44 = vpop.eup %4730  ;;  %v1460_v47 = vmul.f32 %v4729_v42, %v4727_v40 }
 0x54a   :  { %v1459_v53 = vmul.f32 %v4731_v44, %v5606_v1  ;;  %v4733_v54 = vpop.eup %4732 }
 0x54c   :  { %v5648_v5 = vadd.f32 %v1460_v47, %v1459_v53 }
 0x54e   :  { %4734 = vtanh.f32 %v5648_v5 }
 0x558   :  { %v4735_v58 = vpop.eup %4734 }
 0x559   :  { %v1463_v63 = vmul.f32 %v4735_v58, %v4733_v54 }
 0x55b   :  { %1533 = vmatmul.mubr.f32.vlgmr.msra.gmra.mrb[10].mxu0 %v1463_v63  ;;  %1604 = vmatmul.mubr.f32.vlgmr.msra.gmra.mrb[10].mxu1 %v1463_v63 }
 0x55c   :  { %3890 = vmatpush1.bf16.msra.mxu0 %v5045_v45  ;;  %3922 = vmatpush1.bf16.msra.mxu1 %v5078_v56 }
 0x55d   :  { %3892 = vmatprep.subr.bf16.mxu0 %v5062_v51  ;;  %3924 = vmatprep.subr.bf16.mxu1 %v5091_v60 }
 0x55e   :  { %1706 = vmatprep.mubr.f32.mxu0 %v4912_v3  ;;  %1777 = vmatprep.mubr.f32.mxu1 %v4912_v3 }
 0x560   :  { %3894 = vmatpush1.bf16.msra.mxu0 %v5095_v61  ;;  %3926 = vmatpush1.bf16.msra.mxu1 %v5113_v4 }
 0x561   :  { %3896 = vmatprep.subr.bf16.mxu0 %v5104_v0  ;;  %3928 = vmatprep.subr.bf16.mxu1 %v5134_v10 }
 0x564   :  { %3898 = vmatpush1.bf16.msra.mxu0 %v5144_v13  ;;  %3930 = vmatpush1.bf16.msra.mxu1 %v5156_v17 }
 0x565   :  { %3900 = vmatprep.subr.bf16.mxu0 %v5150_v15  ;;  %3932 = vmatprep.subr.bf16.mxu1 %v5172_v22 }
 0x568   :  { %3902 = vmatpush1.bf16.msra.mxu0 %v5187_v26  ;;  %3934 = vmatpush1.bf16.msra.mxu1 %v5208_v33 }
 0x569   :  { %3904 = vmatprep.subr.bf16.mxu0 %v5196_v29  ;;  %3936 = vmatprep.subr.bf16.mxu1 %v5215_v35 }
 0x56c   :  { %3906 = vmatpush1.bf16.msra.mxu0 %v5233_v41  ;;  %3938 = vmatpush1.bf16.msra.mxu1 %v5251_v48 }
 0x56d   :  { %3908 = vmatprep.subr.bf16.mxu0 %v5239_v43  ;;  %3940 = vmatprep.subr.bf16.mxu1 %v5258_v52 }
 0x570   :  { %3910 = vmatpush1.bf16.msra.mxu0 %v5279_v59  ;;  %3942 = vmatpush1.bf16.msra.mxu1 %v5291_v2 }
 0x571   :  { %3912 = vmatprep.subr.bf16.mxu0 %v5282_v62  ;;  %3944 = vmatprep.subr.bf16.mxu1 %v5301_v7 }
 0x574   :  { %3914 = vmatpush1.bf16.msra.mxu0 %v5322_v16  ;;  %3946 = vmatpush1.bf16.msra.mxu1 %v5334_v21 }
 0x575   :  { %3916 = vmatprep.subr.bf16.mxu0 %v5326_v18  ;;  %3948 = vmatprep.subr.bf16.mxu1 %v5338_v23 }
 0x578   :  { %3918 = vmatpush1.bf16.msra.mxu0 %v5353_v28  ;;  %3950 = vmatpush1.bf16.msra.mxu1 %v5357_v30 }
 0x579   :  { %3952 = vmatprep.subr.bf16.mxu0 %v5028_v39  ;;  %3984 = vmatprep.subr.bf16.mxu1 %v5057_v49 }
 0x62e   :  { %v1534_v1 = vpop.f32.mrb[10].mxu0  ;;  %v1605_v6 = vpop.f32.mrb[10].mxu1 }
 0x62f   :  { %v4537_v8 = vadd.f32 %v1534_v1, %v5465_v55  ;;  %v1536_v9 = vpop.f32.mrb[11].mxu0  ;;  %v1607_v11 = vpop.f32.mrb[11].mxu1  ;;  %v4569_v31 = vadd.f32 %v1605_v6, %v5474_v24 }
 0x630   :  { %v4538_v12 = vadd.f32 %v1536_v9, %v5467_v57  ;;  %v4570_v25 = vadd.f32 %v1607_v11, %v5471_v14 }
 0x631   :  { %v3446_v19 = vmul.f32 -1.442695, %v4537_v8 }
 0x632   :  { %v3447_v20 = vmul.f32 -1.442695, %v4538_v12  ;;  %v3448_v27 = vmul.f32 -1.442695, %v4570_v25 }
 0x633   :  { %4736 = vpow2.f32 %v3446_v19 }
 0x634   :  { %4738 = vpow2.f32 %v3447_v20 }
 0x635   :  { %4740 = vpow2.f32 %v3448_v27 }
 0x636   :  { %4742 = vtanh.f32 %v4569_v31 }
 0x63d   :  { %v4737_v32 = vpop.eup %4736 }
 0x63e   :  { %v4739_v34 = vpop.eup %4738  ;;  %v1617_v36 = vadd.f32 1.0, %v4737_v32 }
 0x63f   :  { %v1623_v37 = vadd.f32 1.0, %v4739_v34  ;;  %v4741_v38 = vpop.eup %4740 }
 0x640   :  { %4744 = vrcp.f32 %v1617_v36  ;;  %v4743_v40 = vpop.eup %4742  ;;  %v1630_v50 = vadd.f32 1.0, %v4741_v38 }
 0x641   :  { %4746 = vrcp.f32 %v1623_v37 }
 0x642   :  { %4748 = vrcp.f32 %v1630_v50 }
 0x64a   :  { %v4745_v42 = vpop.eup %4744 }
 0x64b   :  { %v4747_v44 = vpop.eup %4746  ;;  %v1634_v47 = vmul.f32 %v4745_v42, %v4743_v40 }
 0x64c   :  { %v1633_v53 = vmul.f32 %v4747_v44, %v5648_v5  ;;  %v4749_v58 = vpop.eup %4748 }
 0x64e   :  { %v5690_v54 = vadd.f32 %v1634_v47, %v1633_v53 }
 0x650   :  { %4750 = vtanh.f32 %v5690_v54 }
 0x65a   :  { %v4751_v63 = vpop.eup %4750 }
 0x65b   :  { %v1637_v1 = vmul.f32 %v4751_v63, %v4749_v58 }
 0x65d   :  { %1707 = vmatmul.mubr.f32.vlgmr.msra.gmra.mrb[12].mxu0 %v1637_v1  ;;  %1778 = vmatmul.mubr.f32.vlgmr.msra.gmra.mrb[12].mxu1 %v1637_v1 }
 0x65e   :  { %3954 = vmatpush1.bf16.msra.mxu0 %v5045_v45  ;;  %3986 = vmatpush1.bf16.msra.mxu1 %v5078_v56 }
 0x65f   :  { %3956 = vmatprep.subr.bf16.mxu0 %v5062_v51  ;;  %3988 = vmatprep.subr.bf16.mxu1 %v5091_v60 }
 0x660   :  { %1880 = vmatprep.mubr.f32.mxu0 %v4912_v3  ;;  %1951 = vmatprep.mubr.f32.mxu1 %v4912_v3 }
 0x662   :  { %3958 = vmatpush1.bf16.msra.mxu0 %v5095_v61  ;;  %3990 = vmatpush1.bf16.msra.mxu1 %v5113_v4 }
 0x663   :  { %3960 = vmatprep.subr.bf16.mxu0 %v5104_v0  ;;  %3992 = vmatprep.subr.bf16.mxu1 %v5134_v10 }
 0x666   :  { %3962 = vmatpush1.bf16.msra.mxu0 %v5144_v13  ;;  %3994 = vmatpush1.bf16.msra.mxu1 %v5156_v17 }
 0x667   :  { %3964 = vmatprep.subr.bf16.mxu0 %v5150_v15  ;;  %3996 = vmatprep.subr.bf16.mxu1 %v5172_v22 }
 0x66a   :  { %3966 = vmatpush1.bf16.msra.mxu0 %v5187_v26  ;;  %3998 = vmatpush1.bf16.msra.mxu1 %v5208_v33 }
 0x66b   :  { %3968 = vmatprep.subr.bf16.mxu0 %v5196_v29  ;;  %4000 = vmatprep.subr.bf16.mxu1 %v5215_v35 }
 0x66e   :  { %3970 = vmatpush1.bf16.msra.mxu0 %v5233_v41  ;;  %4002 = vmatpush1.bf16.msra.mxu1 %v5251_v48 }
 0x66f   :  { %3972 = vmatprep.subr.bf16.mxu0 %v5239_v43  ;;  %4004 = vmatprep.subr.bf16.mxu1 %v5258_v52 }
 0x672   :  { %3974 = vmatpush1.bf16.msra.mxu0 %v5279_v59  ;;  %4006 = vmatpush1.bf16.msra.mxu1 %v5291_v2 }
 0x673   :  { %3976 = vmatprep.subr.bf16.mxu0 %v5282_v62  ;;  %4008 = vmatprep.subr.bf16.mxu1 %v5301_v7 }
 0x676   :  { %3978 = vmatpush1.bf16.msra.mxu0 %v5322_v16  ;;  %4010 = vmatpush1.bf16.msra.mxu1 %v5334_v21 }
 0x677   :  { %3980 = vmatprep.subr.bf16.mxu0 %v5326_v18  ;;  %4012 = vmatprep.subr.bf16.mxu1 %v5338_v23 }
 0x67a   :  { %3982 = vmatpush1.bf16.msra.mxu0 %v5353_v28  ;;  %4014 = vmatpush1.bf16.msra.mxu1 %v5357_v30 }
 0x67b   :  { %4016 = vmatprep.subr.bf16.mxu0 %v5028_v39  ;;  %4048 = vmatprep.subr.bf16.mxu1 %v5057_v49 }
 0x730   :  { %v1708_v5 = vpop.f32.mrb[12].mxu0  ;;  %v1779_v6 = vpop.f32.mrb[12].mxu1 }
 0x731   :  { %v4539_v8 = vadd.f32 %v1708_v5, %v5465_v55  ;;  %v1710_v9 = vpop.f32.mrb[13].mxu0  ;;  %v1781_v11 = vpop.f32.mrb[13].mxu1  ;;  %v4571_v31 = vadd.f32 %v1779_v6, %v5474_v24 }
 0x732   :  { %v4540_v12 = vadd.f32 %v1710_v9, %v5467_v57  ;;  %v4572_v25 = vadd.f32 %v1781_v11, %v5471_v14 }
 0x733   :  { %v3449_v19 = vmul.f32 -1.442695, %v4539_v8 }
 0x734   :  { %v3450_v20 = vmul.f32 -1.442695, %v4540_v12  ;;  %v3451_v27 = vmul.f32 -1.442695, %v4572_v25 }
 0x735   :  { %4752 = vpow2.f32 %v3449_v19 }
 0x736   :  { %4754 = vpow2.f32 %v3450_v20 }
 0x737   :  { %4756 = vpow2.f32 %v3451_v27 }
 0x738   :  { %4758 = vtanh.f32 %v4571_v31 }
 0x73f   :  { %v4753_v32 = vpop.eup %4752 }
 0x740   :  { %v4755_v34 = vpop.eup %4754  ;;  %v1791_v36 = vadd.f32 1.0, %v4753_v32 }
 0x741   :  { %v1797_v37 = vadd.f32 1.0, %v4755_v34  ;;  %v4757_v38 = vpop.eup %4756 }
 0x742   :  { %4760 = vrcp.f32 %v1791_v36  ;;  %v4759_v40 = vpop.eup %4758  ;;  %v1804_v50 = vadd.f32 1.0, %v4757_v38 }
 0x743   :  { %4762 = vrcp.f32 %v1797_v37 }
 0x744   :  { %4764 = vrcp.f32 %v1804_v50 }
 0x74c   :  { %v4761_v42 = vpop.eup %4760 }
 0x74d   :  { %v4763_v44 = vpop.eup %4762  ;;  %v1808_v47 = vmul.f32 %v4761_v42, %v4759_v40 }
 0x74e   :  { %v1807_v53 = vmul.f32 %v4763_v44, %v5690_v54  ;;  %v4765_v63 = vpop.eup %4764 }
 0x750   :  { %v5732_v58 = vadd.f32 %v1808_v47, %v1807_v53 }
 0x752   :  { %4766 = vtanh.f32 %v5732_v58 }
 0x75c   :  { %v4767_v1 = vpop.eup %4766 }
 0x75d   :  { %v1811_v5 = vmul.f32 %v4767_v1, %v4765_v63 }
 0x75f   :  { %1881 = vmatmul.mubr.f32.vlgmr.msra.gmra.mrb[14].mxu0 %v1811_v5  ;;  %1952 = vmatmul.mubr.f32.vlgmr.msra.gmra.mrb[14].mxu1 %v1811_v5 }
 0x760   :  { %4018 = vmatpush1.bf16.msra.mxu0 %v5045_v45  ;;  %4050 = vmatpush1.bf16.msra.mxu1 %v5078_v56 }
 0x761   :  { %4020 = vmatprep.subr.bf16.mxu0 %v5062_v51  ;;  %4052 = vmatprep.subr.bf16.mxu1 %v5091_v60 }
 0x762   :  { %2054 = vmatprep.mubr.f32.mxu0 %v4912_v3  ;;  %2125 = vmatprep.mubr.f32.mxu1 %v4912_v3 }
 0x764   :  { %4022 = vmatpush1.bf16.msra.mxu0 %v5095_v61  ;;  %4054 = vmatpush1.bf16.msra.mxu1 %v5113_v4 }
 0x765   :  { %4024 = vmatprep.subr.bf16.mxu0 %v5104_v0  ;;  %4056 = vmatprep.subr.bf16.mxu1 %v5134_v10 }
 0x768   :  { %4026 = vmatpush1.bf16.msra.mxu0 %v5144_v13  ;;  %4058 = vmatpush1.bf16.msra.mxu1 %v5156_v17 }
 0x769   :  { %4028 = vmatprep.subr.bf16.mxu0 %v5150_v15  ;;  %4060 = vmatprep.subr.bf16.mxu1 %v5172_v22 }
 0x76c   :  { %4030 = vmatpush1.bf16.msra.mxu0 %v5187_v26  ;;  %4062 = vmatpush1.bf16.msra.mxu1 %v5208_v33 }
 0x76d   :  { %4032 = vmatprep.subr.bf16.mxu0 %v5196_v29  ;;  %4064 = vmatprep.subr.bf16.mxu1 %v5215_v35 }
 0x770   :  { %4034 = vmatpush1.bf16.msra.mxu0 %v5233_v41  ;;  %4066 = vmatpush1.bf16.msra.mxu1 %v5251_v48 }
 0x771   :  { %4036 = vmatprep.subr.bf16.mxu0 %v5239_v43  ;;  %4068 = vmatprep.subr.bf16.mxu1 %v5258_v52 }
 0x774   :  { %4038 = vmatpush1.bf16.msra.mxu0 %v5279_v59  ;;  %4070 = vmatpush1.bf16.msra.mxu1 %v5291_v2 }
 0x775   :  { %4040 = vmatprep.subr.bf16.mxu0 %v5282_v62  ;;  %4072 = vmatprep.subr.bf16.mxu1 %v5301_v7 }
 0x778   :  { %4042 = vmatpush1.bf16.msra.mxu0 %v5322_v16  ;;  %4074 = vmatpush1.bf16.msra.mxu1 %v5334_v21 }
 0x779   :  { %4044 = vmatprep.subr.bf16.mxu0 %v5326_v18  ;;  %4076 = vmatprep.subr.bf16.mxu1 %v5338_v23 }
 0x77c   :  { %4046 = vmatpush1.bf16.msra.mxu0 %v5353_v28  ;;  %4078 = vmatpush1.bf16.msra.mxu1 %v5357_v30 }
 0x77d   :  { %4080 = vmatprep.subr.bf16.mxu0 %v5028_v39  ;;  %4112 = vmatprep.subr.bf16.mxu1 %v5057_v49 }
 0x832   :  { %v1882_v54 = vpop.f32.mrb[14].mxu0  ;;  %v1953_v6 = vpop.f32.mrb[14].mxu1 }
 0x833   :  { %v4541_v8 = vadd.f32 %v1882_v54, %v5465_v55  ;;  %v1884_v9 = vpop.f32.mrb[15].mxu0  ;;  %v1955_v11 = vpop.f32.mrb[15].mxu1  ;;  %v4573_v31 = vadd.f32 %v1953_v6, %v5474_v24 }
 0x834   :  { %v4542_v12 = vadd.f32 %v1884_v9, %v5467_v57  ;;  %v4574_v25 = vadd.f32 %v1955_v11, %v5471_v14 }
 0x835   :  { %v3452_v19 = vmul.f32 -1.442695, %v4541_v8 }
 0x836   :  { %v3453_v20 = vmul.f32 -1.442695, %v4542_v12  ;;  %v3454_v27 = vmul.f32 -1.442695, %v4574_v25 }
 0x837   :  { %4768 = vpow2.f32 %v3452_v19 }
 0x838   :  { %4770 = vpow2.f32 %v3453_v20 }
 0x839   :  { %4772 = vpow2.f32 %v3454_v27 }
 0x83a   :  { %4774 = vtanh.f32 %v4573_v31 }
 0x841   :  { %v4769_v32 = vpop.eup %4768 }
 0x842   :  { %v4771_v34 = vpop.eup %4770  ;;  %v1965_v36 = vadd.f32 1.0, %v4769_v32 }
 0x843   :  { %v1971_v37 = vadd.f32 1.0, %v4771_v34  ;;  %v4773_v38 = vpop.eup %4772 }
 0x844   :  { %4776 = vrcp.f32 %v1965_v36  ;;  %v4775_v40 = vpop.eup %4774  ;;  %v1978_v50 = vadd.f32 1.0, %v4773_v38 }
 0x845   :  { %4778 = vrcp.f32 %v1971_v37 }
 0x846   :  { %4780 = vrcp.f32 %v1978_v50 }
 0x84e   :  { %v4777_v42 = vpop.eup %4776 }
 0x84f   :  { %v4779_v44 = vpop.eup %4778  ;;  %v1982_v47 = vmul.f32 %v4777_v42, %v4775_v40 }
 0x850   :  { %v1981_v53 = vmul.f32 %v4779_v44, %v5732_v58  ;;  %v4781_v1 = vpop.eup %4780 }
 0x852   :  { %v5774_v63 = vadd.f32 %v1982_v47, %v1981_v53 }
 0x854   :  { %4782 = vtanh.f32 %v5774_v63 }
 0x85e   :  { %v4783_v5 = vpop.eup %4782 }
 0x85f   :  { %v5777_v54 = vmul.f32 %v4783_v5, %v4781_v1  ;;  %v521_v5 = vand.u32 127, %v65_v46 }
 0x861   :  { %2055 = vmatmul.mubr.f32.vlgmr.msra.gmra.mrb[16].mxu0 %v5777_v54  ;;  %2126 = vmatmul.mubr.f32.vlgmr.msra.gmra.mrb[16].mxu1 %v5777_v54  ;;  %vm522_vm1 = vcmp.ge.s32.totalorder %v521_v5, 64  ;;  %vm523_vm2 = vcmp.lt.s32.totalorder %v521_v5, 96  ;;  %vm525_vm4 = vcmp.ge.s32.totalorder %v521_v5, 96 }
 0x862   :  { %4082 = vmatpush1.bf16.msra.mxu0 %v5045_v45  ;;  %4114 = vmatpush1.bf16.msra.mxu1 %v5078_v56  ;;  %vm524_vm3 = vmand %vm522_vm1, %vm523_vm2 }
 0x863   :  { %4084 = vmatprep.subr.bf16.mxu0 %v5062_v51  ;;  %4116 = vmatprep.subr.bf16.mxu1 %v5091_v60  ;;  %vm5824_vm5 = vmor %vm524_vm3, %vm525_vm4 }
 0x864   :  { %2231 = vmatprep.mubr.f32.mxu0 %v4912_v3  ;;  %2302 = vmatprep.mubr.f32.mxu1 %v4912_v3 }
 0x866   :  { %4086 = vmatpush1.bf16.msra.mxu0 %v5095_v61  ;;  %4118 = vmatpush1.bf16.msra.mxu1 %v5113_v4 }
 0x867   :  { %4088 = vmatprep.subr.bf16.mxu0 %v5104_v0  ;;  %4120 = vmatprep.subr.bf16.mxu1 %v5134_v10 }
 0x86a   :  { %4090 = vmatpush1.bf16.msra.mxu0 %v5144_v13  ;;  %4122 = vmatpush1.bf16.msra.mxu1 %v5156_v17 }
 0x86b   :  { %4092 = vmatprep.subr.bf16.mxu0 %v5150_v15  ;;  %4124 = vmatprep.subr.bf16.mxu1 %v5172_v22 }
 0x86e   :  { %4094 = vmatpush1.bf16.msra.mxu0 %v5187_v26  ;;  %4126 = vmatpush1.bf16.msra.mxu1 %v5208_v33 }
 0x86f   :  { %4096 = vmatprep.subr.bf16.mxu0 %v5196_v29  ;;  %4128 = vmatprep.subr.bf16.mxu1 %v5215_v35 }
 0x872   :  { %4098 = vmatpush1.bf16.msra.mxu0 %v5233_v41  ;;  %4130 = vmatpush1.bf16.msra.mxu1 %v5251_v48 }
 0x873   :  { %4100 = vmatprep.subr.bf16.mxu0 %v5239_v43  ;;  %4132 = vmatprep.subr.bf16.mxu1 %v5258_v52 }
 0x876   :  { %4102 = vmatpush1.bf16.msra.mxu0 %v5279_v59  ;;  %4134 = vmatpush1.bf16.msra.mxu1 %v5291_v2 }
 0x877   :  { %4104 = vmatprep.subr.bf16.mxu0 %v5282_v62  ;;  %4136 = vmatprep.subr.bf16.mxu1 %v5301_v7 }
 0x87a   :  { %4106 = vmatpush1.bf16.msra.mxu0 %v5322_v16  ;;  %4138 = vmatpush1.bf16.msra.mxu1 %v5334_v21 }
 0x87b   :  { %4108 = vmatprep.subr.bf16.mxu0 %v5326_v18  ;;  %4140 = vmatprep.subr.bf16.mxu1 %v5338_v23 }
 0x87e   :  { %4110 = vmatpush1.bf16.msra.mxu0 %v5353_v28  ;;  %4142 = vmatpush1.bf16.msra.mxu1 %v5357_v30 }
 0x87f   :  { %4144 = vmatprep.subr.bf16.mxu0 %v5028_v39  ;;  %4176 = vmatprep.subr.bf16.mxu1 %v5057_v49 }
 0x934   :  { %v2056_v58 = vpop.f32.mrb[16].mxu0  ;;  %v2127_v6 = vpop.f32.mrb[16].mxu1 }
 0x935   :  { %v4543_v8 = vadd.f32 %v2056_v58, %v5465_v55  ;;  %v2058_v9 = vpop.f32.mrb[17].mxu0  ;;  %v2129_v11 = vpop.f32.mrb[17].mxu1  ;;  %v4575_v31 = vadd.f32 %v2127_v6, %v5474_v24 }
 0x936   :  { %v4544_v12 = vadd.f32 %v2058_v9, %v5467_v57  ;;  %v4576_v25 = vadd.f32 %v2129_v11, %v5471_v14 }
 0x937   :  { %v3455_v19 = vmul.f32 -1.442695, %v4543_v8 }
 0x938   :  { %v3456_v20 = vmul.f32 -1.442695, %v4544_v12  ;;  %v3457_v27 = vmul.f32 -1.442695, %v4576_v25 }
 0x939   :  { %4784 = vpow2.f32 %v3455_v19 }
 0x93a   :  { %4786 = vpow2.f32 %v3456_v20 }
 0x93b   :  { %4788 = vpow2.f32 %v3457_v27 }
 0x93c   :  { %4790 = vtanh.f32 %v4575_v31 }
 0x943   :  { %v4785_v32 = vpop.eup %4784 }
 0x944   :  { %v4787_v34 = vpop.eup %4786  ;;  %v2139_v36 = vadd.f32 1.0, %v4785_v32 }
 0x945   :  { %v2145_v37 = vadd.f32 1.0, %v4787_v34  ;;  %v4789_v38 = vpop.eup %4788 }
 0x946   :  { %4792 = vrcp.f32 %v2139_v36  ;;  %v4791_v40 = vpop.eup %4790  ;;  %v2152_v50 = vadd.f32 1.0, %v4789_v38 }
 0x947   :  { %4794 = vrcp.f32 %v2145_v37 }
 0x948   :  { %4796 = vrcp.f32 %v2152_v50 }
 0x950   :  { %v4793_v42 = vpop.eup %4792 }
 0x951   :  { %v4795_v44 = vpop.eup %4794  ;;  %v2156_v47 = vmul.f32 %v4793_v42, %v4791_v40 }
 0x952   :  { %v2155_v53 = vmul.f32 %v4795_v44, %v5774_v63  ;;  %v4797_v58 = vpop.eup %4796 }
 0x954   :  { %v5820_v1 = vadd.f32 %v2156_v47, %v2155_v53 }
 0x956   :  { %4798 = vtanh.f32 %v5820_v1 }
 0x960   :  { %v4799_v6 = vpop.eup %4798 }
 0x961   :  { %v2159_v8 = vmul.f32 %v4799_v6, %v4797_v58  ;;  %v2162_v6 = vsel %vm5824_vm5, %v5820_v1, %v5774_v63 }
 0x963   :  { %v2161_v11 = vsel %vm5824_vm5, %v2159_v8, %v5777_v54 }
 0x964   :  { %2232 = vmatmul.mubr.f32.vlgmr.msra.gmra.mrb[18].mxu0 %v2161_v11  ;;  %2303 = vmatmul.mubr.f32.vlgmr.msra.gmra.mrb[18].mxu1 %v2161_v11 }
 0x965   :  { %4146 = vmatpush1.bf16.msra.mxu0 %v5045_v45  ;;  %4178 = vmatpush1.bf16.msra.mxu1 %v5078_v56 }
 0x966   :  { %4148 = vmatprep.subr.bf16.mxu0 %v5062_v51  ;;  %4180 = vmatprep.subr.bf16.mxu1 %v5091_v60 }
 0x967   :  { %2407 = vmatprep.mubr.f32.mxu0 %v4912_v3  ;;  %2478 = vmatprep.mubr.f32.mxu1 %v4912_v3 }
 0x969   :  { %4150 = vmatpush1.bf16.msra.mxu0 %v5095_v61  ;;  %4182 = vmatpush1.bf16.msra.mxu1 %v5113_v4 }
 0x96a   :  { %4152 = vmatprep.subr.bf16.mxu0 %v5104_v0  ;;  %4184 = vmatprep.subr.bf16.mxu1 %v5134_v10 }
 0x96d   :  { %4154 = vmatpush1.bf16.msra.mxu0 %v5144_v13  ;;  %4186 = vmatpush1.bf16.msra.mxu1 %v5156_v17 }
 0x96e   :  { %4156 = vmatprep.subr.bf16.mxu0 %v5150_v15  ;;  %4188 = vmatprep.subr.bf16.mxu1 %v5172_v22 }
 0x971   :  { %4158 = vmatpush1.bf16.msra.mxu0 %v5187_v26  ;;  %4190 = vmatpush1.bf16.msra.mxu1 %v5208_v33 }
 0x972   :  { %4160 = vmatprep.subr.bf16.mxu0 %v5196_v29  ;;  %4192 = vmatprep.subr.bf16.mxu1 %v5215_v35 }
 0x975   :  { %4162 = vmatpush1.bf16.msra.mxu0 %v5233_v41  ;;  %4194 = vmatpush1.bf16.msra.mxu1 %v5251_v48 }
 0x976   :  { %4164 = vmatprep.subr.bf16.mxu0 %v5239_v43  ;;  %4196 = vmatprep.subr.bf16.mxu1 %v5258_v52 }
 0x979   :  { %4166 = vmatpush1.bf16.msra.mxu0 %v5279_v59  ;;  %4198 = vmatpush1.bf16.msra.mxu1 %v5291_v2 }
 0x97a   :  { %4168 = vmatprep.subr.bf16.mxu0 %v5282_v62  ;;  %4200 = vmatprep.subr.bf16.mxu1 %v5301_v7 }
 0x97d   :  { %4170 = vmatpush1.bf16.msra.mxu0 %v5322_v16  ;;  %4202 = vmatpush1.bf16.msra.mxu1 %v5334_v21 }
 0x97e   :  { %4172 = vmatprep.subr.bf16.mxu0 %v5326_v18  ;;  %4204 = vmatprep.subr.bf16.mxu1 %v5338_v23 }
 0x981   :  { %4174 = vmatpush1.bf16.msra.mxu0 %v5353_v28  ;;  %4206 = vmatpush1.bf16.msra.mxu1 %v5357_v30 }
 0x982   :  { %4208 = vmatprep.subr.bf16.mxu0 %v5028_v39  ;;  %4240 = vmatprep.subr.bf16.mxu1 %v5057_v49 }
 0xa37   :  { %v2233_v46 = vpop.f32.mrb[18].mxu0  ;;  %v2304_v12 = vpop.f32.mrb[18].mxu1 }
 0xa38   :  { %v4545_v19 = vadd.f32 %v2233_v46, %v5465_v55  ;;  %v2235_v20 = vpop.f32.mrb[19].mxu0  ;;  %v2306_v25 = vpop.f32.mrb[19].mxu1  ;;  %v4577_v37 = vadd.f32 %v2304_v12, %v5474_v24 }
 0xa39   :  { %v4546_v27 = vadd.f32 %v2235_v20, %v5467_v57  ;;  %v4578_v34 = vadd.f32 %v2306_v25, %v5471_v14 }
 0xa3a   :  { %v3458_v31 = vmul.f32 -1.442695, %v4545_v19 }
 0xa3b   :  { %v3459_v32 = vmul.f32 -1.442695, %v4546_v27  ;;  %v3460_v36 = vmul.f32 -1.442695, %v4578_v34 }
 0xa3c   :  { %4800 = vpow2.f32 %v3458_v31 }
 0xa3d   :  { %4802 = vpow2.f32 %v3459_v32 }
 0xa3e   :  { %4804 = vpow2.f32 %v3460_v36 }
 0xa3f   :  { %4806 = vtanh.f32 %v4577_v37 }
 0xa46   :  { %v4801_v38 = vpop.eup %4800 }
 0xa47   :  { %v4803_v40 = vpop.eup %4802  ;;  %v2316_v42 = vadd.f32 1.0, %v4801_v38 }
 0xa48   :  { %v2322_v44 = vadd.f32 1.0, %v4803_v40  ;;  %v4805_v47 = vpop.eup %4804 }
 0xa49   :  { %4808 = vrcp.f32 %v2316_v42  ;;  %v4807_v50 = vpop.eup %4806  ;;  %v2329_v8 = vadd.f32 1.0, %v4805_v47 }
 0xa4a   :  { %4810 = vrcp.f32 %v2322_v44 }
 0xa4b   :  { %4812 = vrcp.f32 %v2329_v8 }
 0xa53   :  { %v4809_v53 = vpop.eup %4808 }
 0xa54   :  { %v4811_v5 = vpop.eup %4810  ;;  %v2333_v58 = vmul.f32 %v4809_v53, %v4807_v50 }
 0xa55   :  { %v2332_v11 = vmul.f32 %v4811_v5, %v2162_v6  ;;  %v4813_v12 = vpop.eup %4812 }
 0xa57   :  { %v5873_v46 = vadd.f32 %v2333_v58, %v2332_v11 }
 0xa59   :  { %4814 = vtanh.f32 %v5873_v46 }
 0xa63   :  { %v4815_v19 = vpop.eup %4814 }
 0xa64   :  { %v2336_v20 = vmul.f32 %v4815_v19, %v4813_v12  ;;  %v2338_v19 = vsel %vm5824_vm5, %v5873_v46, %v5774_v63 }
 0xa66   :  { %v2337_v25 = vsel %vm5824_vm5, %v2336_v20, %v5777_v54 }
 0xa67   :  { %2408 = vmatmul.mubr.f32.vlgmr.msra.gmra.mrb[20].mxu0 %v2337_v25  ;;  %2479 = vmatmul.mubr.f32.vlgmr.msra.gmra.mrb[20].mxu1 %v2337_v25 }
 0xa68   :  { %4210 = vmatpush1.bf16.msra.mxu0 %v5045_v45  ;;  %4242 = vmatpush1.bf16.msra.mxu1 %v5078_v56 }
 0xa69   :  { %4212 = vmatprep.subr.bf16.mxu0 %v5062_v51  ;;  %4244 = vmatprep.subr.bf16.mxu1 %v5091_v60 }
 0xa6a   :  { %2583 = vmatprep.mubr.f32.mxu0 %v4912_v3  ;;  %2654 = vmatprep.mubr.f32.mxu1 %v4912_v3 }
 0xa6c   :  { %4214 = vmatpush1.bf16.msra.mxu0 %v5095_v61  ;;  %4246 = vmatpush1.bf16.msra.mxu1 %v5113_v4 }
 0xa6d   :  { %4216 = vmatprep.subr.bf16.mxu0 %v5104_v0  ;;  %4248 = vmatprep.subr.bf16.mxu1 %v5134_v10 }
 0xa70   :  { %4218 = vmatpush1.bf16.msra.mxu0 %v5144_v13  ;;  %4250 = vmatpush1.bf16.msra.mxu1 %v5156_v17 }
 0xa71   :  { %4220 = vmatprep.subr.bf16.mxu0 %v5150_v15  ;;  %4252 = vmatprep.subr.bf16.mxu1 %v5172_v22 }
 0xa74   :  { %4222 = vmatpush1.bf16.msra.mxu0 %v5187_v26  ;;  %4254 = vmatpush1.bf16.msra.mxu1 %v5208_v33 }
 0xa75   :  { %4224 = vmatprep.subr.bf16.mxu0 %v5196_v29  ;;  %4256 = vmatprep.subr.bf16.mxu1 %v5215_v35 }
 0xa78   :  { %4226 = vmatpush1.bf16.msra.mxu0 %v5233_v41  ;;  %4258 = vmatpush1.bf16.msra.mxu1 %v5251_v48 }
 0xa79   :  { %4228 = vmatprep.subr.bf16.mxu0 %v5239_v43  ;;  %4260 = vmatprep.subr.bf16.mxu1 %v5258_v52 }
 0xa7c   :  { %4230 = vmatpush1.bf16.msra.mxu0 %v5279_v59  ;;  %4262 = vmatpush1.bf16.msra.mxu1 %v5291_v2 }
 0xa7d   :  { %4232 = vmatprep.subr.bf16.mxu0 %v5282_v62  ;;  %4264 = vmatprep.subr.bf16.mxu1 %v5301_v7 }
 0xa80   :  { %4234 = vmatpush1.bf16.msra.mxu0 %v5322_v16  ;;  %4266 = vmatpush1.bf16.msra.mxu1 %v5334_v21 }
 0xa81   :  { %4236 = vmatprep.subr.bf16.mxu0 %v5326_v18  ;;  %4268 = vmatprep.subr.bf16.mxu1 %v5338_v23 }
 0xa84   :  { %4238 = vmatpush1.bf16.msra.mxu0 %v5353_v28  ;;  %4270 = vmatpush1.bf16.msra.mxu1 %v5357_v30 }
 0xa85   :  { %4272 = vmatprep.subr.bf16.mxu0 %v5028_v39  ;;  %4304 = vmatprep.subr.bf16.mxu1 %v5057_v49 }
 0xb3a   :  { %v2409_v1 = vpop.f32.mrb[20].mxu0  ;;  %v2480_v27 = vpop.f32.mrb[20].mxu1 }
 0xb3b   :  { %v4547_v31 = vadd.f32 %v2409_v1, %v5465_v55  ;;  %v2411_v32 = vpop.f32.mrb[21].mxu0  ;;  %v2482_v34 = vpop.f32.mrb[21].mxu1  ;;  %v4579_v44 = vadd.f32 %v2480_v27, %v5474_v24 }
 0xb3c   :  { %v4548_v36 = vadd.f32 %v2411_v32, %v5467_v57  ;;  %v4580_v40 = vadd.f32 %v2482_v34, %v5471_v14 }
 0xb3d   :  { %v3461_v37 = vmul.f32 -1.442695, %v4547_v31 }
 0xb3e   :  { %v3462_v38 = vmul.f32 -1.442695, %v4548_v36  ;;  %v3463_v42 = vmul.f32 -1.442695, %v4580_v40 }
 0xb3f   :  { %4816 = vpow2.f32 %v3461_v37 }
 0xb40   :  { %4818 = vpow2.f32 %v3462_v38 }
 0xb41   :  { %4820 = vpow2.f32 %v3463_v42 }
 0xb42   :  { %4822 = vtanh.f32 %v4579_v44 }
 0xb49   :  { %v4817_v47 = vpop.eup %4816 }
 0xb4a   :  { %v4819_v50 = vpop.eup %4818  ;;  %v2492_v53 = vadd.f32 1.0, %v4817_v47 }
 0xb4b   :  { %v2498_v5 = vadd.f32 1.0, %v4819_v50  ;;  %v4821_v58 = vpop.eup %4820 }
 0xb4c   :  { %4824 = vrcp.f32 %v2492_v53  ;;  %v4823_v6 = vpop.eup %4822  ;;  %v2505_v20 = vadd.f32 1.0, %v4821_v58 }
 0xb4d   :  { %4826 = vrcp.f32 %v2498_v5 }
 0xb4e   :  { %4828 = vrcp.f32 %v2505_v20 }
 0xb56   :  { %v4825_v8 = vpop.eup %4824 }
 0xb57   :  { %v4827_v11 = vpop.eup %4826  ;;  %v2509_v12 = vmul.f32 %v4825_v8, %v4823_v6 }
 0xb58   :  { %v2508_v25 = vmul.f32 %v4827_v11, %v2338_v19  ;;  %v4829_v27 = vpop.eup %4828 }
 0xb5a   :  { %v5921_v1 = vadd.f32 %v2509_v12, %v2508_v25 }
 0xb5c   :  { %4830 = vtanh.f32 %v5921_v1 }
 0xb66   :  { %v4831_v31 = vpop.eup %4830 }
 0xb67   :  { %v2512_v32 = vmul.f32 %v4831_v31, %v4829_v27  ;;  %v2514_v31 = vsel %vm5824_vm5, %v5921_v1, %v5774_v63 }
 0xb69   :  { %v2513_v34 = vsel %vm5824_vm5, %v2512_v32, %v5777_v54 }
 0xb6a   :  { %2584 = vmatmul.mubr.f32.vlgmr.msra.gmra.mrb[22].mxu0 %v2513_v34  ;;  %2655 = vmatmul.mubr.f32.vlgmr.msra.gmra.mrb[22].mxu1 %v2513_v34 }
 0xb6b   :  { %4274 = vmatpush1.bf16.msra.mxu0 %v5045_v45  ;;  %4306 = vmatpush1.bf16.msra.mxu1 %v5078_v56 }
 0xb6c   :  { %4276 = vmatprep.subr.bf16.mxu0 %v5062_v51  ;;  %4308 = vmatprep.subr.bf16.mxu1 %v5091_v60 }
 0xb6d   :  { %2759 = vmatprep.mubr.f32.mxu0 %v4912_v3  ;;  %2830 = vmatprep.mubr.f32.mxu1 %v4912_v3 }
 0xb6f   :  { %4278 = vmatpush1.bf16.msra.mxu0 %v5095_v61  ;;  %4310 = vmatpush1.bf16.msra.mxu1 %v5113_v4 }
 0xb70   :  { %4280 = vmatprep.subr.bf16.mxu0 %v5104_v0  ;;  %4312 = vmatprep.subr.bf16.mxu1 %v5134_v10 }
 0xb73   :  { %4282 = vmatpush1.bf16.msra.mxu0 %v5144_v13  ;;  %4314 = vmatpush1.bf16.msra.mxu1 %v5156_v17 }
 0xb74   :  { %4284 = vmatprep.subr.bf16.mxu0 %v5150_v15  ;;  %4316 = vmatprep.subr.bf16.mxu1 %v5172_v22 }
 0xb77   :  { %4286 = vmatpush1.bf16.msra.mxu0 %v5187_v26  ;;  %4318 = vmatpush1.bf16.msra.mxu1 %v5208_v33 }
 0xb78   :  { %4288 = vmatprep.subr.bf16.mxu0 %v5196_v29  ;;  %4320 = vmatprep.subr.bf16.mxu1 %v5215_v35 }
 0xb7b   :  { %4290 = vmatpush1.bf16.msra.mxu0 %v5233_v41  ;;  %4322 = vmatpush1.bf16.msra.mxu1 %v5251_v48 }
 0xb7c   :  { %4292 = vmatprep.subr.bf16.mxu0 %v5239_v43  ;;  %4324 = vmatprep.subr.bf16.mxu1 %v5258_v52 }
 0xb7f   :  { %4294 = vmatpush1.bf16.msra.mxu0 %v5279_v59  ;;  %4326 = vmatpush1.bf16.msra.mxu1 %v5291_v2 }
 0xb80   :  { %4296 = vmatprep.subr.bf16.mxu0 %v5282_v62  ;;  %4328 = vmatprep.subr.bf16.mxu1 %v5301_v7 }
 0xb83   :  { %4298 = vmatpush1.bf16.msra.mxu0 %v5322_v16  ;;  %4330 = vmatpush1.bf16.msra.mxu1 %v5334_v21 }
 0xb84   :  { %4300 = vmatprep.subr.bf16.mxu0 %v5326_v18  ;;  %4332 = vmatprep.subr.bf16.mxu1 %v5338_v23 }
 0xb87   :  { %4302 = vmatpush1.bf16.msra.mxu0 %v5353_v28  ;;  %4334 = vmatpush1.bf16.msra.mxu1 %v5357_v30 }
 0xb88   :  { %4336 = vmatprep.subr.bf16.mxu0 %v5028_v39  ;;  %4368 = vmatprep.subr.bf16.mxu1 %v5057_v49 }
 0xc3d   :  { %v2585_v46 = vpop.f32.mrb[22].mxu0  ;;  %v2656_v36 = vpop.f32.mrb[22].mxu1 }
 0xc3e   :  { %v4549_v37 = vadd.f32 %v2585_v46, %v5465_v55  ;;  %v2587_v38 = vpop.f32.mrb[23].mxu0  ;;  %v2658_v40 = vpop.f32.mrb[23].mxu1  ;;  %v4581_v5 = vadd.f32 %v2656_v36, %v5474_v24 }
 0xc3f   :  { %v4550_v42 = vadd.f32 %v2587_v38, %v5467_v57  ;;  %v4582_v50 = vadd.f32 %v2658_v40, %v5471_v14 }
 0xc40   :  { %v3464_v44 = vmul.f32 -1.442695, %v4549_v37 }
 0xc41   :  { %v3465_v47 = vmul.f32 -1.442695, %v4550_v42  ;;  %v3466_v53 = vmul.f32 -1.442695, %v4582_v50 }
 0xc42   :  { %4832 = vpow2.f32 %v3464_v44 }
 0xc43   :  { %4834 = vpow2.f32 %v3465_v47 }
 0xc44   :  { %4836 = vpow2.f32 %v3466_v53 }
 0xc45   :  { %4838 = vtanh.f32 %v4581_v5 }
 0xc4c   :  { %v4833_v58 = vpop.eup %4832 }
 0xc4d   :  { %v4835_v6 = vpop.eup %4834  ;;  %v2668_v8 = vadd.f32 1.0, %v4833_v58 }
 0xc4e   :  { %v2674_v11 = vadd.f32 1.0, %v4835_v6  ;;  %v4837_v12 = vpop.eup %4836 }
 0xc4f   :  { %4840 = vrcp.f32 %v2668_v8  ;;  %v4839_v19 = vpop.eup %4838  ;;  %v2681_v32 = vadd.f32 1.0, %v4837_v12 }
 0xc50   :  { %4842 = vrcp.f32 %v2674_v11 }
 0xc51   :  { %4844 = vrcp.f32 %v2681_v32 }
 0xc59   :  { %v4841_v20 = vpop.eup %4840 }
 0xc5a   :  { %v4843_v25 = vpop.eup %4842  ;;  %v2685_v27 = vmul.f32 %v4841_v20, %v4839_v19 }
 0xc5b   :  { %v2684_v34 = vmul.f32 %v4843_v25, %v2514_v31  ;;  %v4845_v36 = vpop.eup %4844 }
 0xc5d   :  { %v5969_v46 = vadd.f32 %v2685_v27, %v2684_v34 }
 0xc5f   :  { %4846 = vtanh.f32 %v5969_v46 }
 0xc69   :  { %v4847_v37 = vpop.eup %4846 }
 0xc6a   :  { %v2688_v38 = vmul.f32 %v4847_v37, %v4845_v36  ;;  %v2690_v37 = vsel %vm5824_vm5, %v5969_v46, %v5774_v63 }
 0xc6c   :  { %v2689_v40 = vsel %vm5824_vm5, %v2688_v38, %v5777_v54 }
 0xc6d   :  { %2760 = vmatmul.mubr.f32.vlgmr.msra.gmra.mrb[24].mxu0 %v2689_v40  ;;  %2831 = vmatmul.mubr.f32.vlgmr.msra.gmra.mrb[24].mxu1 %v2689_v40 }
 0xc6e   :  { %4338 = vmatpush1.bf16.msra.mxu0 %v5045_v45  ;;  %4370 = vmatpush1.bf16.msra.mxu1 %v5078_v56 }
 0xc6f   :  { %4340 = vmatprep.subr.bf16.mxu0 %v5062_v51  ;;  %4372 = vmatprep.subr.bf16.mxu1 %v5091_v60 }
 0xc70   :  { %2935 = vmatprep.mubr.f32.mxu0 %v4912_v3  ;;  %3006 = vmatprep.mubr.f32.mxu1 %v4912_v3 }
 0xc72   :  { %4342 = vmatpush1.bf16.msra.mxu0 %v5095_v61  ;;  %4374 = vmatpush1.bf16.msra.mxu1 %v5113_v4 }
 0xc73   :  { %4344 = vmatprep.subr.bf16.mxu0 %v5104_v0  ;;  %4376 = vmatprep.subr.bf16.mxu1 %v5134_v10 }
 0xc76   :  { %4346 = vmatpush1.bf16.msra.mxu0 %v5144_v13  ;;  %4378 = vmatpush1.bf16.msra.mxu1 %v5156_v17 }
 0xc77   :  { %4348 = vmatprep.subr.bf16.mxu0 %v5150_v15  ;;  %4380 = vmatprep.subr.bf16.mxu1 %v5172_v22 }
 0xc7a   :  { %4350 = vmatpush1.bf16.msra.mxu0 %v5187_v26  ;;  %4382 = vmatpush1.bf16.msra.mxu1 %v5208_v33 }
 0xc7b   :  { %4352 = vmatprep.subr.bf16.mxu0 %v5196_v29  ;;  %4384 = vmatprep.subr.bf16.mxu1 %v5215_v35 }
 0xc7e   :  { %4354 = vmatpush1.bf16.msra.mxu0 %v5233_v41  ;;  %4386 = vmatpush1.bf16.msra.mxu1 %v5251_v48 }
 0xc7f   :  { %4356 = vmatprep.subr.bf16.mxu0 %v5239_v43  ;;  %4388 = vmatprep.subr.bf16.mxu1 %v5258_v52 }
 0xc82   :  { %4358 = vmatpush1.bf16.msra.mxu0 %v5279_v59  ;;  %4390 = vmatpush1.bf16.msra.mxu1 %v5291_v2 }
 0xc83   :  { %4360 = vmatprep.subr.bf16.mxu0 %v5282_v62  ;;  %4392 = vmatprep.subr.bf16.mxu1 %v5301_v7 }
 0xc86   :  { %4362 = vmatpush1.bf16.msra.mxu0 %v5322_v16  ;;  %4394 = vmatpush1.bf16.msra.mxu1 %v5334_v21 }
 0xc87   :  { %4364 = vmatprep.subr.bf16.mxu0 %v5326_v18  ;;  %4396 = vmatprep.subr.bf16.mxu1 %v5338_v23 }
 0xc8a   :  { %4366 = vmatpush1.bf16.msra.mxu0 %v5353_v28  ;;  %4398 = vmatpush1.bf16.msra.mxu1 %v5357_v30 }
 0xc8b   :  { %4400 = vmatprep.subr.bf16.mxu0 %v5028_v39  ;;  %4432 = vmatprep.subr.bf16.mxu1 %v5057_v49 }
 0xd40   :  { %v2761_v1 = vpop.f32.mrb[24].mxu0  ;;  %v2832_v42 = vpop.f32.mrb[24].mxu1 }
 0xd41   :  { %v4551_v44 = vadd.f32 %v2761_v1, %v5465_v55  ;;  %v2763_v47 = vpop.f32.mrb[25].mxu0  ;;  %v2834_v50 = vpop.f32.mrb[25].mxu1  ;;  %v4583_v11 = vadd.f32 %v2832_v42, %v5474_v24 }
 0xd42   :  { %v4552_v53 = vadd.f32 %v2763_v47, %v5467_v57  ;;  %v4584_v6 = vadd.f32 %v2834_v50, %v5471_v14 }
 0xd43   :  { %v3467_v5 = vmul.f32 -1.442695, %v4551_v44 }
 0xd44   :  { %v3468_v58 = vmul.f32 -1.442695, %v4552_v53  ;;  %v3469_v8 = vmul.f32 -1.442695, %v4584_v6 }
 0xd45   :  { %4848 = vpow2.f32 %v3467_v5 }
 0xd46   :  { %4850 = vpow2.f32 %v3468_v58 }
 0xd47   :  { %4852 = vpow2.f32 %v3469_v8 }
 0xd48   :  { %4854 = vtanh.f32 %v4583_v11 }
 0xd4f   :  { %v4849_v12 = vpop.eup %4848 }
 0xd50   :  { %v4851_v19 = vpop.eup %4850  ;;  %v2844_v20 = vadd.f32 1.0, %v4849_v12 }
 0xd51   :  { %v2850_v25 = vadd.f32 1.0, %v4851_v19  ;;  %v4853_v27 = vpop.eup %4852 }
 0xd52   :  { %4856 = vrcp.f32 %v2844_v20  ;;  %v4855_v31 = vpop.eup %4854  ;;  %v2857_v38 = vadd.f32 1.0, %v4853_v27 }
 0xd53   :  { %4858 = vrcp.f32 %v2850_v25 }
 0xd54   :  { %4860 = vrcp.f32 %v2857_v38 }
 0xd5c   :  { %v4857_v32 = vpop.eup %4856 }
 0xd5d   :  { %v4859_v34 = vpop.eup %4858  ;;  %v2861_v36 = vmul.f32 %v4857_v32, %v4855_v31 }
 0xd5e   :  { %v2860_v40 = vmul.f32 %v4859_v34, %v2690_v37  ;;  %v4861_v42 = vpop.eup %4860 }
 0xd60   :  { %v6017_v1 = vadd.f32 %v2861_v36, %v2860_v40 }
 0xd62   :  { %4862 = vtanh.f32 %v6017_v1  ;;  %v2866_v40 = vsel %vm5824_vm5, %v6017_v1, %v5774_v63 }
 0xd6c   :  { %v4863_v44 = vpop.eup %4862 }
 0xd6d   :  { %v2864_v47 = vmul.f32 %v4863_v44, %v4861_v42 }
 0xd6f   :  { %v2865_v50 = vsel %vm5824_vm5, %v2864_v47, %v5777_v54 }
 0xd70   :  { %2936 = vmatmul.mubr.f32.vlgmr.msra.gmra.mrb[26].mxu0 %v2865_v50  ;;  %3007 = vmatmul.mubr.f32.vlgmr.msra.gmra.mrb[26].mxu1 %v2865_v50 }
 0xd71   :  { %4402 = vmatpush1.bf16.msra.mxu0 %v5045_v45  ;;  %4434 = vmatpush1.bf16.msra.mxu1 %v5078_v56 }
 0xd72   :  { %4404 = vmatprep.subr.bf16.mxu0 %v5062_v51  ;;  %4436 = vmatprep.subr.bf16.mxu1 %v5091_v60 }
 0xd73   :  { %3111 = vmatprep.mubr.f32.mxu0 %v4912_v3  ;;  %3182 = vmatprep.mubr.f32.mxu1 %v4912_v3 }
 0xd75   :  { %4406 = vmatpush1.bf16.msra.mxu0 %v5095_v61  ;;  %4438 = vmatpush1.bf16.msra.mxu1 %v5113_v4 }
 0xd76   :  { %4408 = vmatprep.subr.bf16.mxu0 %v5104_v0  ;;  %4440 = vmatprep.subr.bf16.mxu1 %v5134_v10 }
 0xd79   :  { %4410 = vmatpush1.bf16.msra.mxu0 %v5144_v13  ;;  %4442 = vmatpush1.bf16.msra.mxu1 %v5156_v17 }
 0xd7a   :  { %4412 = vmatprep.subr.bf16.mxu0 %v5150_v15  ;;  %4444 = vmatprep.subr.bf16.mxu1 %v5172_v22 }
 0xd7d   :  { %4414 = vmatpush1.bf16.msra.mxu0 %v5187_v26  ;;  %4446 = vmatpush1.bf16.msra.mxu1 %v5208_v33 }
 0xd7e   :  { %4416 = vmatprep.subr.bf16.mxu0 %v5196_v29  ;;  %4448 = vmatprep.subr.bf16.mxu1 %v5215_v35 }
 0xd81   :  { %4418 = vmatpush1.bf16.msra.mxu0 %v5233_v41  ;;  %4450 = vmatpush1.bf16.msra.mxu1 %v5251_v48 }
 0xd82   :  { %4420 = vmatprep.subr.bf16.mxu0 %v5239_v43  ;;  %4452 = vmatprep.subr.bf16.mxu1 %v5258_v52 }
 0xd85   :  { %4422 = vmatpush1.bf16.msra.mxu0 %v5279_v59  ;;  %4454 = vmatpush1.bf16.msra.mxu1 %v5291_v2 }
 0xd86   :  { %4424 = vmatprep.subr.bf16.mxu0 %v5282_v62  ;;  %4456 = vmatprep.subr.bf16.mxu1 %v5301_v7 }
 0xd89   :  { %4426 = vmatpush1.bf16.msra.mxu0 %v5322_v16  ;;  %4458 = vmatpush1.bf16.msra.mxu1 %v5334_v21 }
 0xd8a   :  { %4428 = vmatprep.subr.bf16.mxu0 %v5326_v18  ;;  %4460 = vmatprep.subr.bf16.mxu1 %v5338_v23 }
 0xd8d   :  { %4430 = vmatpush1.bf16.msra.mxu0 %v5353_v28  ;;  %4462 = vmatpush1.bf16.msra.mxu1 %v5357_v30 }
 0xd8e   :  { %4464 = vmatprep.subr.bf16.mxu0 %v5028_v39  ;;  %4496 = vmatprep.subr.bf16.mxu1 %v5057_v49 }
 0xe43   :  { %v2937_v46 = vpop.f32.mrb[26].mxu0  ;;  %v3008_v53 = vpop.f32.mrb[26].mxu1 }
 0xe44   :  { %v4553_v5 = vadd.f32 %v2937_v46, %v5465_v55  ;;  %v2939_v58 = vpop.f32.mrb[27].mxu0  ;;  %v3010_v6 = vpop.f32.mrb[27].mxu1  ;;  %v4585_v25 = vadd.f32 %v3008_v53, %v5474_v24 }
 0xe45   :  { %v4554_v8 = vadd.f32 %v2939_v58, %v5467_v57  ;;  %v4586_v19 = vadd.f32 %v3010_v6, %v5471_v14 }
 0xe46   :  { %v3470_v11 = vmul.f32 -1.442695, %v4553_v5 }
 0xe47   :  { %v3471_v12 = vmul.f32 -1.442695, %v4554_v8  ;;  %v3472_v20 = vmul.f32 -1.442695, %v4586_v19 }
 0xe48   :  { %4864 = vpow2.f32 %v3470_v11 }
 0xe49   :  { %4866 = vpow2.f32 %v3471_v12 }
 0xe4a   :  { %4868 = vpow2.f32 %v3472_v20 }
 0xe4b   :  { %4870 = vtanh.f32 %v4585_v25 }
 0xe52   :  { %v4865_v39 = vpop.eup %4864 }
 0xe53   :  { %v4867_v27 = vpop.eup %4866  ;;  %v3020_v49 = vadd.f32 1.0, %v4865_v39 }
 0xe54   :  { %v3026_v31 = vadd.f32 1.0, %v4867_v27  ;;  %v4869_v32 = vpop.eup %4868 }
 0xe55   :  { %4872 = vrcp.f32 %v3020_v49  ;;  %v4871_v34 = vpop.eup %4870  ;;  %v3033_v42 = vadd.f32 1.0, %v4869_v32 }
 0xe56   :  { %4874 = vrcp.f32 %v3026_v31 }
 0xe57   :  { %4876 = vrcp.f32 %v3033_v42 }
 0xe5f   :  { %v4873_v36 = vpop.eup %4872 }
 0xe60   :  { %v4875_v37 = vpop.eup %4874  ;;  %v3037_v38 = vmul.f32 %v4873_v36, %v4871_v34 }
 0xe61   :  { %v3036_v44 = vmul.f32 %v4875_v37, %v2866_v40  ;;  %v4877_v50 = vpop.eup %4876 }
 0xe63   :  { %v6065_v47 = vadd.f32 %v3037_v38, %v3036_v44 }
 0xe65   :  { %4878 = vtanh.f32 %v6065_v47 }
 0xe6f   :  { %v4879_v46 = vpop.eup %4878 }
 0xe70   :  { %v3040_v53 = vmul.f32 %v4879_v46, %v4877_v50 }
 0xe72   :  { %v3041_v5 = vsel %vm5824_vm5, %v3040_v53, %v5777_v54 }
 0xe73   :  { %3112 = vmatmul.mubr.f32.vlgmr.msra.gmra.mrb[28].mxu0 %v3041_v5  ;;  %3183 = vmatmul.mubr.f32.vlgmr.msra.gmra.mrb[28].mxu1 %v3041_v5 }
 0xe74   :  { %4466 = vmatpush1.bf16.msra.mxu0 %v5045_v45  ;;  %4498 = vmatpush1.bf16.msra.mxu1 %v5078_v56 }
 0xe75   :  { %4468 = vmatprep.subr.bf16.mxu0 %v5062_v51  ;;  %4500 = vmatprep.subr.bf16.mxu1 %v5091_v60 }
 0xe76   :  { %3287 = vmatprep.mubr.f32.mxu0 %v4912_v3  ;;  %3358 = vmatprep.mubr.f32.mxu1 %v4912_v3 }
 0xe78   :  { %4470 = vmatpush1.bf16.msra.mxu0 %v5095_v61  ;;  %4502 = vmatpush1.bf16.msra.mxu1 %v5113_v4 }
 0xe79   :  { %4472 = vmatprep.subr.bf16.mxu0 %v5104_v0  ;;  %4504 = vmatprep.subr.bf16.mxu1 %v5134_v10 }
 0xe7c   :  { %4474 = vmatpush1.bf16.msra.mxu0 %v5144_v13  ;;  %4506 = vmatpush1.bf16.msra.mxu1 %v5156_v17 }
 0xe7d   :  { %4476 = vmatprep.subr.bf16.mxu0 %v5150_v15  ;;  %4508 = vmatprep.subr.bf16.mxu1 %v5172_v22 }
 0xe80   :  { %4478 = vmatpush1.bf16.msra.mxu0 %v5187_v26  ;;  %4510 = vmatpush1.bf16.msra.mxu1 %v5208_v33 }
 0xe81   :  { %4480 = vmatprep.subr.bf16.mxu0 %v5196_v29  ;;  %4512 = vmatprep.subr.bf16.mxu1 %v5215_v35 }
 0xe84   :  { %4482 = vmatpush1.bf16.msra.mxu0 %v5233_v41  ;;  %4514 = vmatpush1.bf16.msra.mxu1 %v5251_v48 }
 0xe85   :  { %4484 = vmatprep.subr.bf16.mxu0 %v5239_v43  ;;  %4516 = vmatprep.subr.bf16.mxu1 %v5258_v52  ;;  %v3042_v52 = vsel %vm5824_vm5, %v6065_v47, %v5774_v63 }
 0xe88   :  { %4486 = vmatpush1.bf16.msra.mxu0 %v5279_v59  ;;  %4518 = vmatpush1.bf16.msra.mxu1 %v5291_v2 }
 0xe89   :  { %4488 = vmatprep.subr.bf16.mxu0 %v5282_v62  ;;  %4520 = vmatprep.subr.bf16.mxu1 %v5301_v7 }
 0xe8c   :  { %4490 = vmatpush1.bf16.msra.mxu0 %v5322_v16  ;;  %4522 = vmatpush1.bf16.msra.mxu1 %v5334_v21 }
 0xe8d   :  { %4492 = vmatprep.subr.bf16.mxu0 %v5326_v18  ;;  %4524 = vmatprep.subr.bf16.mxu1 %v5338_v23 }
 0xe90   :  { %4494 = vmatpush1.bf16.msra.mxu0 %v5353_v28  ;;  %4526 = vmatpush1.bf16.msra.mxu1 %v5357_v30 }
 0xf46   :  { %v3113_v3 = vpop.f32.mrb[28].mxu0  ;;  %v3184_v45 = vpop.f32.mrb[28].mxu1 }
 0xf47   :  { %v4555_v51 = vadd.f32 %v3113_v3, %v5465_v55  ;;  %v3115_v56 = vpop.f32.mrb[29].mxu0  ;;  %v3186_v60 = vpop.f32.mrb[29].mxu1  ;;  %v4587_v15 = vadd.f32 %v3184_v45, %v5474_v24 }
 0xf48   :  { %v4556_v61 = vadd.f32 %v3115_v56, %v5467_v57  ;;  %v4588_v10 = vadd.f32 %v3186_v60, %v5471_v14 }
 0xf49   :  { %v3473_v0 = vmul.f32 -1.442695, %v4555_v51 }
 0xf4a   :  { %v3474_v4 = vmul.f32 -1.442695, %v4556_v61  ;;  %v3475_v13 = vmul.f32 -1.442695, %v4588_v10 }
 0xf4b   :  { %4880 = vpow2.f32 %v3473_v0 }
 0xf4c   :  { %4882 = vpow2.f32 %v3474_v4 }
 0xf4d   :  { %4884 = vpow2.f32 %v3475_v13 }
 0xf4e   :  { %4886 = vtanh.f32 %v4587_v15 }
 0xf55   :  { %v4881_v17 = vpop.eup %4880 }
 0xf56   :  { %v4883_v22 = vpop.eup %4882  ;;  %v3196_v26 = vadd.f32 1.0, %v4881_v17 }
 0xf57   :  { %v3202_v29 = vadd.f32 1.0, %v4883_v22  ;;  %v4885_v33 = vpop.eup %4884 }
 0xf58   :  { %4888 = vrcp.f32 %v3196_v26  ;;  %v4887_v35 = vpop.eup %4886  ;;  %v3209_v59 = vadd.f32 1.0, %v4885_v33 }
 0xf59   :  { %4890 = vrcp.f32 %v3202_v29 }
 0xf5a   :  { %4892 = vrcp.f32 %v3209_v59 }
 0xf62   :  { %v4889_v41 = vpop.eup %4888 }
 0xf63   :  { %v4891_v43 = vpop.eup %4890  ;;  %v3213_v48 = vmul.f32 %v4889_v41, %v4887_v35 }
 0xf64   :  { %v3212_v62 = vmul.f32 %v4891_v43, %v3042_v52  ;;  %v4893_v7 = vpop.eup %4892 }
 0xf66   :  { %v3214_v2 = vadd.f32 %v3213_v48, %v3212_v62 }
 0xf68   :  { %4894 = vtanh.f32 %v3214_v2 }
 0xf72   :  { %v4895_v16 = vpop.eup %4894 }
 0xf73   :  { %v3216_v18 = vmul.f32 %v4895_v16, %v4893_v7 }
 0xf75   :  { %v3217_v21 = vsel %vm5824_vm5, %v3216_v18, %v5777_v54 }
 0xf76   :  { %3288 = vmatmul.mubr.f32.vlgmr.msra.gmra.mrb[30].mxu0 %v3217_v21  ;;  %3359 = vmatmul.mubr.f32.vlgmr.msra.gmra.mrb[30].mxu1 %v3217_v21 }
0x1049   :  { %v3289_v23 = vpop.f32.mrb[30].mxu0  ;;  %v3360_v28 = vpop.f32.mrb[30].mxu1 }
0x104a   :  { %v4557_v30 = vadd.f32 %v3289_v23, %v5465_v55  ;;  %v3291_v1 = vpop.f32.mrb[31].mxu0  ;;  %v3362_v58 = vpop.f32.mrb[31].mxu1  ;;  %v4589_v20 = vadd.f32 %v3360_v28, %v5474_v24 }
0x104b   :  { %v4558_v6 = vadd.f32 %v3291_v1, %v5467_v57  ;;  %v4590_v12 = vadd.f32 %v3362_v58, %v5471_v14  ;;  %v3218_v14 = vsel %vm5824_vm5, %v3214_v2, %v5774_v63 }
0x104c   :  { %v3476_v8 = vmul.f32 -1.442695, %v4557_v30 }
0x104d   :  { %v3477_v11 = vmul.f32 -1.442695, %v4558_v6  ;;  %v3478_v19 = vmul.f32 -1.442695, %v4590_v12 }
0x104e   :  { %4896 = vpow2.f32 %v3476_v8 }
0x104f   :  { %4898 = vpow2.f32 %v3477_v11 }
0x1050   :  { %4900 = vpow2.f32 %v3478_v19 }
0x1051   :  { %4902 = vtanh.f32 %v4589_v20 }
0x1058   :  { %v4897_v25 = vpop.eup %4896 }
0x1059   :  { %v4899_v39 = vpop.eup %4898  ;;  %v3372_v27 = vadd.f32 1.0, %v4897_v25 }
0x105a   :  { %v3378_v49 = vadd.f32 1.0, %v4899_v39  ;;  %v4901_v55 = vpop.eup %4900 }
0x105b   :  { %4904 = vrcp.f32 %v3372_v27  ;;  %v4903_v31 = vpop.eup %4902  ;;  %v3385_v36 = vadd.f32 1.0, %v4901_v55 }
0x105c   :  { %4906 = vrcp.f32 %v3378_v49 }
0x105d   :  { %4908 = vrcp.f32 %v3385_v36 }
0x1065   :  { %v4905_v57 = vpop.eup %4904 }
0x1066   :  { %v4907_v32 = vpop.eup %4906  ;;  %v3389_v34 = vmul.f32 %v4905_v57, %v4903_v31 }
0x1067   :  { %v3388_v37 = vmul.f32 %v4907_v32, %v3218_v14  ;;  %v4909_v38 = vpop.eup %4908 }
0x1069   :  { %v3390_v24 = vadd.f32 %v3389_v34, %v3388_v37 }
0x106b   :  { %4910 = vtanh.f32 %v3390_v24 }
0x1075   :  { %v4911_v40 = vpop.eup %4910 }
0x1076   :  { %v3392_v42 = vmul.f32 %v4911_v40, %v4909_v38 }
0x1078   :  { %v3393_v44 = vsel %vm5824_vm5, %v3392_v42, %v5777_v54 }
0x1079   :  { %3394 = vst [vmem:[%s6133_s6] sm:$0xff] %v3393_v44 }

</bundles_post_ra>
